<compile_context>
chip_gen: v7x
topology: tpu7x:2x2x1
jax: 0.10.0
libtpu: 0.0.40
codegen_flags: <defaults>
</compile_context>

<pallas_src>
import jax
import jax.numpy as jnp
from jax.experimental import pallas as pl
from jax.experimental.pallas import tpu as pltpu


_LANE = 128


def _round_up(x, m):
    return (x + m - 1) // m * m


def _expert_kernel(x_ref, w_ref, b_ref, o_ref):
    # x_ref: (1, C, TL)  -- NCHW-native slab (C on sublanes, tokens on lanes)
    # w_ref: (C, E)      -- resident in VMEM (constant index map)
    # b_ref: (1, E)      -- resident in VMEM (constant index map)
    # o_ref: (1, TL, E)
    x_ct = x_ref[0]            # (C, TL)
    w = w_ref[...]             # (C, E)
    b = b_ref[...]             # (1, E) -> broadcasts over TL rows

    # f32 inputs: ask for full-precision MXU passes (MXU has huge slack here
    # -- the kernel is HBM-bound); other dtypes use the default path.
    precision = (jax.lax.Precision.HIGHEST
                 if x_ct.dtype == jnp.float32 else None)

    # Contract the channel axis of both operands: x^T @ w -> (TL, E).
    y = jax.lax.dot_general(
        x_ct, w,
        dimension_numbers=(((0,), (0,)), ((), ())),
        preferred_element_type=jnp.float32,
        precision=precision,
    )
    o_ref[0] = (y + b).astype(o_ref.dtype)


def _pick_token_tile(L, B, C, E, itemsize):
    """Largest token tile whose multi-buffered VMEM working set fits a
    conservative budget; prefer tiles giving >= 2 (and even) total grid steps
    so both TensorCores of a dual-TC chip (v7x) stay busy."""
    budget = 24 * 1024 * 1024  # fits every generation with explicit vmem limit

    def working_set(tl):
        x_blk = _round_up(C, 8) * tl * itemsize            # (C, TL) slab
        out_blk = tl * _round_up(E, _LANE) * itemsize      # lane-padded out tile
        return 3 * x_blk + 2 * out_blk                     # up to 3 x-buffers

    cands = [tl for tl in (8192, 4096, 2048, 1024, 512, 256, 128)
             if L % tl == 0 and working_set(tl) <= budget]
    if not cands:
        # Ragged / tiny spatial extent: one tile per batch element.
        return L
    for tl in cands:                        # largest first
        steps = B * (L // tl)
        if steps >= 2 and steps % 2 == 0:
            return tl
    for tl in cands:
        if B * (L // tl) >= 2:
            return tl
    return cands[0]


def _vmem_limit_bytes(C, E, tl, itemsize, x_bufs):
    x_blk = _round_up(C, 8) * tl * itemsize
    out_blk = tl * _round_up(E, _LANE) * itemsize
    w_blk = _round_up(C, 8) * _round_up(E, _LANE) * itemsize
    b_blk = 8 * _LANE * itemsize
    working = x_bufs * x_blk + 2 * out_blk + 2 * (w_blk + b_blk)
    # ~2x headroom, never below 32 MiB, never above v7x's 64 MiB physical.
    return int(min(64 * 1024 * 1024, max(32 * 1024 * 1024, 2 * working)))


def expert_forward(x_nchw, weight, bias):
    """x_nchw: (B, C, H, W); weight: (E, C) torch convention; bias: (E,).

    Returns (B, H*W, E), matching `Expert.forward`.
    """
    B, C, H, W = x_nchw.shape
    E = weight.shape[0]
    L = H * W

    # Free, contiguous reshapes only -- no transpose of x in the wrapper.
    x_bcl = x_nchw.reshape(B, C, L)     # (B, C, L), channel-major as stored
    w_ce = weight.T                     # (C, E)  (KiB-scale, one-time)
    b_1e = bias.reshape(1, E)

    itemsize = jnp.dtype(x_bcl.dtype).itemsize
    tl = _pick_token_tile(L, B, C, E, itemsize)
    n_tiles = L // tl
    grid = (B, n_tiles)
    total_steps = B * n_tiles

    # 3-deep pipeline on x when there are enough steps to benefit from it.
    x_spec_kwargs = {}
    x_bufs = 2
    if total_steps >= 3:
        x_spec_kwargs["pipeline_mode"] = pl.Buffered(3)
        x_bufs = 3

    cost = pl.CostEstimate(
        flops=2 * B * L * C * E,
        transcendentals=0,
        bytes_accessed=int(
            B * L * C * itemsize                              # x read
            + B * L * E * itemsize                            # out write
            + C * E * jnp.dtype(w_ce.dtype).itemsize          # weight (once)
            + E * jnp.dtype(b_1e.dtype).itemsize              # bias (once)
        ),
    )

    out = pl.pallas_call(
        _expert_kernel,
        out_shape=jax.ShapeDtypeStruct((B, L, E), x_bcl.dtype),
        grid_spec=pltpu.PrefetchScalarGridSpec(
            num_scalar_prefetch=0,
            grid=grid,
            in_specs=[
                pl.BlockSpec((1, C, tl), lambda b, t: (b, 0, t),
                             **x_spec_kwargs),
                pl.BlockSpec((C, E), lambda b, t: (0, 0)),
                pl.BlockSpec((1, E), lambda b, t: (0, 0)),
            ],
            out_specs=pl.BlockSpec((1, tl, E), lambda b, t: (b, t, 0)),
        ),
        compiler_params=pltpu.CompilerParams(
            dimension_semantics=("parallel", "parallel"),
            vmem_limit_bytes=_vmem_limit_bytes(C, E, tl, itemsize, x_bufs),
        ),
        cost_estimate=cost,
    )(x_bcl, w_ce, b_1e)
    return out  # (B, L, E)


if __name__ == "__main__":
    key = jax.random.PRNGKey(0)
    k_x1, k_x2, k_w, k_b = jax.random.split(key, 4)

    # Module-consistent sizes: input_dim=C=32, embed_dim=E=64.
    C, E = 32, 64
    weight = jax.random.normal(k_w, (E, C), dtype=jnp.float32) * 0.02
    bias = jax.random.normal(k_b, (E,), dtype=jnp.float32) * 0.02

    def run_and_check(B, H, W, kx):
        x = jax.random.normal(kx, (B, C, H, W), dtype=jnp.float32)
        y = jax.block_until_ready(expert_forward(x, weight, bias))
        assert y.shape == (B, H * W, E)
        # Reference in plain JAX (allowed to transpose), full precision.
        x_blc = jnp.transpose(x.reshape(B, C, H * W), (0, 2, 1))
        y_ref = jnp.einsum("blc,ce->ble", x_blc, weight.T,
                           precision=jax.lax.Precision.HIGHEST) + bias
        err = float(jnp.max(jnp.abs(y - y_ref)))
        assert jnp.allclose(y, y_ref, atol=5e-3, rtol=1e-2), err

    # Small config: B=2, H=W=32 -> L=1024, one big token tile per batch
    # element, grid (2, 1) (even total steps for dual-TC chips).
    run_and_check(2, 32, 32, k_x1)

    # Larger spatial extent: B=2, H=W=128 -> L=16384, TL=8192, grid (2, 2),
    # exercising both grid axes and the 3-deep x pipeline.
    run_and_check(2, 128, 128, k_x2)

    print("KERNEL_OK")
</pallas_src>

<mosaic_0001>
module attributes {stable_mosaic.version = 11 : i64} {
  func.func @_expert_kernel(%arg0: i32, %arg1: i32, %arg2: memref<1x32x1024xf32, #tpu.memory_space<vmem>>, %arg3: memref<32x64xf32, #tpu.memory_space<vmem>>, %arg4: memref<1x64xf32, #tpu.memory_space<vmem>>, %arg5: memref<1x1024x64xf32, #tpu.memory_space<vmem>>) attributes {dimension_semantics = [#tpu.dimension_semantics<parallel>, #tpu.dimension_semantics<parallel>], iteration_bounds = array<i64: 2, 1>, scalar_prefetch = 0 : i64, scratch_operands = 0 : i64, tpu.core_type = #tpu.core_type<tc>, window_params = [{transform_indices = @transform_0, window_bounds = array<i64: 1, 32, 1024>}, {pipeline_mode = #tpu.pipeline_mode<synchronous>, transform_indices = @transform_1, window_bounds = array<i64: 32, 64>}, {pipeline_mode = #tpu.pipeline_mode<synchronous>, transform_indices = @transform_2, window_bounds = array<i64: 1, 64>}, {transform_indices = @transform_3, window_bounds = array<i64: 1, 1024, 64>}]} {
    %c0 = arith.constant 0 : index
    %c0_0 = arith.constant 0 : index
    %c0_1 = arith.constant 0 : index
    %0 = vector.load %arg2[%c0, %c0_0, %c0_1] : memref<1x32x1024xf32, #tpu.memory_space<vmem>>, vector<1x32x1024xf32>
    %1 = vector.shape_cast %0 : vector<1x32x1024xf32> to vector<32x1024xf32>
    %c0_2 = arith.constant 0 : index
    %c0_3 = arith.constant 0 : index
    %2 = vector.load %arg3[%c0_2, %c0_3] : memref<32x64xf32, #tpu.memory_space<vmem>>, vector<32x64xf32>
    %c0_4 = arith.constant 0 : index
    %c0_5 = arith.constant 0 : index
    %3 = vector.load %arg4[%c0_4, %c0_5] : memref<1x64xf32, #tpu.memory_space<vmem>>, vector<1x64xf32>
    %cst = arith.constant dense<0.000000e+00> : vector<1024x64xf32>
    %4 = tpu.matmul %1, %2, %cst {dimension_numbers = #tpu.dot_dimension_numbers<[0], [0], [1], [1], [0, 1, 1, 1], [], []>, precision = #tpu.contract_precision<fp32>} : vector<32x1024xf32>, vector<32x64xf32>, vector<1024x64xf32> -> vector<1024x64xf32>
    %5 = vector.broadcast %3 : vector<1x64xf32> to vector<1024x64xf32>
    %6 = arith.addf %4, %5 : vector<1024x64xf32>
    %c0_6 = arith.constant 0 : index
    %c0_7 = arith.constant 0 : index
    %c0_8 = arith.constant 0 : index
    %7 = vector.load %arg5[%c0_6, %c0_7, %c0_8] : memref<1x1024x64xf32, #tpu.memory_space<vmem>>, vector<1x1024x64xf32>
    %8 = vector.shape_cast %7 : vector<1x1024x64xf32> to vector<1024x64xf32>
    %9 = vector.shape_cast %6 : vector<1024x64xf32> to vector<1x1024x64xf32>
    tpu.vector_store %arg5[%c0_6, %c0_7, %c0_8], %9 {strides = array<i32>} : memref<1x1024x64xf32, #tpu.memory_space<vmem>>, vector<1x1024x64xf32>,
    return
  }
  func.func @transform_0(%arg0: i32, %arg1: i32) -> (i32, i32, i32) {
    %c0_i32 = arith.constant 0 : i32
    %c0_i32_0 = arith.constant 0 : i32
    return %arg0, %c0_i32, %arg1 : i32, i32, i32
  }
  func.func @transform_1(%arg0: i32, %arg1: i32) -> (i32, i32) {
    %c0_i32 = arith.constant 0 : i32
    %c0_i32_0 = arith.constant 0 : i32
    %c0_i32_1 = arith.constant 0 : i32
    return %c0_i32, %c0_i32_0 : i32, i32
  }
  func.func @transform_2(%arg0: i32, %arg1: i32) -> (i32, i32) {
    %c0_i32 = arith.constant 0 : i32
    %c0_i32_0 = arith.constant 0 : i32
    %c0_i32_1 = arith.constant 0 : i32
    return %c0_i32, %c0_i32_0 : i32, i32
  }
  func.func @transform_3(%arg0: i32, %arg1: i32) -> (i32, i32, i32) {
    %c0_i32 = arith.constant 0 : i32
    %c0_i32_0 = arith.constant 0 : i32
    return %arg0, %arg1, %c0_i32 : i32, i32, i32
  }
}

</mosaic_0001>

<bundles_post_ra>
// kernel: tpu_custom_call.1
= control target key start
LH: loop header
LB: loop body
LE: loop exit
PB: predicated region body
PF: predicated region fallthrough
CT: control target
= control target key end

     0   :  { %8 = vsyncpa [#allocation3], 0  ;;  %s12540_s0 = inlined_call_operand.hbm [shape: f32[2,32,1024], index: 0, kind: input, shape index: {}]   ;;  %s12541_s1 = inlined_call_operand.hbm [shape: f32[32,64], index: 1, kind: input, shape index: {}]   ;;  %s12542_s2 = inlined_call_operand.vmem [shape: f32[1,64], index: 2, kind: input, shape index: {}]   ;;  %s12543_s3 = inlined_call_operand.vmem [shape: f32[2,1024,64], index: 3, kind: output, shape index: {}]  }
   0x1   :  { %10 = vsyncpa [#allocation3 + $0x1], 0 }
   0x2   :  { %11 = vsyncpa [#allocation5], 0  ;;  %s10136_s12 = smov 0   ;;  %s10138_s13 = smov 0  }
   0x3   :  { %s10140_s14 = smov 0   ;;  %s10142_s15 = smov 0  }
   0x4   :  { %s10144_s16 = smov 0   ;;  %s10146_s17 = smov 0  }
   0x5 LB: > { %s7098_s18 = sadd.s32 4294967295, %s10108_s17   ;;  %p51_p0 = scmp.ne.s32.totalorder %s10092_s13, %s10088_s12  ;;  %s10108_s17 = sphi %s10146_s17, %s17_s17   ;;  %s10104_s16 = sphi %s10144_s16, %s13456_s16   ;;  %s10100_s15 = sphi %s10142_s15, %s13455_s15   ;;  %s10096_s14 = sphi %s10140_s14, %s13454_s14   ;;  %s10092_s13 = sphi %s10138_s13, %s13453_s13   ;;  %s10088_s12 = sphi %s10136_s12, %s13452_s12  }
   0x6   : > { %p10166_p1 = scmp.eq.s32.totalorder %s7098_s18, 0  ;;  %p7100_p2 = scmp.ge.s32.totalorder %s10108_s17, 1 }
   0x7   : > { %p132_p3 = scmp.lt.s32.totalorder %s10108_s17, 3  ;;  %s10110_s22 = smov [#allocation4]  }
   0x8   : > { %s12928_s19 = scalar_select %p10166_p1, 1, 0 }
   0x9   : > { %p10174_p4 = por %p10166_p1, %p51_p0  ;;  %p10178_p5 = pnand %p7100_p2, %p132_p3 }
   0xa   : > { %s144_s23 = sshll.u32 %s10110_s22, 4  ;;  %s29_s25 = sadd.s32 1, %s10104_s16  ;;  %s145_s23 = int_to_ptr.vmem [resolvable:$true] %s144_s23 }
   0xb   : > { %s12929_s20 = scalar_select %p10174_p4, 1, 0 }
   0xc   : > { %s12930_s21 = scalar_select %p10178_p5, 1, 0 }
   0xd   : > { %p9930_p6 = pneg %p10178_p5  ;;  %s9996_s28 = scalar_lea.hbm %s12541_s1, 512 }
   0xe   : > { %p9997_p8 = scmp.ne.s32.totalorder %s12541_s1, %s9996_s28  ;;  %p10003_p12 = scmp.lt.u32.totalorder %s9996_s28, %s12541_s1 }
   0xf   : > { %p10186_p7 = pnand %p9930_p6, %p10166_p1 }
  0x11   : > { %p9998_p9 = pneg %p10186_p7 }
  0x13   : > { %p9999_p10 = pnand %p9998_p9, %p9997_p8 }
  0x15   : > { %p10000_p11 = pneg %p9999_p10 }
  0x17   : > { %p10005_p13 = pnand %p10003_p12, %p10000_p11 }
  0x19   : > { %10008 = shalt.err (!%p10005_p13)
}
  0x1a   : > { %s10009_s6 = scalar_lea.vmem %s145_s23, 512  ;;  %p10017_p6 = scmp.lt.s32.totalorder %s145_s23, %s145_s23 }
  0x1b   : > { %p10010_p0 = scmp.ne.s32.totalorder %s145_s23, %s10009_s6  ;;  %p10018_p1 = scmp.lt.s32.totalorder %s10009_s6, %s10009_s6 }
  0x1d   : > { %p10012_p2 = pnand %p10010_p0, %p9998_p9  ;;  %p10019_p4 = por %p10018_p1, %p10017_p6 }
  0x1f   : > { %p10013_p3 = pneg %p10012_p2 }
  0x21   : > { %p10020_p5 = pnand %p10019_p4, %p10013_p3 }
  0x23   : > { %10023 = shalt.err (!%p10020_p5)
}
  0x24   : > { %s10111_s7 = smov 128   ;;  %s10112_s8 = smov 8  }
  0x25   : > { %9933 = dma.hbm_to_vmem [thread:$0]  (!%p10186_p7), %s12541_s1, 512, %s145_s23, [#allocation5], %s10111_s7, %s10111_s7, %s10112_s8  }
  0x26   : > { %p31_p1 = scmp.ge.s32.totalorder %s29_s25, 2  ;;  %s38_s11 = sadd.s32 1, %s10096_s14 }
  0x27   : > { %p45_p4 = scmp.ne.s32.totalorder %s10096_s14, %s10092_s13  ;;  %p46_p5 = scmp.eq.s32.totalorder %s10108_s17, 0 }
  0x28   : > { %s13458_s25 = smov (%p31_p1, %s29_s25), 0  ;;  %p9939_p9 = scmp.lt.s32.totalorder %s10108_s17, 2 }
  0x29   : > { %p47_p8 = por %p46_p5, %p45_p4  ;;  %s33_s12 = ssub.s32 %s10104_s16, %s13458_s25 }
  0x2a   : > { %s161_s18 = sand.u32 1, %s10096_s14   ;;  %p36_p10 = scmp.eq.s32.totalorder %s33_s12, 0 }
  0x2b   : > { %s7103_s22 = sshll.u32 %s161_s18, 8  ;;  %s7114_s26 = sshll.u32 %s10104_s16, 12 }
  0x2c   : > { %s10219_s27 = scalar_select %p36_p10, %s10096_s14, %s38_s11  }
  0x2d   : > { %s10224_s23 = scalar_lea.hbm %s12540_s0, %s7114_s26  ;;  %s165_s29 = scalar_lea.vmem [#allocation2], %s7103_s22 }
  0x2e   : > { %s174_s30 = sshll.u32 %s165_s29, 4  ;;  %p10226_p7 = pnand %p9939_p9, %p47_p8  ;;  %s10230_s30 = int_to_ptr.vmem [resolvable:$true] %s174_s30 }
  0x2f   : > { %s10232_s5 = scalar_lea.sflag [#allocation3], %s161_s18  ;;  %s10024_s6 = scalar_lea.hbm %s10224_s23, 4096 }
  0x30   : > { %p10025_p11 = scmp.ne.s32.totalorder %s10224_s23, %s10024_s6  ;;  %p10026_p12 = pneg %p10226_p7 }
  0x31   : > { %s10029_s9 = scalar_lea.hbm %s12540_s0, 8192  ;;  %p10030_p2 = scmp.lt.u32.totalorder %s10224_s23, %s12540_s0 }
  0x32   : > { %p10027_p13 = pnand %p10026_p12, %p10025_p11  ;;  %p10031_p3 = scmp.lt.u32.totalorder %s10029_s9, %s10024_s6 }
  0x33   : > { %p10033_p1 = scmp.lt.u32.totalorder %s10024_s6, %s10224_s23 }
  0x34   : > { %p10028_p0 = pneg %p10027_p13  ;;  %p10032_p6 = por %p10031_p3, %p10030_p2 }
  0x36   : > { %p10034_p4 = por %p10033_p1, %p10032_p6 }
  0x38   : > { %p10035_p5 = pnand %p10034_p4, %p10028_p0 }
  0x3a   : > { %10038 = shalt.err (!%p10035_p5)
}
  0x3b   : > { %s10039_s12 = scalar_lea.vmem %s10230_s30, 4096  ;;  %s10113_s18 = smov [#allocation2]  }
  0x3c   : > { %p10040_p8 = scmp.ne.s32.totalorder %s10230_s30, %s10039_s12  ;;  %s10044_s22 = sshll.u32 %s10113_s18, 4  ;;  %s10045_s22 = int_to_ptr.vmem [resolvable:$false] %s10044_s22 }
  0x3d   : > { %s10046_s26 = scalar_lea.vmem %s10045_s22, 8192  ;;  %p10047_p11 = scmp.lt.s32.totalorder %s10230_s30, %s10045_s22 }
  0x3e   : > { %p10042_p9 = pnand %p10040_p8, %p10026_p12  ;;  %p10048_p13 = scmp.lt.s32.totalorder %s10046_s26, %s10039_s12 }
  0x40   : > { %p10043_p10 = pneg %p10042_p9  ;;  %p10049_p2 = por %p10048_p13, %p10047_p11 }
  0x42   : > { %p10050_p3 = pnand %p10049_p2, %p10043_p10 }
  0x44   : > { %10053 = shalt.err (!%p10050_p3)
}
  0x45   : > { %s10114_s24 = smov 1024   ;;  %s10115_s28 = smov 64  }
  0x46   : > { %9937 = dma.hbm_to_vmem [thread:$0]  (!%p10226_p7), %s10224_s23, 4096, %s10230_s30, %s10232_s5, %s10114_s24, %s10114_s24, %s10115_s28  }
  0x47   : > { %p12933_p12 = scmp.ne.s32.totalorder %s12930_s21, 0 }
  0x49   : > { %186 = sbr.rel (%p12933_p12) target bundleno = 1242 (0x4da), region = 32 }
  0x50   : > { %s188_s29 = sand.u32 1, %s10092_s13   ;;  %p12934_p0 = scmp.ne.s32.totalorder %s12929_s20, 0 }
  0x51   : > { %s7107_s6 = sshll.u32 %s188_s29, 8  ;;  %s189_s7 = scalar_lea.sflag [#allocation3], %s188_s29 }
  0x52   : > { %s10263_s8 = scalar_lea.vmem [#allocation2], %s7107_s6 }
  0x53   : > { %10079 = dma.done.wait (%p12934_p0), %s189_s7, 4096  }
  0x54   : > { %10081 = vsyncadd (%p12934_p0), %s189_s7, 4294963200  ;;  %p12935_p6 = scmp.ne.s32.totalorder %s12928_s19, 0 }
  0x56   : > { %10083 = dma.done.wait (%p12935_p6), [#allocation5], 512  }
  0x57   : > { %10085 = vsyncadd (%p12935_p6), [#allocation5], 4294966784  ;;  %v234_v0 = vld [vmem:[%s10263_s8] sm:$0xff]  ;;  %v235_v1 = vld [vmem:[%s10263_s8 + $0x8] sm:$0xff]  ;;  %vm533_vm0 = vcmask 261120   ;;  %p225_p7 = scmp.lt.s32.totalorder %s10100_s15, 1 }
  0x58   : > { %277 = vxpose.xlu0.b32.start [1/4] (short) %v234_v0, 128  ;;  %v242_v2 = vld [vmem:[%s10263_s8 + $0x40] sm:$0xff]  ;;  %309 = vxpose.xlu1.b32.start [1/4] (short) %v235_v1, 128  ;;  %v243_v3 = vld [vmem:[%s10263_s8 + $0x48] sm:$0xff]  ;;  %v10278_v8 = vld [vmem:[#allocation4 + $0x10] sm:$0xff]  ;;  %vm6864_vm1 = vcmask 523264  }
  0x59   : > { %v266_v4 = vld [vmem:[#allocation4] sm:$0xff]  ;;  %v267_v6 = vld [vmem:[#allocation4 + $0x8] sm:$0xff]  ;;  %v10281_v11 = vld [vmem:[#allocation4 + $0x18] sm:$0xff]  ;;  %v925_v12 = vand.u32 4294901760, %v10278_v8  ;;  %s13460_s15 = smov (!%p225_p7, %s10100_s15), 1 }
  0x5a   : > { %v250_v5 = vld [vmem:[%s10263_s8 + $0x80] sm:$0xff]  ;;  %v919_v7 = vand.u32 4294901760, %v266_v4  ;;  %v251_v9 = vld [vmem:[%s10263_s8 + $0x88] sm:$0xff]  ;;  %v922_v10 = vand.u32 4294901760, %v267_v6  ;;  %v928_v13 = vand.u32 4294901760, %v10281_v11  ;;  %v236_v28 = vld [vmem:[%s10263_s8 + $0x10] sm:$0xff] }
  0x5b   : > { %v258_v15 = vld [vmem:[%s10263_s8 + $0xc0] sm:$0xff]  ;;  %v259_v17 = vld [vmem:[%s10263_s8 + $0xc8] sm:$0xff]  ;;  %v237_v29 = vld [vmem:[%s10263_s8 + $0x18] sm:$0xff]  ;;  %s7115_s21 = sshll.u32 %s13460_s15, 10 }
  0x5c   : > { %278 = vxpose.xlu0.b32.cont [2/4] (short) %v242_v2, 128  ;;  %310 = vxpose.xlu1.b32.cont [2/4] (short) %v243_v3, 128  ;;  %v10285_v14 = vpack.c.bf16 %v922_v10, %v919_v7  ;;  %v10292_v16 = vpack.c.bf16 %v928_v13, %v925_v12  ;;  %v10303_v18 = vsub.f32 %v266_v4, %v919_v7  ;;  %v244_v30 = vld [vmem:[%s10263_s8 + $0x50] sm:$0xff]  ;;  %v245_v31 = vld [vmem:[%s10263_s8 + $0x58] sm:$0xff]  ;;  %v238_v36 = vld [vmem:[%s10263_s8 + $0x20] sm:$0xff]  ;;  %s12094_s4 = scalar_lea.vmem %s12543_s3, %s7115_s21 }
  0x5d   : > { %v10305_v19 = vsub.f32 %v267_v6, %v922_v10  ;;  %v252_v32 = vld [vmem:[%s10263_s8 + $0x90] sm:$0xff]  ;;  %v253_v33 = vld [vmem:[%s10263_s8 + $0x98] sm:$0xff]  ;;  %v239_v37 = vld [vmem:[%s10263_s8 + $0x28] sm:$0xff] }
  0x5e   : > { %9133 = vmatprep.subr.bf16.mxu0 %v10285_v14  ;;  %9109 = vmatprep.subr.bf16.mxu1 %v10285_v14  ;;  %v2270_v20 = vand.u32 4294901760, %v10303_v18  ;;  %v260_v34 = vld [vmem:[%s10263_s8 + $0xd0] sm:$0xff]  ;;  %v261_v35 = vld [vmem:[%s10263_s8 + $0xd8] sm:$0xff]  ;;  %v246_v38 = vld [vmem:[%s10263_s8 + $0x60] sm:$0xff] }
  0x5f   : > { %9135 = vmatpush3.bf16.msra.mxu0 %v10285_v14  ;;  %9111 = vmatpush3.bf16.msra.mxu1 %v10285_v14  ;;  %v2277_v21 = vand.u32 4294901760, %v10305_v19  ;;  %v247_v39 = vld [vmem:[%s10263_s8 + $0x68] sm:$0xff]  ;;  %v254_v40 = vld [vmem:[%s10263_s8 + $0xa0] sm:$0xff] }
  0x60   : > { %279 = vxpose.xlu0.b32.cont [3/4] (short) %v250_v5, 128  ;;  %311 = vxpose.xlu1.b32.cont [3/4] (short) %v251_v9, 128  ;;  %v2271_v22 = vsub.f32 %v10303_v18, %v2270_v20  ;;  %v255_v42 = vld [vmem:[%s10263_s8 + $0xa8] sm:$0xff]  ;;  %v262_v46 = vld [vmem:[%s10263_s8 + $0xe0] sm:$0xff] }
  0x61   : > { %9137 = vmatprep.subr.bf16.mxu0 %v10292_v16  ;;  %9113 = vmatprep.subr.bf16.mxu1 %v10292_v16  ;;  %v2278_v23 = vsub.f32 %v10305_v19, %v2277_v21  ;;  %v10311_v24 = vpack.c.bf16 %v2277_v21, %v2270_v20  ;;  %v263_v49 = vld [vmem:[%s10263_s8 + $0xe8] sm:$0xff] }
  0x62   : > { %v2272_v25 = vand.u32 4294901760, %v2271_v22 }
  0x63   : > { %9139 = vmatpush3.bf16.msra.mxu0 %v10292_v16  ;;  %9115 = vmatpush3.bf16.msra.mxu1 %v10292_v16  ;;  %v2279_v26 = vand.u32 4294901760, %v2278_v23 }
  0x64   : > { %280 = vxpose.xlu0.b32.end [4/4] (short) %v258_v15, 128  ;;  %312 = vxpose.xlu1.b32.end [4/4] (short) %v259_v17, 128 }
  0x65   : > { %9141 = vmatprep.subr.bf16.mxu0 %v10311_v24  ;;  %v10314_v27 = vpack.c.bf16 %v2279_v26, %v2272_v25 }
  0x67   : > { %9117 = vmatprep.subr.bf16.mxu1 %v10314_v27 }
  0x95   : > { %341 = vxpose.xlu0.b32.start [1/4] (short) %v236_v28, 128  ;;  %373 = vxpose.xlu1.b32.start [1/4] (short) %v237_v29, 128 }
  0x99   : > { %342 = vxpose.xlu0.b32.cont [2/4] (short) %v244_v30, 128  ;;  %374 = vxpose.xlu1.b32.cont [2/4] (short) %v245_v31, 128 }
  0x9d   : > { %343 = vxpose.xlu0.b32.cont [3/4] (short) %v252_v32, 128  ;;  %375 = vxpose.xlu1.b32.cont [3/4] (short) %v253_v33, 128 }
  0xa1   : > { %344 = vxpose.xlu0.b32.end [4/4] (short) %v260_v34, 128  ;;  %376 = vxpose.xlu1.b32.end [4/4] (short) %v261_v35, 128 }
  0xd2   : > { %405 = vxpose.xlu0.b32.start [1/4] (short) %v238_v36, 128  ;;  %437 = vxpose.xlu1.b32.start [1/4] (short) %v239_v37, 128 }
  0xd6   : > { %406 = vxpose.xlu0.b32.cont [2/4] (short) %v246_v38, 128  ;;  %438 = vxpose.xlu1.b32.cont [2/4] (short) %v247_v39, 128 }
  0xd8   : > { %v293_v41 = vpop.trf.xlu0  ;;  %v10332_v44 = vpop.trf.xlu1 }
  0xd9   : > { %v535_v43 = vsel %vm533_vm0, %v293_v41, 0 }
  0xda   : > { %v10334_v45 = vand.u32 4294901760, %v535_v43  ;;  %407 = vxpose.xlu0.b32.cont [3/4] (short) %v254_v40, 128  ;;  %439 = vxpose.xlu1.b32.cont [3/4] (short) %v255_v42, 128 }
  0xdc   : > { %v10338_v47 = vsub.f32 %v535_v43, %v10334_v45  ;;  %v294_v48 = vpop.trf.xlu0  ;;  %v10342_v51 = vpop.trf.xlu1 }
  0xdd   : > { %v538_v50 = vsel %vm533_vm0, %v294_v48, 0 }
  0xde   : > { %12936 = vst [vmem:[#allocation8_spill] sm:$0xff] %v10338_v47  ;;  %v10344_v52 = vand.u32 4294901760, %v538_v50  ;;  %v989_v53 = vand.u32 4294901760, %v10338_v47  ;;  %408 = vxpose.xlu0.b32.end [4/4] (short) %v262_v46, 128  ;;  %440 = vxpose.xlu1.b32.end [4/4] (short) %v263_v49, 128 }
  0xe0   : > { %v10348_v54 = vsub.f32 %v538_v50, %v10344_v52  ;;  %8516 = vmatprep.mubr.f32.mxu0 %v989_v53  ;;  %v295_v55 = vpop.trf.xlu0  ;;  %v990_v56 = vsub.f32 %v10338_v47, %v989_v53  ;;  %v10352_v58 = vpop.trf.xlu1 }
  0xe1   : > { %v541_v57 = vsel %vm533_vm0, %v295_v55, 0 }
  0xe2   : > { %12937 = vst [vmem:[#allocation9_spill] sm:$0xff] %v10348_v54  ;;  %v10354_v59 = vand.u32 4294901760, %v541_v57  ;;  %v991_v60 = vand.u32 4294901760, %v990_v56  ;;  %v999_v61 = vand.u32 4294901760, %v10348_v54 }
  0xe4   : > { %v10358_v62 = vsub.f32 %v541_v57, %v10354_v59  ;;  %7916 = vmatprep.mubr.f32.mxu1 %v991_v60  ;;  %8517 = vmatmul.mubr.f32.vlgmr.msra.gmra.mrb[0].mxu0 %v999_v61  ;;  %v296_v63 = vpop.trf.xlu0  ;;  %v1000_v0 = vsub.f32 %v10348_v54, %v999_v61  ;;  %v10362_v2 = vpop.trf.xlu1 }
  0xe5   : > { %v544_v1 = vsel %vm533_vm0, %v296_v63, 0  ;;  %9143 = vmatpush3.bf16.msra.mxu0 %v10311_v24 }
  0xe6   : > { %12938 = vst [vmem:[#allocation10_spill] sm:$0xff] %v10358_v62  ;;  %v10365_v3 = vand.u32 4294901760, %v544_v1  ;;  %v1001_v4 = vand.u32 4294901760, %v1000_v0  ;;  %v1009_v5 = vand.u32 4294901760, %v10358_v62 }
  0xe8   : > { %v10369_v6 = vsub.f32 %v544_v1, %v10365_v3  ;;  %7917 = vmatmul.mubr.f32.vlgmr.msra.gmra.mrb[0].mxu1 %v1001_v4  ;;  %8519 = vmatprep.mubr.f32.mxu0 %v1009_v5  ;;  %v297_v7 = vpop.trf.xlu0  ;;  %v1010_v9 = vsub.f32 %v10358_v62, %v1009_v5  ;;  %v10373_v15 = vpop.trf.xlu1 }
  0xe9   : > { %v547_v10 = vsel %vm533_vm0, %v297_v7, 0  ;;  %9119 = vmatpush3.bf16.msra.mxu1 %v10314_v27 }
  0xea   : > { %12939 = vst [vmem:[#allocation11_spill] sm:$0xff] %v10369_v6  ;;  %v10376_v17 = vand.u32 4294901760, %v547_v10  ;;  %v1011_v20 = vand.u32 4294901760, %v1010_v9  ;;  %v1019_v21 = vand.u32 4294901760, %v10369_v6 }
  0xec   : > { %v10380_v22 = vsub.f32 %v547_v10, %v10376_v17  ;;  %7919 = vmatprep.mubr.f32.mxu1 %v1011_v20  ;;  %8520 = vmatmul.mubr.f32.gmra.mrb[2].mxu0 %v1019_v21  ;;  %v298_v23 = vpop.trf.xlu0  ;;  %v1020_v24 = vsub.f32 %v10369_v6, %v1019_v21  ;;  %v10384_v26 = vpop.trf.xlu1 }
  0xed   : > { %v550_v25 = vsel %vm533_vm0, %v298_v23, 0 }
  0xee   : > { %12940 = vst [vmem:[#allocation12_spill] sm:$0xff] %v10380_v22  ;;  %v10386_v28 = vand.u32 4294901760, %v550_v25  ;;  %v1021_v27 = vand.u32 4294901760, %v1020_v24  ;;  %v1029_v29 = vand.u32 4294901760, %v10380_v22 }
  0xf0   : > { %v10390_v30 = vsub.f32 %v550_v25, %v10386_v28  ;;  %7920 = vmatmul.mubr.f32.gmra.mrb[2].mxu1 %v1021_v27  ;;  %8522 = vmatprep.mubr.f32.mxu0 %v1029_v29  ;;  %v299_v31 = vpop.trf.xlu0  ;;  %v1030_v32 = vsub.f32 %v10380_v22, %v1029_v29  ;;  %v10394_v34 = vpop.trf.xlu1 }
  0xf1   : > { %v553_v33 = vsel %vm533_vm0, %v299_v31, 0 }
  0xf2   : > { %12941 = vst [vmem:[#allocation13_spill] sm:$0xff] %v10390_v30  ;;  %v10396_v35 = vand.u32 4294901760, %v553_v33  ;;  %v1031_v36 = vand.u32 4294901760, %v1030_v32  ;;  %v1039_v37 = vand.u32 4294901760, %v10390_v30 }
  0xf4   : > { %v10400_v38 = vsub.f32 %v553_v33, %v10396_v35  ;;  %7922 = vmatprep.mubr.f32.mxu1 %v1031_v36  ;;  %8523 = vmatmul.mubr.f32.gmra.mrb[4].mxu0 %v1039_v37  ;;  %v300_v39 = vpop.trf.xlu0  ;;  %v1040_v40 = vsub.f32 %v10390_v30, %v1039_v37  ;;  %v10404_v42 = vpop.trf.xlu1  ;;  %v10446_v37 = vsub.f32 %v10278_v8, %v925_v12 }
  0xf5   : > { %v556_v41 = vsel %vm533_vm0, %v300_v39, 0 }
  0xf6   : > { %12942 = vst [vmem:[#allocation14_spill] sm:$0xff] %v10400_v38  ;;  %v10406_v43 = vand.u32 4294901760, %v556_v41  ;;  %v1041_v46 = vand.u32 4294901760, %v1040_v40  ;;  %v1049_v48 = vand.u32 4294901760, %v10400_v38 }
  0xf8   : > { %v10410_v49 = vsub.f32 %v556_v41, %v10406_v43  ;;  %7923 = vmatmul.mubr.f32.gmra.mrb[4].mxu1 %v1041_v46  ;;  %8525 = vmatprep.mubr.f32.mxu0 %v1049_v48  ;;  %v301_v50 = vpop.trf.xlu0  ;;  %v1050_v53 = vsub.f32 %v10400_v38, %v1049_v48  ;;  %v10414_v56 = vpop.trf.xlu1  ;;  %v10454_v41 = vsub.f32 %v10281_v11, %v928_v13 }
  0xf9   : > { %v559_v55 = vsel %vm533_vm0, %v301_v50, 0 }
  0xfa   : > { %12943 = vst [vmem:[#allocation15_spill] sm:$0xff] %v10410_v49  ;;  %v10416_v57 = vand.u32 4294901760, %v559_v55  ;;  %v1051_v60 = vand.u32 4294901760, %v1050_v53  ;;  %v1059_v61 = vand.u32 4294901760, %v10410_v49  ;;  %v2284_v53 = vand.u32 4294901760, %v10446_v37 }
  0xfc   : > { %v10420_v63 = vsub.f32 %v559_v55, %v10416_v57  ;;  %7925 = vmatprep.mubr.f32.mxu1 %v1051_v60  ;;  %8526 = vmatmul.mubr.f32.gmra.mrb[6].mxu0 %v1059_v61  ;;  %v302_v0 = vpop.trf.xlu0  ;;  %v1060_v1 = vsub.f32 %v10410_v49, %v1059_v61  ;;  %v10424_v5 = vpop.trf.xlu1  ;;  %v2291_v60 = vand.u32 4294901760, %v10454_v41  ;;  %v2285_v61 = vsub.f32 %v10446_v37, %v2284_v53 }
  0xfd   : > { %v562_v4 = vsel %vm533_vm0, %v302_v0, 0 }
  0xfe   : > { %12944 = vst [vmem:[#allocation16_spill] sm:$0xff] %v10420_v63  ;;  %v10426_v7 = vand.u32 4294901760, %v562_v4  ;;  %v1061_v9 = vand.u32 4294901760, %v1060_v1  ;;  %v1069_v10 = vand.u32 4294901760, %v10420_v63 }
 0x100   : > { %v10430_v20 = vsub.f32 %v562_v4, %v10426_v7  ;;  %7926 = vmatmul.mubr.f32.gmra.mrb[6].mxu1 %v1061_v9  ;;  %8528 = vmatprep.mubr.f32.mxu0 %v1069_v10  ;;  %v303_v21 = vpop.trf.xlu0  ;;  %v1070_v23 = vsub.f32 %v10420_v63, %v1069_v10  ;;  %v10434_v25 = vpop.trf.xlu1  ;;  %v583_v9 = vsel %vm533_vm0, %v10332_v44, 0  ;;  %v586_v44 = vsel %vm533_vm0, %v10342_v51, 0 }
 0x101   : > { %v565_v24 = vsel %vm533_vm0, %v303_v21, 0 }
 0x102   : > { %12945 = vst [vmem:[#allocation17_spill] sm:$0xff] %v10430_v20  ;;  %v10436_v27 = vand.u32 4294901760, %v565_v24  ;;  %v1071_v29 = vand.u32 4294901760, %v1070_v23  ;;  %v1079_v31 = vand.u32 4294901760, %v10430_v20 }
 0x104   : > { %v10440_v32 = vsub.f32 %v565_v24, %v10436_v27  ;;  %7928 = vmatprep.mubr.f32.mxu1 %v1071_v29  ;;  %8529 = vmatmul.mubr.f32.gmra.mrb[8].mxu0 %v1079_v31  ;;  %v304_v33 = vpop.trf.xlu0  ;;  %v1080_v36 = vsub.f32 %v10430_v20, %v1079_v31  ;;  %v10449_v40 = vpop.trf.xlu1  ;;  %v2292_v24 = vsub.f32 %v10454_v41, %v2291_v60  ;;  %v249_v20 = vld [vmem:[%s10263_s8 + $0x78] sm:$0xff] }
 0x105   : > { %v568_v39 = vsel %vm533_vm0, %v304_v33, 0  ;;  %v2286_v33 = vand.u32 4294901760, %v2285_v61  ;;  %v10497_v61 = vand.u32 4294901760, %v586_v44 }
 0x106   : > { %12946 = vst [vmem:[#allocation18_spill] sm:$0xff] %v10440_v32  ;;  %v10456_v46 = vand.u32 4294901760, %v568_v39  ;;  %v1081_v48 = vand.u32 4294901760, %v1080_v36  ;;  %v1089_v50 = vand.u32 4294901760, %v10440_v32  ;;  %v9144_v36 = vpack.c.bf16 %v2291_v60, %v2284_v53 }
 0x108   : > { %v10461_v55 = vsub.f32 %v568_v39, %v10456_v46  ;;  %7929 = vmatmul.mubr.f32.gmra.mrb[8].mxu1 %v1081_v48  ;;  %8531 = vmatprep.mubr.f32.mxu0 %v1089_v50  ;;  %v305_v8 = vpop.trf.xlu0  ;;  %v1090_v12 = vsub.f32 %v10440_v32, %v1089_v50  ;;  %v10466_v13 = vpop.trf.xlu1  ;;  %v248_v32 = vld [vmem:[%s10263_s8 + $0x70] sm:$0xff] }
 0x109   : > { %v571_v11 = vsel %vm533_vm0, %v305_v8, 0  ;;  %v240_v8 = vld [vmem:[%s10263_s8 + $0x30] sm:$0xff]  ;;  %9145 = vmatprep.subr.bf16.mxu0 %v9144_v36 }
 0x10a   : > { %12947 = vst [vmem:[#allocation19_spill] sm:$0xff] %v10461_v55  ;;  %v10469_v0 = vand.u32 4294901760, %v571_v11  ;;  %v1091_v1 = vand.u32 4294901760, %v1090_v12  ;;  %v1099_v4 = vand.u32 4294901760, %v10461_v55  ;;  %v241_v12 = vld [vmem:[%s10263_s8 + $0x38] sm:$0xff]  ;;  %9147 = vmatpush3.bf16.msra.mxu0 %v9144_v36 }
 0x10b   : > { %9149 = vmatprep.subr.bf16.mxu0 %v10285_v14 }
 0x10c   : > { %v10475_v10 = vsub.f32 %v571_v11, %v10469_v0  ;;  %7931 = vmatprep.mubr.f32.mxu1 %v1091_v1  ;;  %8532 = vmatmul.mubr.f32.gmra.mrb[10].mxu0 %v1099_v4  ;;  %v306_v21 = vpop.trf.xlu0  ;;  %v1100_v23 = vsub.f32 %v10461_v55, %v1099_v4  ;;  %v10480_v31 = vpop.trf.xlu1  ;;  %v10489_v11 = vand.u32 4294901760, %v583_v9  ;;  %v2293_v1 = vand.u32 4294901760, %v2292_v24 }
 0x10d   : > { %v574_v29 = vsel %vm533_vm0, %v306_v21, 0  ;;  %v589_v4 = vsel %vm533_vm0, %v10352_v58, 0  ;;  %v592_v58 = vsel %vm533_vm0, %v10362_v2, 0 }
 0x10e   : > { %12948 = vst [vmem:[#allocation20_spill] sm:$0xff] %v10475_v10  ;;  %v10484_v39 = vand.u32 4294901760, %v574_v29  ;;  %v1101_v48 = vand.u32 4294901760, %v1100_v23  ;;  %v1109_v50 = vand.u32 4294901760, %v10475_v10  ;;  %v9120_v24 = vpack.c.bf16 %v2293_v1, %v2286_v33 }
 0x10f   : > { %v595_v33 = vsel %vm533_vm0, %v10373_v15, 0  ;;  %v598_v15 = vsel %vm533_vm0, %v10384_v26, 0 }
 0x110   : > { %v10494_v53 = vsub.f32 %v574_v29, %v10484_v39  ;;  %7932 = vmatmul.mubr.f32.gmra.mrb[10].mxu1 %v1101_v48  ;;  %8534 = vmatprep.mubr.f32.mxu0 %v1109_v50  ;;  %v307_v51 = vpop.trf.xlu0  ;;  %v1110_v60 = vsub.f32 %v10475_v10, %v1109_v50  ;;  %v10500_v23 = vpop.trf.xlu1  ;;  %v10510_v50 = vsub.f32 %v583_v9, %v10489_v11  ;;  %v10539_v63 = vand.u32 4294901760, %v595_v33 }
 0x111   : > { %v577_v21 = vsel %vm533_vm0, %v307_v51, 0  ;;  %469 = vxpose.xlu0.b32.start [1/4] (short) %v240_v8, 128  ;;  %501 = vxpose.xlu1.b32.start [1/4] (short) %v241_v12, 128  ;;  %v10512_v51 = vand.u32 4294901760, %v589_v4  ;;  %v10522_v9 = vsub.f32 %v586_v44, %v10497_v61  ;;  %v10524_v12 = vand.u32 4294901760, %v592_v58 }
 0x112   : > { %12949 = vst [vmem:[#allocation21_spill] sm:$0xff] %v10494_v53  ;;  %v10504_v29 = vand.u32 4294901760, %v577_v21  ;;  %v1111_v55 = vand.u32 4294901760, %v1110_v60  ;;  %v1119_v48 = vand.u32 4294901760, %v10494_v53  ;;  %12950 = vst [vmem:[#allocation22_spill] sm:$0xff] %v10510_v50  ;;  %9121 = vmatprep.subr.bf16.mxu1 %v9120_v24 }
 0x113   : > { %12952 = vst [vmem:[#allocation24_spill] sm:$0xff] %v10522_v9  ;;  %9123 = vmatpush3.bf16.msra.mxu1 %v9120_v24  ;;  %v10537_v44 = vsub.f32 %v589_v4, %v10512_v51  ;;  %v10551_v4 = vsub.f32 %v592_v58, %v10524_v12  ;;  %v10565_v58 = vsub.f32 %v595_v33, %v10539_v63 }
 0x114   : > { %v10518_v2 = vsub.f32 %v577_v21, %v10504_v29  ;;  %7934 = vmatprep.mubr.f32.mxu1 %v1111_v55  ;;  %8535 = vmatmul.mubr.f32.gmra.mrb[12].mxu0 %v1119_v48  ;;  %v308_v8 = vpop.trf.xlu0  ;;  %v1120_v36 = vsub.f32 %v10494_v53, %v1119_v48  ;;  %v10527_v60 = vpop.trf.xlu1  ;;  %v256_v48 = vld [vmem:[%s10263_s8 + $0xb0] sm:$0xff]  ;;  %v257_v53 = vld [vmem:[%s10263_s8 + $0xb8] sm:$0xff] }
 0x115   : > { %v580_v1 = vsel %vm533_vm0, %v308_v8, 0  ;;  %470 = vxpose.xlu0.b32.cont [2/4] (short) %v248_v32, 128  ;;  %502 = vxpose.xlu1.b32.cont [2/4] (short) %v249_v20, 128  ;;  %12953 = vst [vmem:[#allocation25_spill] sm:$0xff] %v10537_v44  ;;  %v601_v32 = vsel %vm533_vm0, %v10394_v34, 0  ;;  %v1149_v20 = vand.u32 4294901760, %v10510_v50  ;;  %12955 = vst [vmem:[#allocation27_spill] sm:$0xff] %v10551_v4  ;;  %v1159_v34 = vand.u32 4294901760, %v10522_v9 }
 0x116   : > { %12951 = vst [vmem:[#allocation23_spill] sm:$0xff] %v10518_v2  ;;  %v10531_v21 = vand.u32 4294901760, %v580_v1  ;;  %v1121_v55 = vand.u32 4294901760, %v1120_v36  ;;  %v1129_v10 = vand.u32 4294901760, %v10518_v2  ;;  %v10553_v36 = vand.u32 4294901760, %v598_v15  ;;  %12958 = vst [vmem:[#allocation30_spill] sm:$0xff] %v10565_v58 }
 0x117   : > { %v1150_v30 = vsub.f32 %v10510_v50, %v1149_v20  ;;  %v1169_v22 = vand.u32 4294901760, %v10537_v44  ;;  %v1179_v33 = vand.u32 4294901760, %v10551_v4 }
 0x118   : > { %v10545_v26 = vsub.f32 %v580_v1, %v10531_v21  ;;  %7935 = vmatmul.mubr.f32.gmra.mrb[12].mxu1 %v1121_v55  ;;  %8537 = vmatprep.mubr.f32.mxu0 %v1129_v10  ;;  %v10547_v8 = vpop.trf.xlu0  ;;  %v1130_v24 = vsub.f32 %v10518_v2, %v1129_v10  ;;  %12956 = vst [vmem:[#allocation28_spill] sm:$0xff] %v10553_v36  ;;  %v10556_v49 = vpop.trf.xlu1  ;;  %v10558_v1 = vand.u32 4294901760, %v601_v32  ;;  %v604_v55 = vsel %vm533_vm0, %v10404_v42, 0  ;;  %v264_v2 = vld [vmem:[%s10263_s8 + $0xf0] sm:$0xff] }
 0x119   : > { %471 = vxpose.xlu0.b32.cont [3/4] (short) %v256_v48, 128  ;;  %503 = vxpose.xlu1.b32.cont [3/4] (short) %v257_v53, 128  ;;  %v607_v48 = vsel %vm533_vm0, %v10414_v56, 0  ;;  %v265_v53 = vld [vmem:[%s10263_s8 + $0xf8] sm:$0xff]  ;;  %v10578_v62 = vand.u32 4294901760, %v604_v55  ;;  %v1160_v56 = vsub.f32 %v10522_v9, %v1159_v34  ;;  %v613_v9 = vsel %vm533_vm0, %v10434_v25, 0 }
 0x11a   : > { %12954 = vst [vmem:[#allocation26_spill] sm:$0xff] %v10545_v26  ;;  %12957 = vst [vmem:[#allocation29_spill] sm:$0xff] %v10558_v1  ;;  %v1131_v38 = vand.u32 4294901760, %v1130_v24  ;;  %v1139_v10 = vand.u32 4294901760, %v10545_v26  ;;  %v10576_v24 = vsub.f32 %v598_v15, %v10553_v36  ;;  %v10587_v54 = vand.u32 4294901760, %v607_v48 }
 0x11b   : > { %12960 = vst [vmem:[#allocation32_spill] sm:$0xff] %v10578_v62  ;;  %v610_v15 = vsel %vm533_vm0, %v10424_v5, 0  ;;  %v1180_v5 = vsub.f32 %v10551_v4, %v1179_v33 }
 0x11c   : > { %7937 = vmatprep.mubr.f32.mxu1 %v1131_v38  ;;  %8538 = vmatmul.mubr.f32.gmra.mrb[14].mxu0 %v1139_v10  ;;  %v10572_v6 = vpop.trf.xlu0  ;;  %v1140_v42 = vsub.f32 %v10545_v26, %v1139_v10  ;;  %12959 = vst [vmem:[#allocation31_spill] sm:$0xff] %v10576_v24  ;;  %v10582_v50 = vpop.trf.xlu1  ;;  %v10585_v38 = vsub.f32 %v601_v32, %v10558_v1  ;;  %12962 = vst [vmem:[#allocation34_spill] sm:$0xff] %v10587_v54  ;;  %v1151_v10 = vand.u32 4294901760, %v1150_v30 }
 0x11d   : > { %8540 = vmatprep.mubr.f32.mxu0 %v1149_v20  ;;  %472 = vxpose.xlu0.b32.end [4/4] (short) %v264_v2, 128  ;;  %v1170_v20 = vsub.f32 %v10537_v44, %v1169_v22  ;;  %v1189_v2 = vand.u32 4294901760, %v10565_v58  ;;  %v10598_v32 = vsub.f32 %v604_v55, %v10578_v62  ;;  %v1199_v30 = vand.u32 4294901760, %v10576_v24 }
 0x11e   : > { %12961 = vst [vmem:[#allocation33_spill] sm:$0xff] %v10585_v38  ;;  %v1141_v47 = vand.u32 4294901760, %v1140_v42  ;;  %504 = vxpose.xlu1.b32.end [4/4] (short) %v265_v53, 128  ;;  %v1161_v53 = vand.u32 4294901760, %v1160_v56  ;;  %v10605_v44 = vsub.f32 %v607_v48, %v10587_v54  ;;  %v10607_v25 = vand.u32 4294901760, %v610_v15 }
 0x11f   : > { %12963 = vst [vmem:[#allocation35_spill] sm:$0xff] %v10598_v32  ;;  %v10612_v55 = vand.u32 4294901760, %v613_v9  ;;  %v1190_v56 = vsub.f32 %v10565_v58, %v1189_v2  ;;  %v1181_v54 = vand.u32 4294901760, %v1180_v5  ;;  %v1219_v62 = vand.u32 4294901760, %v10598_v32 }
 0x120   : > { %7938 = vmatmul.mubr.f32.gmra.mrb[14].mxu1 %v1141_v47  ;;  %8541 = vmatmul.mubr.f32.gmra.mrb[16].mxu0 %v1159_v34  ;;  %v10595_v26 = vpop.trf.xlu0  ;;  %v10602_v42 = vpop.trf.xlu1  ;;  %12964 = vst [vmem:[#allocation36_spill] sm:$0xff] %v10605_v44  ;;  %12965 = vst [vmem:[#allocation37_spill] sm:$0xff] %v10607_v25  ;;  %v616_v47 = vsel %vm533_vm0, %v10449_v40, 0  ;;  %v1209_v34 = vand.u32 4294901760, %v10585_v38  ;;  %v1200_v40 = vsub.f32 %v10576_v24, %v1199_v30 }
 0x121   : > { %7940 = vmatprep.mubr.f32.mxu1 %v1151_v10  ;;  %8543 = vmatprep.mubr.f32.mxu0 %v1169_v22  ;;  %12966 = vst [vmem:[#allocation38_spill] sm:$0xff] %v10612_v55  ;;  %v1171_v22 = vand.u32 4294901760, %v1170_v20  ;;  %v619_v10 = vsel %vm533_vm0, %v10466_v13, 0  ;;  %v10619_v48 = vand.u32 4294901760, %v616_v47  ;;  %v10626_v20 = vsub.f32 %v610_v15, %v10607_v25 }
 0x122   : > { %v622_v13 = vsel %vm533_vm0, %v10480_v31, 0  ;;  %v1191_v5 = vand.u32 4294901760, %v1190_v56  ;;  %v625_v15 = vsel %vm533_vm0, %v10500_v23, 0 }
 0x123   : > { %12967 = vst [vmem:[#allocation39_spill] sm:$0xff] %v10619_v48  ;;  %12968 = vst [vmem:[#allocation40_spill] sm:$0xff] %v10626_v20  ;;  %v10640_v58 = vsub.f32 %v616_v47, %v10619_v48  ;;  %v10642_v31 = vand.u32 4294901760, %v622_v13  ;;  %v631_v47 = vsel %vm533_vm0, %v10547_v8, 0 }
 0x124   : > { %7941 = vmatmul.mubr.f32.gmra.mrb[16].mxu1 %v1161_v53  ;;  %8544 = vmatmul.mubr.f32.gmra.mrb[18].mxu0 %v1179_v33  ;;  %v10617_v4 = vpop.trf.xlu0  ;;  %v10623_v1 = vpop.trf.xlu1  ;;  %v1210_v33 = vsub.f32 %v10585_v38, %v1209_v34  ;;  %v1229_v53 = vand.u32 4294901760, %v10605_v44  ;;  %v1201_v38 = vand.u32 4294901760, %v1200_v40 }
 0x125   : > { %7943 = vmatprep.mubr.f32.mxu1 %v1171_v22  ;;  %8546 = vmatprep.mubr.f32.mxu0 %v1189_v2  ;;  %v10633_v22 = vsub.f32 %v613_v9, %v10612_v55  ;;  %v10635_v2 = vand.u32 4294901760, %v619_v10  ;;  %12971 = vst [vmem:[#allocation43_spill] sm:$0xff] %v10640_v58  ;;  %12972 = vst [vmem:[#allocation44_spill] sm:$0xff] %v10642_v31  ;;  %v1220_v9 = vsub.f32 %v10598_v32, %v1219_v62 }
 0x126   : > { %v1211_v25 = vand.u32 4294901760, %v1210_v33  ;;  %v1230_v23 = vsub.f32 %v10605_v44, %v1229_v53  ;;  %v1259_v8 = vand.u32 4294901760, %v10640_v58 }
 0x127   : > { %12969 = vst [vmem:[#allocation41_spill] sm:$0xff] %v10633_v22  ;;  %12970 = vst [vmem:[#allocation42_spill] sm:$0xff] %v10635_v2  ;;  %v10654_v56 = vsub.f32 %v619_v10, %v10635_v2  ;;  %v1249_v40 = vand.u32 4294901760, %v10633_v22  ;;  %v1221_v44 = vand.u32 4294901760, %v1220_v9  ;;  %v10667_v10 = vand.u32 4294901760, %v631_v47 }
 0x128   : > { %7944 = vmatmul.mubr.f32.gmra.mrb[18].mxu1 %v1181_v54  ;;  %8547 = vmatmul.mubr.f32.gmra.mrb[20].mxu0 %v1199_v30  ;;  %v361_v24 = vpop.trf.xlu0  ;;  %v10645_v55 = vpop.trf.xlu1  ;;  %v628_v54 = vsel %vm533_vm0, %v10527_v60, 0  ;;  %v1239_v30 = vand.u32 4294901760, %v10626_v20  ;;  %v634_v2 = vsel %vm533_vm0, %v10572_v6, 0 }
 0x129   : > { %7946 = vmatprep.mubr.f32.mxu1 %v1191_v5  ;;  %8549 = vmatprep.mubr.f32.mxu0 %v1209_v34  ;;  %12973 = vst [vmem:[#allocation45_spill] sm:$0xff] %v10654_v56  ;;  %v10656_v34 = vand.u32 4294901760, %v625_v15  ;;  %v10660_v5 = vsub.f32 %v622_v13, %v10642_v31  ;;  %v10662_v60 = vand.u32 4294901760, %v628_v54  ;;  %12977 = vst [vmem:[#allocation49_spill] sm:$0xff] %v10667_v10  ;;  %v637_v13 = vsel %vm533_vm0, %v10595_v26, 0 }
 0x12a   : > { %v1269_v9 = vand.u32 4294901760, %v10654_v56  ;;  %v10679_v48 = vand.u32 4294901760, %v634_v2 }
 0x12b   : > { %12974 = vst [vmem:[#allocation46_spill] sm:$0xff] %v10656_v34  ;;  %12975 = vst [vmem:[#allocation47_spill] sm:$0xff] %v10660_v5  ;;  %v10682_v6 = vsub.f32 %v628_v54, %v10662_v60  ;;  %v1279_v26 = vand.u32 4294901760, %v10660_v5 }
 0x12c   : > { %7947 = vmatmul.mubr.f32.gmra.mrb[20].mxu1 %v1201_v38  ;;  %8550 = vmatmul.mubr.f32.gmra.mrb[22].mxu0 %v1219_v62  ;;  %v362_v33 = vpop.trf.xlu0  ;;  %12976 = vst [vmem:[#allocation48_spill] sm:$0xff] %v10662_v60  ;;  %v10665_v32 = vpop.trf.xlu1  ;;  %v1231_v38 = vand.u32 4294901760, %v1230_v23  ;;  %v1240_v62 = vsub.f32 %v10626_v20, %v1239_v30  ;;  %12979 = vst [vmem:[#allocation51_spill] sm:$0xff] %v10679_v48  ;;  %v1260_v23 = vsub.f32 %v10640_v58, %v1259_v8 }
 0x12d   : > { %7949 = vmatprep.mubr.f32.mxu1 %v1211_v25  ;;  %8552 = vmatprep.mubr.f32.mxu0 %v1229_v53  ;;  %v10675_v25 = vsub.f32 %v625_v15, %v10656_v34  ;;  %v1250_v53 = vsub.f32 %v10633_v22, %v1249_v40  ;;  %12980 = vst [vmem:[#allocation52_spill] sm:$0xff] %v10682_v6  ;;  %v10691_v20 = vand.u32 4294901760, %v637_v13 }
 0x12e   : > { %v10689_v22 = vsub.f32 %v631_v47, %v10667_v10  ;;  %v1270_v54 = vsub.f32 %v10654_v56, %v1269_v9  ;;  %v10699_v60 = vsub.f32 %v634_v2, %v10679_v48  ;;  %v1261_v47 = vand.u32 4294901760, %v1260_v23 }
 0x12f   : > { %12978 = vst [vmem:[#allocation50_spill] sm:$0xff] %v10675_v25  ;;  %12982 = vst [vmem:[#allocation54_spill] sm:$0xff] %v10691_v20  ;;  %v1251_v34 = vand.u32 4294901760, %v1250_v53  ;;  %v10706_v56 = vsub.f32 %v637_v13, %v10691_v20 }
 0x130   : > { %7950 = vmatmul.mubr.f32.gmra.mrb[22].mxu1 %v1221_v44  ;;  %8553 = vmatmul.mubr.f32.gmra.mrb[24].mxu0 %v1239_v30  ;;  %v363_v31 = vpop.trf.xlu0  ;;  %v10686_v15 = vpop.trf.xlu1  ;;  %12981 = vst [vmem:[#allocation53_spill] sm:$0xff] %v10689_v22  ;;  %v1241_v44 = vand.u32 4294901760, %v1240_v62  ;;  %v640_v30 = vsel %vm533_vm0, %v10617_v4, 0  ;;  %12983 = vst [vmem:[#allocation55_spill] sm:$0xff] %v10699_v60  ;;  %v1280_v62 = vsub.f32 %v10660_v5, %v1279_v26  ;;  %v1299_v4 = vand.u32 4294901760, %v10682_v6 }
 0x131   : > { %7952 = vmatprep.mubr.f32.mxu1 %v1231_v38  ;;  %8555 = vmatprep.mubr.f32.mxu0 %v1249_v40  ;;  %v1289_v40 = vand.u32 4294901760, %v10675_v25  ;;  %v643_v38 = vsel %vm533_vm0, %v361_v24, 0  ;;  %12984 = vst [vmem:[#allocation56_spill] sm:$0xff] %v10706_v56  ;;  %v10708_v10 = vand.u32 4294901760, %v640_v30  ;;  %v646_v24 = vsel %vm533_vm0, %v362_v33, 0 }
 0x132   : > { %v10712_v2 = vand.u32 4294901760, %v643_v38  ;;  %v649_v23 = vsel %vm533_vm0, %v363_v31, 0  ;;  %v10716_v5 = vand.u32 4294901760, %v646_v24  ;;  %v1300_v13 = vsub.f32 %v10682_v6, %v1299_v4 }
 0x133   : > { %12985 = vst [vmem:[#allocation57_spill] sm:$0xff] %v10708_v10  ;;  %v1319_v33 = vand.u32 4294901760, %v10699_v60  ;;  %v10723_v48 = vsub.f32 %v640_v30, %v10708_v10  ;;  %v1329_v31 = vand.u32 4294901760, %v10706_v56 }
 0x134   : > { %7953 = vmatmul.mubr.f32.gmra.mrb[24].mxu1 %v1241_v44  ;;  %8556 = vmatmul.mubr.f32.gmra.mrb[26].mxu0 %v1259_v8  ;;  %v364_v58 = vpop.trf.xlu0  ;;  %v10703_v53 = vpop.trf.xlu1  ;;  %v1309_v8 = vand.u32 4294901760, %v10689_v22  ;;  %12986 = vst [vmem:[#allocation58_spill] sm:$0xff] %v10712_v2  ;;  %12987 = vst [vmem:[#allocation59_spill] sm:$0xff] %v10716_v5  ;;  %v10735_v30 = vsub.f32 %v646_v24, %v10716_v5 }
 0x135   : > { %7955 = vmatprep.mubr.f32.mxu1 %v1251_v34  ;;  %8558 = vmatprep.mubr.f32.mxu0 %v1269_v9  ;;  %v1271_v34 = vand.u32 4294901760, %v1270_v54  ;;  %v1290_v9 = vsub.f32 %v10675_v25, %v1289_v40  ;;  %12988 = vst [vmem:[#allocation60_spill] sm:$0xff] %v10723_v48  ;;  %v1281_v54 = vand.u32 4294901760, %v1280_v62  ;;  %v1301_v62 = vand.u32 4294901760, %v1300_v13 }
 0x136   : > { %v1310_v25 = vsub.f32 %v10689_v22, %v1309_v8  ;;  %12991 = vst [vmem:[#allocation63_spill] sm:$0xff] %v10735_v30  ;;  %v1320_v22 = vsub.f32 %v10699_v60, %v1319_v33 }
 0x138   : > { %7956 = vmatmul.mubr.f32.gmra.mrb[26].mxu1 %v1261_v47  ;;  %8559 = vmatmul.mubr.f32.gmra.mrb[28].mxu0 %v1279_v26  ;;  %v365_v44 = vpop.trf.xlu0  ;;  %v10720_v20 = vpop.trf.xlu1  ;;  %v10728_v26 = vsub.f32 %v643_v38, %v10712_v2  ;;  %v10730_v47 = vand.u32 4294901760, %v649_v23  ;;  %v1311_v10 = vand.u32 4294901760, %v1310_v25  ;;  %v1321_v25 = vand.u32 4294901760, %v1320_v22 }
 0x139   : > { %7958 = vmatprep.mubr.f32.mxu1 %v1271_v34  ;;  %8561 = vmatprep.mubr.f32.mxu0 %v1289_v40  ;;  %v652_v40 = vsel %vm533_vm0, %v364_v58, 0  ;;  %v1291_v34 = vand.u32 4294901760, %v1290_v9  ;;  %v655_v6 = vsel %vm533_vm0, %v365_v44, 0  ;;  %v1339_v58 = vand.u32 4294901760, %v10723_v48 }
 0x13a   : > { %12989 = vst [vmem:[#allocation61_spill] sm:$0xff] %v10728_v26  ;;  %12990 = vst [vmem:[#allocation62_spill] sm:$0xff] %v10730_v47  ;;  %v10740_v2 = vand.u32 4294901760, %v652_v40  ;;  %v1330_v9 = vsub.f32 %v10706_v56, %v1329_v31  ;;  %v10747_v44 = vand.u32 4294901760, %v655_v6 }
 0x13c   : > { %7959 = vmatmul.mubr.f32.gmra.mrb[28].mxu1 %v1281_v54  ;;  %8562 = vmatmul.mubr.f32.gmra.mrb[30].mxu0 %v1299_v4  ;;  %v366_v36 = vpop.trf.xlu0  ;;  %v10738_v38 = vpop.trf.xlu1  ;;  %12992 = vst [vmem:[#allocation64_spill] sm:$0xff] %v10740_v2  ;;  %v10745_v4 = vsub.f32 %v649_v23, %v10730_v47  ;;  %12994 = vst [vmem:[#allocation66_spill] sm:$0xff] %v10747_v44  ;;  %v10756_v23 = vsub.f32 %v652_v40, %v10740_v2 }
 0x13d   : > { %7961 = vmatprep.mubr.f32.mxu1 %v1291_v34  ;;  %8564 = vmatprep.mubr.f32.mxu0 %v1309_v8  ;;  %v658_v24 = vsel %vm533_vm0, %v366_v36, 0  ;;  %v1349_v8 = vand.u32 4294901760, %v10728_v26  ;;  %v1359_v34 = vand.u32 4294901760, %v10735_v30  ;;  %v1331_v36 = vand.u32 4294901760, %v1330_v9 }
 0x13e   : > { %12993 = vst [vmem:[#allocation65_spill] sm:$0xff] %v10745_v4  ;;  %12995 = vst [vmem:[#allocation67_spill] sm:$0xff] %v10756_v23  ;;  %v10758_v60 = vand.u32 4294901760, %v658_v24  ;;  %v1340_v47 = vsub.f32 %v10723_v48, %v1339_v58  ;;  %v1369_v22 = vand.u32 4294901760, %v10745_v4 }
 0x13f   : > { %v1360_v9 = vsub.f32 %v10735_v30, %v1359_v34 }
 0x140   : > { %7962 = vmatmul.mubr.f32.gmra.mrb[30].mxu1 %v1301_v62  ;;  %8565 = vmatmul.mubr.f32.gmra.mrb[32].mxu0 %v1319_v33  ;;  %v367_v13 = vpop.trf.xlu0  ;;  %v10753_v56 = vpop.trf.xlu1  ;;  %12996 = vst [vmem:[#allocation68_spill] sm:$0xff] %v10758_v60  ;;  %v10762_v33 = vsub.f32 %v655_v6, %v10747_v44  ;;  %v10773_v6 = vsub.f32 %v658_v24, %v10758_v60  ;;  %v1341_v44 = vand.u32 4294901760, %v1340_v47 }
 0x141   : > { %v661_v54 = vsel %vm533_vm0, %v367_v13, 0  ;;  %7964 = vmatprep.mubr.f32.mxu1 %v1311_v10  ;;  %8567 = vmatprep.mubr.f32.mxu0 %v1329_v31  ;;  %v1350_v10 = vsub.f32 %v10728_v26, %v1349_v8  ;;  %v1379_v26 = vand.u32 4294901760, %v10756_v23  ;;  %v1361_v24 = vand.u32 4294901760, %v1360_v9 }
 0x142   : > { %12997 = vst [vmem:[#allocation69_spill] sm:$0xff] %v10762_v33  ;;  %v10764_v62 = vand.u32 4294901760, %v661_v54  ;;  %12999 = vst [vmem:[#allocation71_spill] sm:$0xff] %v10773_v6 }
 0x144   : > { %12998 = vst [vmem:[#allocation70_spill] sm:$0xff] %v10764_v62  ;;  %7965 = vmatmul.mubr.f32.gmra.mrb[32].mxu1 %v1321_v25  ;;  %8568 = vmatmul.mubr.f32.gmra.mrb[34].mxu0 %v1339_v58  ;;  %v368_v31 = vpop.trf.xlu0  ;;  %v10770_v13 = vpop.trf.xlu1  ;;  %v10779_v25 = vsub.f32 %v661_v54, %v10764_v62  ;;  %v1351_v58 = vand.u32 4294901760, %v1350_v10  ;;  %v1380_v10 = vsub.f32 %v10756_v23, %v1379_v26 }
 0x145   : > { %v664_v40 = vsel %vm533_vm0, %v368_v31, 0  ;;  %7967 = vmatprep.mubr.f32.mxu1 %v1331_v36  ;;  %8570 = vmatprep.mubr.f32.mxu0 %v1349_v8  ;;  %v1370_v31 = vsub.f32 %v10745_v4, %v1369_v22  ;;  %v1389_v8 = vand.u32 4294901760, %v10762_v33  ;;  %v1399_v4 = vand.u32 4294901760, %v10773_v6 }
 0x146   : > { %v10775_v48 = vand.u32 4294901760, %v664_v40  ;;  %13001 = vst [vmem:[#allocation73_spill] sm:$0xff] %v10779_v25  ;;  %v1381_v23 = vand.u32 4294901760, %v1380_v10 }
 0x147   : > { %v1371_v62 = vand.u32 4294901760, %v1370_v31 }
 0x148   : > { %13000 = vst [vmem:[#allocation72_spill] sm:$0xff] %v10775_v48  ;;  %7968 = vmatmul.mubr.f32.gmra.mrb[34].mxu1 %v1341_v44  ;;  %8571 = vmatmul.mubr.f32.gmra.mrb[36].mxu0 %v1359_v34  ;;  %v369_v36 = vpop.trf.xlu0  ;;  %v10784_v60 = vpop.trf.xlu1  ;;  %v10787_v47 = vsub.f32 %v664_v40, %v10775_v48  ;;  %v1390_v44 = vsub.f32 %v10762_v33, %v1389_v8  ;;  %v1409_v34 = vand.u32 4294901760, %v10779_v25 }
 0x149   : > { %v667_v30 = vsel %vm533_vm0, %v369_v36, 0  ;;  %7970 = vmatprep.mubr.f32.mxu1 %v1351_v58  ;;  %8573 = vmatprep.mubr.f32.mxu0 %v1369_v22  ;;  %v679_v22 = vsel %vm533_vm0, %v10556_v49, 0  ;;  %v682_v58 = vsel %vm533_vm0, %v10582_v50, 0  ;;  %v1400_v49 = vsub.f32 %v10773_v6, %v1399_v4 }
 0x14a   : > { %13002 = vst [vmem:[#allocation74_spill] sm:$0xff] %v10787_v47  ;;  %v10789_v54 = vand.u32 4294901760, %v667_v30  ;;  %v10813_v48 = vand.u32 4294901760, %v682_v58 }
 0x14b   : > { %v1401_v2 = vand.u32 4294901760, %v1400_v49 }
 0x14c   : > { %13003 = vst [vmem:[#allocation75_spill] sm:$0xff] %v10789_v54  ;;  %v10798_v9 = vsub.f32 %v667_v30, %v10789_v54  ;;  %7971 = vmatmul.mubr.f32.gmra.mrb[36].mxu1 %v1361_v24  ;;  %8574 = vmatmul.mubr.f32.gmra.mrb[38].mxu0 %v1379_v26  ;;  %v370_v40 = vpop.trf.xlu0  ;;  %v10803_v31 = vpop.trf.xlu1  ;;  %v1419_v30 = vand.u32 4294901760, %v10787_v47  ;;  %v10809_v54 = vand.u32 4294901760, %v679_v22  ;;  %v1391_v26 = vand.u32 4294901760, %v1390_v44  ;;  %13007 = vst [vmem:[#allocation79_spill] sm:$0xff] %v10813_v48 }
 0x14d   : > { %v670_v36 = vsel %vm533_vm0, %v370_v40, 0  ;;  %7973 = vmatprep.mubr.f32.mxu1 %v1371_v62  ;;  %8576 = vmatprep.mubr.f32.mxu0 %v1389_v8  ;;  %v1410_v24 = vsub.f32 %v10779_v25, %v1409_v34  ;;  %v685_v62 = vsel %vm533_vm0, %v10602_v42, 0  ;;  %v688_v40 = vsel %vm533_vm0, %v10623_v1, 0 }
 0x14e   : > { %13004 = vst [vmem:[#allocation76_spill] sm:$0xff] %v10798_v9  ;;  %v10805_v33 = vand.u32 4294901760, %v670_v36  ;;  %13006 = vst [vmem:[#allocation78_spill] sm:$0xff] %v10809_v54  ;;  %v1429_v50 = vand.u32 4294901760, %v10798_v9  ;;  %v1420_v42 = vsub.f32 %v10787_v47, %v1419_v30  ;;  %v10843_v47 = vand.u32 4294901760, %v688_v40 }
 0x150   : > { %13005 = vst [vmem:[#allocation77_spill] sm:$0xff] %v10805_v33  ;;  %v10818_v8 = vsub.f32 %v670_v36, %v10805_v33  ;;  %7974 = vmatmul.mubr.f32.gmra.mrb[38].mxu1 %v1381_v23  ;;  %8577 = vmatmul.mubr.f32.gmra.mrb[40].mxu0 %v1399_v4  ;;  %v371_v10 = vpop.trf.xlu0  ;;  %v10823_v25 = vpop.trf.xlu1  ;;  %v10830_v23 = vsub.f32 %v679_v22, %v10809_v54  ;;  %v10832_v4 = vand.u32 4294901760, %v685_v62  ;;  %v1411_v33 = vand.u32 4294901760, %v1410_v24 }
 0x151   : > { %v673_v44 = vsel %vm533_vm0, %v371_v10, 0  ;;  %7976 = vmatprep.mubr.f32.mxu1 %v1391_v26  ;;  %8579 = vmatprep.mubr.f32.mxu0 %v1409_v34  ;;  %v1430_v1 = vsub.f32 %v10798_v9, %v1429_v50  ;;  %v10836_v26 = vsub.f32 %v682_v58, %v10813_v48  ;;  %v691_v34 = vsel %vm533_vm0, %v10645_v55, 0  ;;  %13014 = vst [vmem:[#allocation86_spill] sm:$0xff] %v10843_v47 }
 0x152   : > { %13008 = vst [vmem:[#allocation80_spill] sm:$0xff] %v10818_v8  ;;  %v10825_v6 = vand.u32 4294901760, %v673_v44  ;;  %v1439_v36 = vand.u32 4294901760, %v10818_v8  ;;  %13010 = vst [vmem:[#allocation82_spill] sm:$0xff] %v10830_v23  ;;  %v694_v22 = vsel %vm533_vm0, %v10665_v32, 0  ;;  %v697_v24 = vsel %vm533_vm0, %v10686_v15, 0 }
 0x153   : > { %13011 = vst [vmem:[#allocation83_spill] sm:$0xff] %v10832_v4  ;;  %13012 = vst [vmem:[#allocation84_spill] sm:$0xff] %v10836_v26  ;;  %v10857_v48 = vsub.f32 %v685_v62, %v10832_v4  ;;  %v10859_v32 = vand.u32 4294901760, %v691_v34  ;;  %v1431_v54 = vand.u32 4294901760, %v1430_v1  ;;  %v1469_v15 = vand.u32 4294901760, %v10830_v23 }
 0x154   : > { %13009 = vst [vmem:[#allocation81_spill] sm:$0xff] %v10825_v6  ;;  %v10841_v49 = vsub.f32 %v673_v44, %v10825_v6  ;;  %7977 = vmatmul.mubr.f32.gmra.mrb[40].mxu1 %v1401_v2  ;;  %8580 = vmatmul.mubr.f32.gmra.mrb[42].mxu0 %v1419_v30  ;;  %v372_v10 = vpop.trf.xlu0  ;;  %v10850_v9 = vpop.trf.xlu1  ;;  %v1421_v44 = vand.u32 4294901760, %v1420_v42  ;;  %v1440_v30 = vsub.f32 %v10818_v8, %v1439_v36  ;;  %v10871_v8 = vand.u32 4294901760, %v694_v22 }
 0x155   : > { %v676_v58 = vsel %vm533_vm0, %v372_v10, 0  ;;  %7979 = vmatprep.mubr.f32.mxu1 %v1411_v33  ;;  %8582 = vmatprep.mubr.f32.mxu0 %v1429_v50  ;;  %13016 = vst [vmem:[#allocation88_spill] sm:$0xff] %v10857_v48  ;;  %13017 = vst [vmem:[#allocation89_spill] sm:$0xff] %v10859_v32  ;;  %v10869_v10 = vsub.f32 %v688_v40, %v10843_v47  ;;  %v10873_v62 = vand.u32 4294901760, %v697_v24  ;;  %v1479_v1 = vand.u32 4294901760, %v10836_v26 }
 0x156   : > { %13013 = vst [vmem:[#allocation85_spill] sm:$0xff] %v10841_v49  ;;  %v10852_v55 = vand.u32 4294901760, %v676_v58  ;;  %v1449_v2 = vand.u32 4294901760, %v10841_v49  ;;  %13020 = vst [vmem:[#allocation92_spill] sm:$0xff] %v10871_v8  ;;  %v10882_v40 = vsub.f32 %v691_v34, %v10859_v32  ;;  %v703_v47 = vsel %vm533_vm0, %v10720_v20, 0 }
 0x157   : > { %13019 = vst [vmem:[#allocation91_spill] sm:$0xff] %v10869_v10  ;;  %13021 = vst [vmem:[#allocation93_spill] sm:$0xff] %v10873_v62  ;;  %v1480_v34 = vsub.f32 %v10836_v26, %v1479_v1  ;;  %v1499_v20 = vand.u32 4294901760, %v10869_v10  ;;  %v10903_v32 = vand.u32 4294901760, %v703_v47 }
 0x158   : > { %13015 = vst [vmem:[#allocation87_spill] sm:$0xff] %v10852_v55  ;;  %v10863_v33 = vsub.f32 %v676_v58, %v10852_v55  ;;  %7980 = vmatmul.mubr.f32.gmra.mrb[42].mxu1 %v1421_v44  ;;  %8583 = vmatmul.mubr.f32.gmra.mrb[44].mxu0 %v1439_v36  ;;  %v10865_v50 = vpop.trf.xlu0  ;;  %v1450_v42 = vsub.f32 %v10841_v49, %v1449_v2  ;;  %v10876_v4 = vpop.trf.xlu1  ;;  %v700_v36 = vsel %vm533_vm0, %v10703_v53, 0  ;;  %v1441_v58 = vand.u32 4294901760, %v1440_v30 }
 0x159   : > { %7982 = vmatprep.mubr.f32.mxu1 %v1431_v54  ;;  %8585 = vmatprep.mubr.f32.mxu0 %v1449_v2  ;;  %13022 = vst [vmem:[#allocation94_spill] sm:$0xff] %v10882_v40  ;;  %v1470_v54 = vsub.f32 %v10830_v23, %v1469_v15  ;;  %v1489_v2 = vand.u32 4294901760, %v10857_v48  ;;  %v10892_v30 = vsub.f32 %v694_v22, %v10871_v8  ;;  %13026 = vst [vmem:[#allocation98_spill] sm:$0xff] %v10903_v32 }
 0x15a   : > { %13018 = vst [vmem:[#allocation90_spill] sm:$0xff] %v10863_v33  ;;  %v1459_v44 = vand.u32 4294901760, %v10863_v33  ;;  %v1451_v49 = vand.u32 4294901760, %v1450_v42  ;;  %v10894_v42 = vand.u32 4294901760, %v700_v36  ;;  %v706_v22 = vsel %vm533_vm0, %v10738_v38, 0 }
 0x15b   : > { %13023 = vst [vmem:[#allocation95_spill] sm:$0xff] %v10892_v30  ;;  %v1500_v38 = vsub.f32 %v10869_v10, %v1499_v20 }
 0x15c   : > { %7983 = vmatmul.mubr.f32.gmra.mrb[44].mxu1 %v1441_v58  ;;  %8586 = vmatmul.mubr.f32.gmra.mrb[46].mxu0 %v1459_v44  ;;  %v10888_v55 = vpop.trf.xlu0  ;;  %v1460_v53 = vsub.f32 %v10863_v33, %v1459_v44  ;;  %13024 = vst [vmem:[#allocation96_spill] sm:$0xff] %v10894_v42  ;;  %v10898_v23 = vpop.trf.xlu1  ;;  %v10901_v58 = vsub.f32 %v697_v24, %v10873_v62  ;;  %v1471_v44 = vand.u32 4294901760, %v1470_v54  ;;  %v1519_v54 = vand.u32 4294901760, %v10892_v30 }
 0x15d   : > { %7985 = vmatprep.mubr.f32.mxu1 %v1451_v49  ;;  %8588 = vmatprep.mubr.f32.mxu0 %v1469_v15  ;;  %v1490_v33 = vsub.f32 %v10857_v48, %v1489_v2  ;;  %v1509_v49 = vand.u32 4294901760, %v10882_v40  ;;  %v709_v15 = vsel %vm533_vm0, %v10753_v56, 0  ;;  %v10914_v24 = vsub.f32 %v700_v36, %v10894_v42 }
 0x15e   : > { %13025 = vst [vmem:[#allocation97_spill] sm:$0xff] %v10901_v58  ;;  %v1461_v6 = vand.u32 4294901760, %v1460_v53  ;;  %v1481_v53 = vand.u32 4294901760, %v1480_v34  ;;  %v10921_v62 = vsub.f32 %v703_v47, %v10903_v32  ;;  %v10923_v56 = vand.u32 4294901760, %v706_v22 }
 0x15f   : > { %13027 = vst [vmem:[#allocation99_spill] sm:$0xff] %v10914_v24  ;;  %v10928_v36 = vand.u32 4294901760, %v709_v15  ;;  %v1510_v34 = vsub.f32 %v10882_v40, %v1509_v49  ;;  %v1501_v32 = vand.u32 4294901760, %v1500_v38  ;;  %v1539_v42 = vand.u32 4294901760, %v10914_v24 }
 0x160   : > { %7986 = vmatmul.mubr.f32.gmra.mrb[46].mxu1 %v1461_v6  ;;  %8589 = vmatmul.mubr.f32.gmra.mrb[48].mxu0 %v1479_v1  ;;  %v10911_v26 = vpop.trf.xlu0  ;;  %v10918_v48 = vpop.trf.xlu1  ;;  %13028 = vst [vmem:[#allocation100_spill] sm:$0xff] %v10921_v62  ;;  %13029 = vst [vmem:[#allocation101_spill] sm:$0xff] %v10923_v56  ;;  %v712_v6 = vsel %vm533_vm0, %v10770_v13, 0  ;;  %v1529_v1 = vand.u32 4294901760, %v10901_v58  ;;  %v1520_v13 = vsub.f32 %v10892_v30, %v1519_v54 }
 0x161   : > { %7988 = vmatprep.mubr.f32.mxu1 %v1471_v44  ;;  %8591 = vmatprep.mubr.f32.mxu0 %v1489_v2  ;;  %13030 = vst [vmem:[#allocation102_spill] sm:$0xff] %v10928_v36  ;;  %v1491_v2 = vand.u32 4294901760, %v1490_v33  ;;  %v715_v44 = vsel %vm533_vm0, %v10784_v60, 0  ;;  %v10935_v47 = vand.u32 4294901760, %v712_v6  ;;  %v10942_v33 = vsub.f32 %v706_v22, %v10923_v56 }
 0x162   : > { %v718_v60 = vsel %vm533_vm0, %v10803_v31, 0  ;;  %v1511_v38 = vand.u32 4294901760, %v1510_v34  ;;  %v721_v22 = vsel %vm533_vm0, %v10823_v25, 0 }
 0x163   : > { %13031 = vst [vmem:[#allocation103_spill] sm:$0xff] %v10935_v47  ;;  %13032 = vst [vmem:[#allocation104_spill] sm:$0xff] %v10942_v33  ;;  %v10956_v40 = vsub.f32 %v712_v6, %v10935_v47  ;;  %v10958_v31 = vand.u32 4294901760, %v718_v60  ;;  %v727_v6 = vsel %vm533_vm0, %v10865_v50, 0 }
 0x164   : > { %7989 = vmatmul.mubr.f32.gmra.mrb[48].mxu1 %v1481_v53  ;;  %8592 = vmatmul.mubr.f32.gmra.mrb[50].mxu0 %v1499_v20  ;;  %v10933_v10 = vpop.trf.xlu0  ;;  %v10939_v8 = vpop.trf.xlu1  ;;  %v1530_v20 = vsub.f32 %v10901_v58, %v1529_v1  ;;  %v1549_v53 = vand.u32 4294901760, %v10921_v62  ;;  %v1521_v58 = vand.u32 4294901760, %v1520_v13 }
 0x165   : > { %7991 = vmatprep.mubr.f32.mxu1 %v1491_v2  ;;  %8594 = vmatprep.mubr.f32.mxu0 %v1509_v49  ;;  %v10949_v2 = vsub.f32 %v709_v15, %v10928_v36  ;;  %v10951_v49 = vand.u32 4294901760, %v715_v44  ;;  %13035 = vst [vmem:[#allocation107_spill] sm:$0xff] %v10956_v40  ;;  %13036 = vst [vmem:[#allocation108_spill] sm:$0xff] %v10958_v31  ;;  %v1540_v15 = vsub.f32 %v10914_v24, %v1539_v42 }
 0x166   : > { %v1531_v56 = vand.u32 4294901760, %v1530_v20  ;;  %v1550_v25 = vsub.f32 %v10921_v62, %v1549_v53  ;;  %v1579_v50 = vand.u32 4294901760, %v10956_v40 }
 0x167   : > { %13033 = vst [vmem:[#allocation105_spill] sm:$0xff] %v10949_v2  ;;  %13034 = vst [vmem:[#allocation106_spill] sm:$0xff] %v10951_v49  ;;  %v10970_v34 = vsub.f32 %v715_v44, %v10951_v49  ;;  %v1569_v13 = vand.u32 4294901760, %v10949_v2  ;;  %v1541_v62 = vand.u32 4294901760, %v1540_v15  ;;  %v10983_v44 = vand.u32 4294901760, %v727_v6 }
 0x168   : > { %7992 = vmatmul.mubr.f32.gmra.mrb[50].mxu1 %v1501_v32  ;;  %8595 = vmatmul.mubr.f32.gmra.mrb[52].mxu0 %v1519_v54  ;;  %v425_v30 = vpop.trf.xlu0  ;;  %v10961_v36 = vpop.trf.xlu1  ;;  %v724_v32 = vsel %vm533_vm0, %v10850_v9, 0  ;;  %v1559_v54 = vand.u32 4294901760, %v10942_v33  ;;  %v730_v49 = vsel %vm533_vm0, %v10888_v55, 0 }
 0x169   : > { %7994 = vmatprep.mubr.f32.mxu1 %v1511_v38  ;;  %8597 = vmatprep.mubr.f32.mxu0 %v1529_v1  ;;  %13037 = vst [vmem:[#allocation109_spill] sm:$0xff] %v10970_v34  ;;  %v10972_v1 = vand.u32 4294901760, %v721_v22  ;;  %v10976_v38 = vsub.f32 %v718_v60, %v10958_v31  ;;  %v10978_v9 = vand.u32 4294901760, %v724_v32  ;;  %13041 = vst [vmem:[#allocation113_spill] sm:$0xff] %v10983_v44  ;;  %v733_v60 = vsel %vm533_vm0, %v10911_v26, 0 }
 0x16a   : > { %v1589_v15 = vand.u32 4294901760, %v10970_v34  ;;  %v10995_v47 = vand.u32 4294901760, %v730_v49 }
 0x16b   : > { %13038 = vst [vmem:[#allocation110_spill] sm:$0xff] %v10972_v1  ;;  %13039 = vst [vmem:[#allocation111_spill] sm:$0xff] %v10976_v38  ;;  %v10998_v55 = vsub.f32 %v724_v32, %v10978_v9  ;;  %v1599_v26 = vand.u32 4294901760, %v10976_v38 }
 0x16c   : > { %7995 = vmatmul.mubr.f32.gmra.mrb[52].mxu1 %v1521_v58  ;;  %8598 = vmatmul.mubr.f32.gmra.mrb[54].mxu0 %v1539_v42  ;;  %v426_v20 = vpop.trf.xlu0  ;;  %13040 = vst [vmem:[#allocation112_spill] sm:$0xff] %v10978_v9  ;;  %v10981_v24 = vpop.trf.xlu1  ;;  %v1551_v58 = vand.u32 4294901760, %v1550_v25  ;;  %v1560_v42 = vsub.f32 %v10942_v33, %v1559_v54  ;;  %13043 = vst [vmem:[#allocation115_spill] sm:$0xff] %v10995_v47  ;;  %v1580_v25 = vsub.f32 %v10956_v40, %v1579_v50 }
 0x16d   : > { %7997 = vmatprep.mubr.f32.mxu1 %v1531_v56  ;;  %8600 = vmatprep.mubr.f32.mxu0 %v1549_v53  ;;  %v10991_v56 = vsub.f32 %v721_v22, %v10972_v1  ;;  %v1570_v53 = vsub.f32 %v10949_v2, %v1569_v13  ;;  %13044 = vst [vmem:[#allocation116_spill] sm:$0xff] %v10998_v55  ;;  %v11007_v33 = vand.u32 4294901760, %v733_v60 }
 0x16e   : > { %v11005_v2 = vsub.f32 %v727_v6, %v10983_v44  ;;  %v1590_v32 = vsub.f32 %v10970_v34, %v1589_v15  ;;  %v11015_v9 = vsub.f32 %v730_v49, %v10995_v47  ;;  %v1581_v6 = vand.u32 4294901760, %v1580_v25 }
 0x16f   : > { %13042 = vst [vmem:[#allocation114_spill] sm:$0xff] %v10991_v56  ;;  %13046 = vst [vmem:[#allocation118_spill] sm:$0xff] %v11007_v33  ;;  %v1571_v1 = vand.u32 4294901760, %v1570_v53  ;;  %v11022_v34 = vsub.f32 %v733_v60, %v11007_v33 }
 0x170   : > { %7998 = vmatmul.mubr.f32.gmra.mrb[54].mxu1 %v1541_v62  ;;  %8601 = vmatmul.mubr.f32.gmra.mrb[56].mxu0 %v1559_v54  ;;  %v427_v31 = vpop.trf.xlu0  ;;  %v11002_v22 = vpop.trf.xlu1  ;;  %13045 = vst [vmem:[#allocation117_spill] sm:$0xff] %v11005_v2  ;;  %v1561_v62 = vand.u32 4294901760, %v1560_v42  ;;  %v736_v54 = vsel %vm533_vm0, %v10933_v10, 0  ;;  %13047 = vst [vmem:[#allocation119_spill] sm:$0xff] %v11015_v9  ;;  %v1600_v42 = vsub.f32 %v10976_v38, %v1599_v26  ;;  %v1619_v10 = vand.u32 4294901760, %v10998_v55 }
 0x171   : > { %8000 = vmatprep.mubr.f32.mxu1 %v1551_v58  ;;  %8603 = vmatprep.mubr.f32.mxu0 %v1569_v13  ;;  %v1609_v13 = vand.u32 4294901760, %v10991_v56  ;;  %v739_v58 = vsel %vm533_vm0, %v425_v30, 0  ;;  %13048 = vst [vmem:[#allocation120_spill] sm:$0xff] %v11022_v34  ;;  %v11024_v44 = vand.u32 4294901760, %v736_v54  ;;  %v742_v30 = vsel %vm533_vm0, %v426_v20, 0 }
 0x172   : > { %v11028_v49 = vand.u32 4294901760, %v739_v58  ;;  %v745_v25 = vsel %vm533_vm0, %v427_v31, 0  ;;  %v11032_v38 = vand.u32 4294901760, %v742_v30  ;;  %v1620_v60 = vsub.f32 %v10998_v55, %v1619_v10 }
 0x173   : > { %13049 = vst [vmem:[#allocation121_spill] sm:$0xff] %v11024_v44  ;;  %v1639_v20 = vand.u32 4294901760, %v11015_v9  ;;  %v11039_v47 = vsub.f32 %v736_v54, %v11024_v44  ;;  %v1649_v31 = vand.u32 4294901760, %v11022_v34 }
 0x174   : > { %8001 = vmatmul.mubr.f32.gmra.mrb[56].mxu1 %v1561_v62  ;;  %8604 = vmatmul.mubr.f32.gmra.mrb[58].mxu0 %v1579_v50  ;;  %v428_v40 = vpop.trf.xlu0  ;;  %v11019_v53 = vpop.trf.xlu1  ;;  %v1629_v50 = vand.u32 4294901760, %v11005_v2  ;;  %13050 = vst [vmem:[#allocation122_spill] sm:$0xff] %v11028_v49  ;;  %13051 = vst [vmem:[#allocation123_spill] sm:$0xff] %v11032_v38  ;;  %v11051_v54 = vsub.f32 %v742_v30, %v11032_v38 }
 0x175   : > { %8003 = vmatprep.mubr.f32.mxu1 %v1571_v1  ;;  %8606 = vmatprep.mubr.f32.mxu0 %v1589_v15  ;;  %v1591_v1 = vand.u32 4294901760, %v1590_v32  ;;  %v1610_v15 = vsub.f32 %v10991_v56, %v1609_v13  ;;  %13052 = vst [vmem:[#allocation124_spill] sm:$0xff] %v11039_v47  ;;  %v1601_v32 = vand.u32 4294901760, %v1600_v42  ;;  %v1621_v42 = vand.u32 4294901760, %v1620_v60 }
 0x176   : > { %v1630_v56 = vsub.f32 %v11005_v2, %v1629_v50  ;;  %13055 = vst [vmem:[#allocation127_spill] sm:$0xff] %v11051_v54  ;;  %v1640_v2 = vsub.f32 %v11015_v9, %v1639_v20 }
 0x178   : > { %8004 = vmatmul.mubr.f32.gmra.mrb[58].mxu1 %v1581_v6  ;;  %8607 = vmatmul.mubr.f32.gmra.mrb[60].mxu0 %v1599_v26  ;;  %v429_v62 = vpop.trf.xlu0  ;;  %v11036_v33 = vpop.trf.xlu1  ;;  %v11044_v26 = vsub.f32 %v739_v58, %v11028_v49  ;;  %v11046_v6 = vand.u32 4294901760, %v745_v25  ;;  %v1631_v44 = vand.u32 4294901760, %v1630_v56  ;;  %v1641_v56 = vand.u32 4294901760, %v1640_v2 }
 0x179   : > { %8006 = vmatprep.mubr.f32.mxu1 %v1591_v1  ;;  %8609 = vmatprep.mubr.f32.mxu0 %v1609_v13  ;;  %v748_v13 = vsel %vm533_vm0, %v428_v40, 0  ;;  %v1611_v1 = vand.u32 4294901760, %v1610_v15  ;;  %v751_v55 = vsel %vm533_vm0, %v429_v62, 0  ;;  %v1659_v40 = vand.u32 4294901760, %v11039_v47 }
 0x17a   : > { %13053 = vst [vmem:[#allocation125_spill] sm:$0xff] %v11044_v26  ;;  %13054 = vst [vmem:[#allocation126_spill] sm:$0xff] %v11046_v6  ;;  %v11056_v49 = vand.u32 4294901760, %v748_v13  ;;  %v1650_v15 = vsub.f32 %v11022_v34, %v1649_v31  ;;  %v11063_v62 = vand.u32 4294901760, %v751_v55 }
 0x17c   : > { %8007 = vmatmul.mubr.f32.gmra.mrb[60].mxu1 %v1601_v32  ;;  %8610 = vmatmul.mubr.f32.gmra.mrb[62].mxu0 %v1619_v10  ;;  %v430_v5 = vpop.trf.xlu0  ;;  %v11054_v58 = vpop.trf.xlu1  ;;  %13056 = vst [vmem:[#allocation128_spill] sm:$0xff] %v11056_v49  ;;  %v11061_v10 = vsub.f32 %v745_v25, %v11046_v6  ;;  %13058 = vst [vmem:[#allocation130_spill] sm:$0xff] %v11063_v62  ;;  %v11073_v25 = vpack.c.bf16 %v10305_v19, %v10303_v18 }
 0x17d   : > { %8009 = vmatprep.mubr.f32.mxu1 %v1611_v1  ;;  %8612 = vmatprep.mubr.f32.mxu0 %v1629_v50  ;;  %v754_v30 = vsel %vm533_vm0, %v430_v5, 0  ;;  %v1669_v50 = vand.u32 4294901760, %v11044_v26  ;;  %v1679_v1 = vand.u32 4294901760, %v11051_v54  ;;  %v11076_v5 = vsub.f32 %v748_v13, %v11056_v49 }
 0x17e   : > { %13057 = vst [vmem:[#allocation129_spill] sm:$0xff] %v11061_v10  ;;  %v11078_v9 = vand.u32 4294901760, %v754_v30  ;;  %9125 = vmatprep.subr.bf16.mxu1 %v11073_v25 }
 0x17f   : > { %13059 = vst [vmem:[#allocation131_spill] sm:$0xff] %v11076_v5  ;;  %v1680_v13 = vsub.f32 %v11051_v54, %v1679_v1 }
 0x180   : > { %8010 = vmatmul.mubr.f32.gmra.mrb[62].mxu1 %v1621_v42  ;;  %8613 = vmatmul.mubr.f32.gmra.mrb[64].mxu0 %v1639_v20  ;;  %v431_v60 = vpop.trf.xlu0  ;;  %v11069_v34 = vpop.trf.xlu1  ;;  %13060 = vst [vmem:[#allocation132_spill] sm:$0xff] %v11078_v9  ;;  %v1651_v20 = vand.u32 4294901760, %v1650_v15  ;;  %v1660_v42 = vsub.f32 %v11039_v47, %v1659_v40 }
 0x181   : > { %v757_v32 = vsel %vm533_vm0, %v431_v60, 0  ;;  %8012 = vmatprep.mubr.f32.mxu1 %v1631_v44  ;;  %8615 = vmatprep.mubr.f32.mxu0 %v1649_v31  ;;  %v11082_v44 = vsub.f32 %v751_v55, %v11063_v62  ;;  %v1670_v31 = vsub.f32 %v11044_v26, %v1669_v50  ;;  %v1689_v60 = vand.u32 4294901760, %v11061_v10 }
 0x182   : > { %v11084_v2 = vand.u32 4294901760, %v757_v32  ;;  %v11094_v55 = vsub.f32 %v754_v30, %v11078_v9  ;;  %v1661_v26 = vand.u32 4294901760, %v1660_v42  ;;  %v1699_v62 = vand.u32 4294901760, %v11076_v5 }
 0x183   : > { %13061 = vst [vmem:[#allocation133_spill] sm:$0xff] %v11082_v44  ;;  %v1681_v30 = vand.u32 4294901760, %v1680_v13 }
 0x184   : > { %13062 = vst [vmem:[#allocation134_spill] sm:$0xff] %v11084_v2  ;;  %8013 = vmatmul.mubr.f32.gmra.mrb[64].mxu1 %v1641_v56  ;;  %8616 = vmatmul.mubr.f32.gmra.mrb[66].mxu0 %v1659_v40  ;;  %v432_v18 = vpop.trf.xlu0  ;;  %v11091_v15 = vpop.trf.xlu1  ;;  %13063 = vst [vmem:[#allocation135_spill] sm:$0xff] %v11094_v55  ;;  %v11100_v56 = vsub.f32 %v757_v32, %v11084_v2  ;;  %v1671_v40 = vand.u32 4294901760, %v1670_v31  ;;  %v1700_v31 = vsub.f32 %v11076_v5, %v1699_v62 }
 0x185   : > { %v760_v19 = vsel %vm533_vm0, %v432_v18, 0  ;;  %8015 = vmatprep.mubr.f32.mxu1 %v1651_v20  ;;  %8618 = vmatprep.mubr.f32.mxu0 %v1669_v50  ;;  %v1690_v18 = vsub.f32 %v11061_v10, %v1689_v60  ;;  %v1709_v50 = vand.u32 4294901760, %v11082_v44  ;;  %v1719_v10 = vand.u32 4294901760, %v11094_v55 }
 0x186   : > { %v11096_v47 = vand.u32 4294901760, %v760_v19  ;;  %13065 = vst [vmem:[#allocation137_spill] sm:$0xff] %v11100_v56  ;;  %v1701_v5 = vand.u32 4294901760, %v1700_v31 }
 0x187   : > { %v1691_v2 = vand.u32 4294901760, %v1690_v18 }
 0x188   : > { %13064 = vst [vmem:[#allocation136_spill] sm:$0xff] %v11096_v47  ;;  %8016 = vmatmul.mubr.f32.gmra.mrb[66].mxu1 %v1661_v26  ;;  %8619 = vmatmul.mubr.f32.gmra.mrb[68].mxu0 %v1679_v1  ;;  %v433_v20 = vpop.trf.xlu0  ;;  %v11105_v9 = vpop.trf.xlu1  ;;  %v11108_v42 = vsub.f32 %v760_v19, %v11096_v47  ;;  %v1710_v26 = vsub.f32 %v11082_v44, %v1709_v50  ;;  %v1729_v1 = vand.u32 4294901760, %v11100_v56 }
 0x189   : > { %v763_v54 = vsel %vm533_vm0, %v433_v20, 0  ;;  %8018 = vmatprep.mubr.f32.mxu1 %v1671_v40  ;;  %8621 = vmatprep.mubr.f32.mxu0 %v1689_v60  ;;  %v775_v60 = vsel %vm533_vm0, %v10876_v4, 0  ;;  %v778_v40 = vsel %vm533_vm0, %v10898_v23, 0  ;;  %v1720_v4 = vsub.f32 %v11094_v55, %v1719_v10 }
 0x18a   : > { %13066 = vst [vmem:[#allocation138_spill] sm:$0xff] %v11108_v42  ;;  %v11110_v32 = vand.u32 4294901760, %v763_v54  ;;  %v11134_v47 = vand.u32 4294901760, %v778_v40 }
 0x18b   : > { %v1721_v49 = vand.u32 4294901760, %v1720_v4 }
 0x18c   : > { %13067 = vst [vmem:[#allocation139_spill] sm:$0xff] %v11110_v32  ;;  %v11119_v13 = vsub.f32 %v763_v54, %v11110_v32  ;;  %8019 = vmatmul.mubr.f32.gmra.mrb[68].mxu1 %v1681_v30  ;;  %8622 = vmatmul.mubr.f32.gmra.mrb[70].mxu0 %v1699_v62  ;;  %v434_v19 = vpop.trf.xlu0  ;;  %v11124_v18 = vpop.trf.xlu1  ;;  %v1739_v54 = vand.u32 4294901760, %v11108_v42  ;;  %v11130_v32 = vand.u32 4294901760, %v775_v60  ;;  %v1711_v62 = vand.u32 4294901760, %v1710_v26  ;;  %13071 = vst [vmem:[#allocation143_spill] sm:$0xff] %v11134_v47 }
 0x18d   : > { %v766_v20 = vsel %vm533_vm0, %v434_v19, 0  ;;  %8021 = vmatprep.mubr.f32.mxu1 %v1691_v2  ;;  %8624 = vmatprep.mubr.f32.mxu0 %v1709_v50  ;;  %v1730_v30 = vsub.f32 %v11100_v56, %v1729_v1  ;;  %v781_v2 = vsel %vm533_vm0, %v10918_v48, 0  ;;  %v784_v19 = vsel %vm533_vm0, %v10939_v8, 0 }
 0x18e   : > { %13068 = vst [vmem:[#allocation140_spill] sm:$0xff] %v11119_v13  ;;  %v11126_v44 = vand.u32 4294901760, %v766_v20  ;;  %13070 = vst [vmem:[#allocation142_spill] sm:$0xff] %v11130_v32  ;;  %v1749_v23 = vand.u32 4294901760, %v11119_v13  ;;  %v1740_v48 = vsub.f32 %v11108_v42, %v1739_v54  ;;  %v11164_v42 = vand.u32 4294901760, %v784_v19 }
 0x190   : > { %13069 = vst [vmem:[#allocation141_spill] sm:$0xff] %v11126_v44  ;;  %v11139_v50 = vsub.f32 %v766_v20, %v11126_v44  ;;  %8022 = vmatmul.mubr.f32.gmra.mrb[70].mxu1 %v1701_v5  ;;  %8625 = vmatmul.mubr.f32.gmra.mrb[72].mxu0 %v1719_v10  ;;  %v435_v31 = vpop.trf.xlu0  ;;  %v11144_v56 = vpop.trf.xlu1  ;;  %v11151_v5 = vsub.f32 %v775_v60, %v11130_v32  ;;  %v11153_v10 = vand.u32 4294901760, %v781_v2  ;;  %v1731_v44 = vand.u32 4294901760, %v1730_v30 }
 0x191   : > { %v769_v26 = vsel %vm533_vm0, %v435_v31, 0  ;;  %8024 = vmatprep.mubr.f32.mxu1 %v1711_v62  ;;  %8627 = vmatprep.mubr.f32.mxu0 %v1729_v1  ;;  %v1750_v8 = vsub.f32 %v11119_v13, %v1749_v23  ;;  %v11157_v62 = vsub.f32 %v778_v40, %v11134_v47  ;;  %v787_v1 = vsel %vm533_vm0, %v10961_v36, 0  ;;  %13078 = vst [vmem:[#allocation150_spill] sm:$0xff] %v11164_v42 }
 0x192   : > { %13072 = vst [vmem:[#allocation144_spill] sm:$0xff] %v11139_v50  ;;  %v11146_v55 = vand.u32 4294901760, %v769_v26  ;;  %v1759_v20 = vand.u32 4294901760, %v11139_v50  ;;  %13074 = vst [vmem:[#allocation146_spill] sm:$0xff] %v11151_v5  ;;  %v790_v60 = vsel %vm533_vm0, %v10981_v24, 0  ;;  %v793_v30 = vsel %vm533_vm0, %v11002_v22, 0 }
 0x193   : > { %13075 = vst [vmem:[#allocation147_spill] sm:$0xff] %v11153_v10  ;;  %13076 = vst [vmem:[#allocation148_spill] sm:$0xff] %v11157_v62  ;;  %v11178_v47 = vsub.f32 %v781_v2, %v11153_v10  ;;  %v11180_v24 = vand.u32 4294901760, %v787_v1  ;;  %v1751_v32 = vand.u32 4294901760, %v1750_v8  ;;  %v1789_v22 = vand.u32 4294901760, %v11151_v5 }
 0x194   : > { %13073 = vst [vmem:[#allocation145_spill] sm:$0xff] %v11146_v55  ;;  %v11162_v4 = vsub.f32 %v769_v26, %v11146_v55  ;;  %8025 = vmatmul.mubr.f32.gmra.mrb[72].mxu1 %v1721_v49  ;;  %8628 = vmatmul.mubr.f32.gmra.mrb[74].mxu0 %v1739_v54  ;;  %v436_v31 = vpop.trf.xlu0  ;;  %v11171_v13 = vpop.trf.xlu1  ;;  %v1741_v26 = vand.u32 4294901760, %v1740_v48  ;;  %v1760_v54 = vsub.f32 %v11139_v50, %v1759_v20  ;;  %v11192_v50 = vand.u32 4294901760, %v790_v60 }
 0x195   : > { %v772_v40 = vsel %vm533_vm0, %v436_v31, 0  ;;  %8027 = vmatprep.mubr.f32.mxu1 %v1731_v44  ;;  %8630 = vmatprep.mubr.f32.mxu0 %v1749_v23  ;;  %13080 = vst [vmem:[#allocation152_spill] sm:$0xff] %v11178_v47  ;;  %13081 = vst [vmem:[#allocation153_spill] sm:$0xff] %v11180_v24  ;;  %v11190_v31 = vsub.f32 %v784_v19, %v11164_v42  ;;  %v11194_v2 = vand.u32 4294901760, %v793_v30  ;;  %v1799_v8 = vand.u32 4294901760, %v11157_v62 }
 0x196   : > { %13077 = vst [vmem:[#allocation149_spill] sm:$0xff] %v11162_v4  ;;  %v11173_v36 = vand.u32 4294901760, %v772_v40  ;;  %v1769_v49 = vand.u32 4294901760, %v11162_v4  ;;  %13084 = vst [vmem:[#allocation156_spill] sm:$0xff] %v11192_v50  ;;  %v11203_v19 = vsub.f32 %v787_v1, %v11180_v24  ;;  %v799_v42 = vsel %vm533_vm0, %v11036_v33, 0 }
 0x197   : > { %13083 = vst [vmem:[#allocation155_spill] sm:$0xff] %v11190_v31  ;;  %13085 = vst [vmem:[#allocation157_spill] sm:$0xff] %v11194_v2  ;;  %v1800_v1 = vsub.f32 %v11157_v62, %v1799_v8  ;;  %v1819_v33 = vand.u32 4294901760, %v11190_v31  ;;  %v11224_v24 = vand.u32 4294901760, %v799_v42 }
 0x198   : > { %13079 = vst [vmem:[#allocation151_spill] sm:$0xff] %v11173_v36  ;;  %v11184_v44 = vsub.f32 %v772_v40, %v11173_v36  ;;  %8028 = vmatmul.mubr.f32.gmra.mrb[74].mxu1 %v1741_v26  ;;  %8631 = vmatmul.mubr.f32.gmra.mrb[76].mxu0 %v1759_v20  ;;  %v11186_v23 = vpop.trf.xlu0  ;;  %v1770_v48 = vsub.f32 %v11162_v4, %v1769_v49  ;;  %v11197_v10 = vpop.trf.xlu1  ;;  %v796_v20 = vsel %vm533_vm0, %v11019_v53, 0  ;;  %v1761_v40 = vand.u32 4294901760, %v1760_v54 }
 0x199   : > { %8030 = vmatprep.mubr.f32.mxu1 %v1751_v32  ;;  %8633 = vmatprep.mubr.f32.mxu0 %v1769_v49  ;;  %13086 = vst [vmem:[#allocation158_spill] sm:$0xff] %v11203_v19  ;;  %v1790_v32 = vsub.f32 %v11151_v5, %v1789_v22  ;;  %v1809_v49 = vand.u32 4294901760, %v11178_v47  ;;  %v11213_v54 = vsub.f32 %v790_v60, %v11192_v50  ;;  %13090 = vst [vmem:[#allocation162_spill] sm:$0xff] %v11224_v24 }
 0x19a   : > { %13082 = vst [vmem:[#allocation154_spill] sm:$0xff] %v11184_v44  ;;  %v1779_v26 = vand.u32 4294901760, %v11184_v44  ;;  %v1771_v4 = vand.u32 4294901760, %v1770_v48  ;;  %v11215_v48 = vand.u32 4294901760, %v796_v20  ;;  %v802_v60 = vsel %vm533_vm0, %v11054_v58, 0 }
 0x19b   : > { %13087 = vst [vmem:[#allocation159_spill] sm:$0xff] %v11213_v54  ;;  %v1820_v58 = vsub.f32 %v11190_v31, %v1819_v33 }
 0x19c   : > { %8031 = vmatmul.mubr.f32.gmra.mrb[76].mxu1 %v1761_v40  ;;  %8634 = vmatmul.mubr.f32.gmra.mrb[78].mxu0 %v1779_v26  ;;  %v11209_v36 = vpop.trf.xlu0  ;;  %v1780_v53 = vsub.f32 %v11184_v44, %v1779_v26  ;;  %13088 = vst [vmem:[#allocation160_spill] sm:$0xff] %v11215_v48  ;;  %v11219_v5 = vpop.trf.xlu1  ;;  %v11222_v40 = vsub.f32 %v793_v30, %v11194_v2  ;;  %v1791_v26 = vand.u32 4294901760, %v1790_v32  ;;  %v1839_v32 = vand.u32 4294901760, %v11213_v54 }
 0x19d   : > { %8033 = vmatprep.mubr.f32.mxu1 %v1771_v4  ;;  %8636 = vmatprep.mubr.f32.mxu0 %v1789_v22  ;;  %v1810_v44 = vsub.f32 %v11178_v47, %v1809_v49  ;;  %v1829_v4 = vand.u32 4294901760, %v11203_v19  ;;  %v805_v22 = vsel %vm533_vm0, %v11069_v34, 0  ;;  %v11235_v30 = vsub.f32 %v796_v20, %v11215_v48 }
 0x19e   : > { %13089 = vst [vmem:[#allocation161_spill] sm:$0xff] %v11222_v40  ;;  %v1781_v55 = vand.u32 4294901760, %v1780_v53  ;;  %v1801_v53 = vand.u32 4294901760, %v1800_v1  ;;  %v11242_v2 = vsub.f32 %v799_v42, %v11224_v24  ;;  %v11244_v34 = vand.u32 4294901760, %v802_v60 }
 0x19f   : > { %13091 = vst [vmem:[#allocation163_spill] sm:$0xff] %v11235_v30  ;;  %v11249_v20 = vand.u32 4294901760, %v805_v22  ;;  %v1830_v1 = vsub.f32 %v11203_v19, %v1829_v4  ;;  %v1821_v24 = vand.u32 4294901760, %v1820_v58  ;;  %v1859_v48 = vand.u32 4294901760, %v11235_v30 }
 0x1a0   : > { %8034 = vmatmul.mubr.f32.gmra.mrb[78].mxu1 %v1781_v55  ;;  %8637 = vmatmul.mubr.f32.gmra.mrb[80].mxu0 %v1799_v8  ;;  %v11232_v62 = vpop.trf.xlu0  ;;  %v11239_v47 = vpop.trf.xlu1  ;;  %13092 = vst [vmem:[#allocation164_spill] sm:$0xff] %v11242_v2  ;;  %13093 = vst [vmem:[#allocation165_spill] sm:$0xff] %v11244_v34  ;;  %v808_v55 = vsel %vm533_vm0, %v11091_v15, 0  ;;  %v1849_v8 = vand.u32 4294901760, %v11222_v40  ;;  %v1840_v15 = vsub.f32 %v11213_v54, %v1839_v32 }
 0x1a1   : > { %8036 = vmatprep.mubr.f32.mxu1 %v1791_v26  ;;  %8639 = vmatprep.mubr.f32.mxu0 %v1809_v49  ;;  %13094 = vst [vmem:[#allocation166_spill] sm:$0xff] %v11249_v20  ;;  %v1811_v49 = vand.u32 4294901760, %v1810_v44  ;;  %v811_v26 = vsel %vm533_vm0, %v11105_v9, 0  ;;  %v11256_v42 = vand.u32 4294901760, %v808_v55  ;;  %v11263_v44 = vsub.f32 %v802_v60, %v11244_v34 }
 0x1a2   : > { %v814_v9 = vsel %vm533_vm0, %v11124_v18, 0  ;;  %v1831_v58 = vand.u32 4294901760, %v1830_v1  ;;  %v817_v60 = vsel %vm533_vm0, %v11144_v56, 0 }
 0x1a3   : > { %13095 = vst [vmem:[#allocation167_spill] sm:$0xff] %v11256_v42  ;;  %13096 = vst [vmem:[#allocation168_spill] sm:$0xff] %v11263_v44  ;;  %v11277_v19 = vsub.f32 %v808_v55, %v11256_v42  ;;  %v11279_v18 = vand.u32 4294901760, %v814_v9  ;;  %v823_v55 = vsel %vm533_vm0, %v11186_v23, 0 }
 0x1a4   : > { %8037 = vmatmul.mubr.f32.gmra.mrb[80].mxu1 %v1801_v53  ;;  %8640 = vmatmul.mubr.f32.gmra.mrb[82].mxu0 %v1819_v33  ;;  %v11254_v31 = vpop.trf.xlu0  ;;  %v11260_v50 = vpop.trf.xlu1  ;;  %v1850_v33 = vsub.f32 %v11222_v40, %v1849_v8  ;;  %v1869_v53 = vand.u32 4294901760, %v11242_v2  ;;  %v1841_v40 = vand.u32 4294901760, %v1840_v15 }
 0x1a5   : > { %8039 = vmatprep.mubr.f32.mxu1 %v1811_v49  ;;  %8642 = vmatprep.mubr.f32.mxu0 %v1829_v4  ;;  %v11270_v49 = vsub.f32 %v805_v22, %v11249_v20  ;;  %v11272_v4 = vand.u32 4294901760, %v811_v26  ;;  %13099 = vst [vmem:[#allocation171_spill] sm:$0xff] %v11277_v19  ;;  %13100 = vst [vmem:[#allocation172_spill] sm:$0xff] %v11279_v18  ;;  %v1860_v22 = vsub.f32 %v11235_v30, %v1859_v48 }
 0x1a6   : > { %v1851_v34 = vand.u32 4294901760, %v1850_v33  ;;  %v1870_v56 = vsub.f32 %v11242_v2, %v1869_v53  ;;  %v1899_v23 = vand.u32 4294901760, %v11277_v19 }
 0x1a7   : > { %13097 = vst [vmem:[#allocation169_spill] sm:$0xff] %v11270_v49  ;;  %13098 = vst [vmem:[#allocation170_spill] sm:$0xff] %v11272_v4  ;;  %v11291_v1 = vsub.f32 %v811_v26, %v11272_v4  ;;  %v1889_v15 = vand.u32 4294901760, %v11270_v49  ;;  %v1861_v2 = vand.u32 4294901760, %v1860_v22  ;;  %v11304_v26 = vand.u32 4294901760, %v823_v55 }
 0x1a8   : > { %8040 = vmatmul.mubr.f32.gmra.mrb[82].mxu1 %v1821_v24  ;;  %8643 = vmatmul.mubr.f32.gmra.mrb[84].mxu0 %v1839_v32  ;;  %v489_v54 = vpop.trf.xlu0  ;;  %v11282_v20 = vpop.trf.xlu1  ;;  %v820_v24 = vsel %vm533_vm0, %v11171_v13, 0  ;;  %v1879_v32 = vand.u32 4294901760, %v11263_v44  ;;  %v826_v4 = vsel %vm533_vm0, %v11209_v36, 0 }
 0x1a9   : > { %8042 = vmatprep.mubr.f32.mxu1 %v1831_v58  ;;  %8645 = vmatprep.mubr.f32.mxu0 %v1849_v8  ;;  %13101 = vst [vmem:[#allocation173_spill] sm:$0xff] %v11291_v1  ;;  %v11293_v8 = vand.u32 4294901760, %v817_v60  ;;  %v11297_v58 = vsub.f32 %v814_v9, %v11279_v18  ;;  %v11299_v13 = vand.u32 4294901760, %v820_v24  ;;  %13105 = vst [vmem:[#allocation177_spill] sm:$0xff] %v11304_v26  ;;  %v829_v9 = vsel %vm533_vm0, %v11232_v62, 0 }
 0x1aa   : > { %v1909_v22 = vand.u32 4294901760, %v11291_v1  ;;  %v11316_v42 = vand.u32 4294901760, %v826_v4 }
 0x1ab   : > { %13102 = vst [vmem:[#allocation174_spill] sm:$0xff] %v11293_v8  ;;  %13103 = vst [vmem:[#allocation175_spill] sm:$0xff] %v11297_v58  ;;  %v11319_v36 = vsub.f32 %v820_v24, %v11299_v13  ;;  %v1919_v62 = vand.u32 4294901760, %v11297_v58 }
 0x1ac   : > { %8043 = vmatmul.mubr.f32.gmra.mrb[84].mxu1 %v1841_v40  ;;  %8646 = vmatmul.mubr.f32.gmra.mrb[86].mxu0 %v1859_v48  ;;  %v490_v33 = vpop.trf.xlu0  ;;  %13104 = vst [vmem:[#allocation176_spill] sm:$0xff] %v11299_v13  ;;  %v11302_v30 = vpop.trf.xlu1  ;;  %v1871_v40 = vand.u32 4294901760, %v1870_v56  ;;  %v1880_v48 = vsub.f32 %v11263_v44, %v1879_v32  ;;  %13107 = vst [vmem:[#allocation179_spill] sm:$0xff] %v11316_v42  ;;  %v1900_v56 = vsub.f32 %v11277_v19, %v1899_v23 }
 0x1ad   : > { %8045 = vmatprep.mubr.f32.mxu1 %v1851_v34  ;;  %8648 = vmatprep.mubr.f32.mxu0 %v1869_v53  ;;  %v11312_v34 = vsub.f32 %v817_v60, %v11293_v8  ;;  %v1890_v53 = vsub.f32 %v11270_v49, %v1889_v15  ;;  %13108 = vst [vmem:[#allocation180_spill] sm:$0xff] %v11319_v36  ;;  %v11326_v49 = vand.u32 4294901760, %v829_v9 }
 0x1ae   : > { %v11324_v60 = vsub.f32 %v823_v55, %v11304_v26  ;;  %v1881_v44 = vand.u32 4294901760, %v1880_v48  ;;  %v1910_v24 = vsub.f32 %v11291_v1, %v1909_v22  ;;  %v11336_v55 = vsub.f32 %v826_v4, %v11316_v42 }
 0x1af   : > { %13106 = vst [vmem:[#allocation178_spill] sm:$0xff] %v11312_v34  ;;  %13110 = vst [vmem:[#allocation182_spill] sm:$0xff] %v11326_v49  ;;  %v1891_v8 = vand.u32 4294901760, %v1890_v53  ;;  %v1901_v48 = vand.u32 4294901760, %v1900_v56  ;;  %v1920_v26 = vsub.f32 %v11297_v58, %v1919_v62  ;;  %v11341_v53 = vsub.f32 %v829_v9, %v11326_v49 }
 0x1b0   : > { %8046 = vmatmul.mubr.f32.gmra.mrb[86].mxu1 %v1861_v2  ;;  %8649 = vmatmul.mubr.f32.gmra.mrb[88].mxu0 %v1879_v32  ;;  %v491_v18 = vpop.trf.xlu0  ;;  %13109 = vst [vmem:[#allocation181_spill] sm:$0xff] %v11324_v60  ;;  %v11328_v2 = vpop.trf.xlu1  ;;  %v832_v32 = vsel %vm533_vm0, %v11254_v31, 0  ;;  %13111 = vst [vmem:[#allocation183_spill] sm:$0xff] %v11336_v55  ;;  %v1939_v31 = vand.u32 4294901760, %v11319_v36  ;;  %v1911_v4 = vand.u32 4294901760, %v1910_v24  ;;  %v1959_v49 = vand.u32 4294901760, %v11336_v55 }
 0x1b1   : > { %8048 = vmatprep.mubr.f32.mxu1 %v1871_v40  ;;  %8651 = vmatprep.mubr.f32.mxu0 %v1889_v15  ;;  %v1929_v15 = vand.u32 4294901760, %v11312_v34  ;;  %v835_v40 = vsel %vm533_vm0, %v489_v54, 0  ;;  %13112 = vst [vmem:[#allocation184_spill] sm:$0xff] %v11341_v53  ;;  %v11343_v1 = vand.u32 4294901760, %v832_v32  ;;  %v838_v54 = vsel %vm533_vm0, %v490_v33, 0 }
 0x1b2   : > { %v11353_v9 = vand.u32 4294901760, %v838_v54  ;;  %v1940_v33 = vsub.f32 %v11319_v36, %v1939_v31  ;;  %v1921_v24 = vand.u32 4294901760, %v1920_v26 }
 0x1b3   : > { %13113 = vst [vmem:[#allocation185_spill] sm:$0xff] %v11343_v1  ;;  %v11358_v42 = vsub.f32 %v832_v32, %v11343_v1 }
 0x1b4   : > { %8049 = vmatmul.mubr.f32.gmra.mrb[88].mxu1 %v1881_v44  ;;  %8652 = vmatmul.mubr.f32.gmra.mrb[90].mxu0 %v1899_v23  ;;  %v492_v19 = vpop.trf.xlu0  ;;  %v1949_v44 = vand.u32 4294901760, %v11324_v60  ;;  %v11347_v23 = vand.u32 4294901760, %v835_v40  ;;  %v11351_v58 = vpop.trf.xlu1  ;;  %13115 = vst [vmem:[#allocation187_spill] sm:$0xff] %v11353_v9  ;;  %v11370_v32 = vsub.f32 %v838_v54, %v11353_v9  ;;  %v1941_v26 = vand.u32 4294901760, %v1940_v33 }
 0x1b5   : > { %8051 = vmatprep.mubr.f32.mxu1 %v1891_v8  ;;  %8654 = vmatprep.mubr.f32.mxu0 %v1909_v22  ;;  %v1930_v8 = vsub.f32 %v11312_v34, %v1929_v15  ;;  %v841_v22 = vsel %vm533_vm0, %v491_v18, 0  ;;  %13116 = vst [vmem:[#allocation188_spill] sm:$0xff] %v11358_v42  ;;  %v1969_v18 = vand.u32 4294901760, %v11341_v53  ;;  %v1979_v1 = vand.u32 4294901760, %v11358_v42 }
 0x1b6   : > { %13114 = vst [vmem:[#allocation186_spill] sm:$0xff] %v11347_v23  ;;  %v1950_v34 = vsub.f32 %v11324_v60, %v1949_v44  ;;  %13119 = vst [vmem:[#allocation191_spill] sm:$0xff] %v11370_v32  ;;  %v1960_v60 = vsub.f32 %v11336_v55, %v1959_v49 }
 0x1b8   : > { %8052 = vmatmul.mubr.f32.gmra.mrb[90].mxu1 %v1901_v48  ;;  %8655 = vmatmul.mubr.f32.gmra.mrb[92].mxu0 %v1919_v62  ;;  %v493_v56 = vpop.trf.xlu0  ;;  %v11363_v62 = vsub.f32 %v835_v40, %v11347_v23  ;;  %v11365_v48 = vand.u32 4294901760, %v841_v22  ;;  %v1951_v23 = vand.u32 4294901760, %v1950_v34 }
 0x1b9   : > { %8054 = vmatprep.mubr.f32.mxu1 %v1911_v4  ;;  %8657 = vmatprep.mubr.f32.mxu0 %v1929_v15  ;;  %v844_v4 = vsel %vm533_vm0, %v492_v19, 0  ;;  %v1931_v15 = vand.u32 4294901760, %v1930_v8  ;;  %v847_v36 = vsel %vm533_vm0, %v493_v56, 0  ;;  %v1970_v19 = vsub.f32 %v11341_v53, %v1969_v18  ;;  %v11377_v8 = vpop.trf.xlu1 }
 0x1ba   : > { %13117 = vst [vmem:[#allocation189_spill] sm:$0xff] %v11363_v62  ;;  %13118 = vst [vmem:[#allocation190_spill] sm:$0xff] %v11365_v48  ;;  %v11373_v40 = vand.u32 4294901760, %v844_v4  ;;  %v11382_v56 = vand.u32 4294901760, %v847_v36 }
 0x1bb   : > { %v1971_v55 = vand.u32 4294901760, %v1970_v19 }
 0x1bc   : > { %8055 = vmatmul.mubr.f32.gmra.mrb[92].mxu1 %v1921_v24  ;;  %8658 = vmatmul.mubr.f32.gmra.mrb[94].mxu0 %v1939_v31  ;;  %v494_v13 = vpop.trf.xlu0  ;;  %v11380_v31 = vsub.f32 %v841_v22, %v11365_v48  ;;  %13121 = vst [vmem:[#allocation193_spill] sm:$0xff] %v11382_v56  ;;  %v1961_v24 = vand.u32 4294901760, %v1960_v60  ;;  %v11389_v53 = vsub.f32 %v844_v4, %v11373_v40 }
 0x1bd   : > { %8057 = vmatprep.mubr.f32.mxu1 %v1931_v15  ;;  %8660 = vmatprep.mubr.f32.mxu0 %v1949_v44  ;;  %v850_v54 = vsel %vm533_vm0, %v494_v13, 0  ;;  %v1989_v44 = vand.u32 4294901760, %v11363_v62  ;;  %v1999_v15 = vand.u32 4294901760, %v11370_v32  ;;  %v1980_v13 = vsub.f32 %v11358_v42, %v1979_v1 }
 0x1be   : > { %13120 = vst [vmem:[#allocation192_spill] sm:$0xff] %v11380_v31  ;;  %13122 = vst [vmem:[#allocation194_spill] sm:$0xff] %v11389_v53  ;;  %v11391_v22 = vand.u32 4294901760, %v850_v54  ;;  %v11395_v48 = vsub.f32 %v847_v36, %v11382_v56 }
 0x1bf   : > { %v2000_v19 = vsub.f32 %v11370_v32, %v1999_v15  ;;  %v1981_v42 = vand.u32 4294901760, %v1980_v13 }
 0x1c0   : > { %8058 = vmatmul.mubr.f32.gmra.mrb[94].mxu1 %v1941_v26  ;;  %8661 = vmatmul.mubr.f32.gmra.mrb[96].mxu0 %v1959_v49  ;;  %v495_v33 = vpop.trf.xlu0  ;;  %13123 = vst [vmem:[#allocation195_spill] sm:$0xff] %v11391_v22  ;;  %13124 = vst [vmem:[#allocation196_spill] sm:$0xff] %v11395_v48  ;;  %v1990_v26 = vsub.f32 %v11363_v62, %v1989_v44  ;;  %v11406_v36 = vsub.f32 %v850_v54, %v11391_v22  ;;  %v2019_v62 = vand.u32 4294901760, %v11389_v53 }
 0x1c1   : > { %v853_v34 = vsel %vm533_vm0, %v495_v33, 0  ;;  %8060 = vmatprep.mubr.f32.mxu1 %v1951_v23  ;;  %8663 = vmatprep.mubr.f32.mxu0 %v1969_v18  ;;  %v2009_v23 = vand.u32 4294901760, %v11380_v31  ;;  %v11401_v18 = vpop.trf.xlu1  ;;  %v2001_v54 = vand.u32 4294901760, %v2000_v19 }
 0x1c2   : > { %v11397_v49 = vand.u32 4294901760, %v853_v34  ;;  %13126 = vst [vmem:[#allocation198_spill] sm:$0xff] %v11406_v36 }
 0x1c3   : > { %v2010_v56 = vsub.f32 %v11380_v31, %v2009_v23 }
 0x1c4   : > { %13125 = vst [vmem:[#allocation197_spill] sm:$0xff] %v11397_v49  ;;  %8061 = vmatmul.mubr.f32.gmra.mrb[96].mxu1 %v1961_v24  ;;  %8664 = vmatmul.mubr.f32.gmra.mrb[98].mxu0 %v1979_v1  ;;  %v496_v60 = vpop.trf.xlu0  ;;  %v11412_v24 = vsub.f32 %v853_v34, %v11397_v49  ;;  %v1991_v1 = vand.u32 4294901760, %v1990_v26  ;;  %v2020_v34 = vsub.f32 %v11389_v53, %v2019_v62  ;;  %v2039_v26 = vand.u32 4294901760, %v11406_v36 }
 0x1c5   : > { %v856_v4 = vsel %vm533_vm0, %v496_v60, 0  ;;  %8063 = vmatprep.mubr.f32.mxu1 %v1971_v55  ;;  %8666 = vmatprep.mubr.f32.mxu0 %v1989_v44  ;;  %v2029_v60 = vand.u32 4294901760, %v11395_v48  ;;  %v11424_v31 = vpop.trf.xlu1  ;;  %v2011_v49 = vand.u32 4294901760, %v2010_v56 }
 0x1c6   : > { %v11408_v33 = vand.u32 4294901760, %v856_v4  ;;  %13128 = vst [vmem:[#allocation200_spill] sm:$0xff] %v11412_v24  ;;  %v2040_v53 = vsub.f32 %v11406_v36, %v2039_v26 }
 0x1c8   : > { %13127 = vst [vmem:[#allocation199_spill] sm:$0xff] %v11408_v33  ;;  %8064 = vmatmul.mubr.f32.gmra.mrb[98].mxu1 %v1981_v42  ;;  %8667 = vmatmul.mubr.f32.gmra.mrb[100].mxu0 %v1999_v15  ;;  %v497_v55 = vpop.trf.xlu0  ;;  %v11418_v13 = vsub.f32 %v856_v4, %v11408_v33  ;;  %v2030_v42 = vsub.f32 %v11395_v48, %v2029_v60  ;;  %v2049_v15 = vand.u32 4294901760, %v11412_v24  ;;  %v2021_v48 = vand.u32 4294901760, %v2020_v34 }
 0x1c9   : > { %v859_v44 = vsel %vm533_vm0, %v497_v55, 0  ;;  %8066 = vmatprep.mubr.f32.mxu1 %v1991_v1  ;;  %8669 = vmatprep.mubr.f32.mxu0 %v2009_v23  ;;  %v871_v23 = vsel %vm533_vm0, %v11197_v10, 0  ;;  %v874_v1 = vsel %vm533_vm0, %v11219_v5, 0  ;;  %v877_v5 = vsel %vm533_vm0, %v11239_v47, 0  ;;  %v11451_v34 = vpop.trf.xlu1 }
 0x1ca   : > { %13129 = vst [vmem:[#allocation201_spill] sm:$0xff] %v11418_v13  ;;  %v11420_v32 = vand.u32 4294901760, %v859_v44  ;;  %v2059_v10 = vand.u32 4294901760, %v11418_v13  ;;  %v11440_v33 = vand.u32 4294901760, %v871_v23  ;;  %v2041_v36 = vand.u32 4294901760, %v2040_v53 }
 0x1cc   : > { %13130 = vst [vmem:[#allocation202_spill] sm:$0xff] %v11420_v32  ;;  %v11431_v19 = vsub.f32 %v859_v44, %v11420_v32  ;;  %8067 = vmatmul.mubr.f32.gmra.mrb[100].mxu1 %v2001_v54  ;;  %8670 = vmatmul.mubr.f32.gmra.mrb[102].mxu0 %v2019_v62  ;;  %v498_v4 = vpop.trf.xlu0  ;;  %13133 = vst [vmem:[#allocation205_spill] sm:$0xff] %v11440_v33  ;;  %v2031_v44 = vand.u32 4294901760, %v2030_v42  ;;  %v2050_v62 = vsub.f32 %v11412_v24, %v2049_v15 }
 0x1cd   : > { %v862_v55 = vsel %vm533_vm0, %v498_v4, 0  ;;  %8069 = vmatprep.mubr.f32.mxu1 %v2011_v49  ;;  %8672 = vmatprep.mubr.f32.mxu0 %v2029_v60  ;;  %v11444_v32 = vand.u32 4294901760, %v874_v1  ;;  %v880_v42 = vsel %vm533_vm0, %v11260_v50, 0  ;;  %v2060_v47 = vsub.f32 %v11418_v13, %v2059_v10 }
 0x1ce   : > { %13131 = vst [vmem:[#allocation203_spill] sm:$0xff] %v11431_v19  ;;  %v11436_v56 = vand.u32 4294901760, %v862_v55  ;;  %v2069_v54 = vand.u32 4294901760, %v11431_v19 }
 0x1cf   : > { %13134 = vst [vmem:[#allocation206_spill] sm:$0xff] %v11444_v32  ;;  %v11467_v50 = vsub.f32 %v874_v1, %v11444_v32 }
 0x1d0   : > { %13132 = vst [vmem:[#allocation204_spill] sm:$0xff] %v11436_v56  ;;  %v11449_v49 = vsub.f32 %v862_v55, %v11436_v56  ;;  %8070 = vmatmul.mubr.f32.gmra.mrb[102].mxu1 %v2021_v48  ;;  %8673 = vmatmul.mubr.f32.gmra.mrb[104].mxu0 %v2039_v26  ;;  %v499_v60 = vpop.trf.xlu0  ;;  %v11461_v48 = vsub.f32 %v871_v23, %v11440_v33  ;;  %v11463_v26 = vand.u32 4294901760, %v877_v5  ;;  %v2051_v56 = vand.u32 4294901760, %v2050_v62 }
 0x1d1   : > { %v865_v4 = vsel %vm533_vm0, %v499_v60, 0  ;;  %8072 = vmatprep.mubr.f32.mxu1 %v2031_v44  ;;  %8675 = vmatprep.mubr.f32.mxu0 %v2049_v15  ;;  %v2070_v22 = vsub.f32 %v11431_v19, %v2069_v54  ;;  %13138 = vst [vmem:[#allocation210_spill] sm:$0xff] %v11467_v50  ;;  %v883_v15 = vsel %vm533_vm0, %v11282_v20, 0  ;;  %v11474_v60 = vand.u32 4294901760, %v880_v42 }
 0x1d2   : > { %13135 = vst [vmem:[#allocation207_spill] sm:$0xff] %v11449_v49  ;;  %v11456_v24 = vand.u32 4294901760, %v865_v4  ;;  %v2079_v55 = vand.u32 4294901760, %v11449_v49  ;;  %13136 = vst [vmem:[#allocation208_spill] sm:$0xff] %v11461_v48  ;;  %v886_v23 = vsel %vm533_vm0, %v11302_v30, 0  ;;  %v889_v62 = vsel %vm533_vm0, %v11328_v2, 0 }
 0x1d3   : > { %13137 = vst [vmem:[#allocation209_spill] sm:$0xff] %v11463_v26  ;;  %13140 = vst [vmem:[#allocation212_spill] sm:$0xff] %v11474_v60  ;;  %v2061_v20 = vand.u32 4294901760, %v2060_v47  ;;  %v11486_v13 = vsub.f32 %v877_v5, %v11463_v26  ;;  %v11488_v32 = vand.u32 4294901760, %v883_v15  ;;  %v2071_v30 = vand.u32 4294901760, %v2070_v22 }
 0x1d4   : > { %v11472_v53 = vsub.f32 %v865_v4, %v11456_v24  ;;  %8073 = vmatmul.mubr.f32.gmra.mrb[104].mxu1 %v2041_v36  ;;  %8676 = vmatmul.mubr.f32.gmra.mrb[106].mxu0 %v2059_v10  ;;  %v500_v44 = vpop.trf.xlu0  ;;  %v2080_v36 = vsub.f32 %v11449_v49, %v2079_v55  ;;  %v529_v10 = vpop.trf.xlu1  ;;  %v2109_v2 = vand.u32 4294901760, %v11461_v48  ;;  %v11498_v47 = vand.u32 4294901760, %v886_v23 }
 0x1d5   : > { %v868_v1 = vsel %vm533_vm0, %v500_v44, 0  ;;  %8075 = vmatprep.mubr.f32.mxu1 %v2051_v56  ;;  %8678 = vmatprep.mubr.f32.mxu0 %v2069_v54  ;;  %13142 = vst [vmem:[#allocation214_spill] sm:$0xff] %v11486_v13  ;;  %v11496_v54 = vsub.f32 %v880_v42, %v11474_v60  ;;  %v11500_v49 = vand.u32 4294901760, %v889_v62  ;;  %v2119_v22 = vand.u32 4294901760, %v11467_v50 }
 0x1d6   : > { %13139 = vst [vmem:[#allocation211_spill] sm:$0xff] %v11472_v53  ;;  %v11481_v19 = vand.u32 4294901760, %v868_v1  ;;  %v2089_v4 = vand.u32 4294901760, %v11472_v53  ;;  %v892_v5 = vsel %vm533_vm0, %v11351_v58, 0  ;;  %v895_v42 = vsel %vm533_vm0, %v11377_v8, 0 }
 0x1d7   : > { %13144 = vst [vmem:[#allocation216_spill] sm:$0xff] %v11496_v54  ;;  %13145 = vst [vmem:[#allocation217_spill] sm:$0xff] %v11500_v49  ;;  %v2110_v60 = vsub.f32 %v11461_v48, %v2109_v2  ;;  %v11515_v58 = vsub.f32 %v886_v23, %v11498_v47  ;;  %v11522_v8 = vand.u32 4294901760, %v895_v42  ;;  %v2120_v48 = vsub.f32 %v11467_v50, %v2119_v22 }
 0x1d8   : > { %13141 = vst [vmem:[#allocation213_spill] sm:$0xff] %v11481_v19  ;;  %v11492_v44 = vsub.f32 %v868_v1, %v11481_v19  ;;  %8076 = vmatmul.mubr.f32.gmra.mrb[106].mxu1 %v2061_v20  ;;  %8679 = vmatmul.mubr.f32.gmra.mrb[108].mxu0 %v2079_v55  ;;  %v2090_v56 = vsub.f32 %v11472_v53, %v2089_v4  ;;  %v2081_v1 = vand.u32 4294901760, %v2080_v36  ;;  %v530_v26 = vpop.trf.xlu1 }
 0x1d9   : > { %8078 = vmatprep.mubr.f32.mxu1 %v2071_v30  ;;  %8681 = vmatprep.mubr.f32.mxu0 %v2089_v4  ;;  %v11507_v53 = vsub.f32 %v883_v15, %v11488_v32  ;;  %v2129_v30 = vand.u32 4294901760, %v11486_v13  ;;  %13147 = vst [vmem:[#allocation219_spill] sm:$0xff] %v11515_v58  ;;  %v11518_v36 = vsub.f32 %v889_v62, %v11500_v49  ;;  %v11520_v15 = vand.u32 4294901760, %v892_v5 }
 0x1da   : > { %13143 = vst [vmem:[#allocation215_spill] sm:$0xff] %v11492_v44  ;;  %v2099_v20 = vand.u32 4294901760, %v11492_v44  ;;  %v2091_v55 = vand.u32 4294901760, %v2090_v56  ;;  %13150 = vst [vmem:[#allocation222_spill] sm:$0xff] %v11522_v8  ;;  %v901_v49 = vsel %vm533_vm0, %v11424_v31, 0 }
 0x1db   : > { %13146 = vst [vmem:[#allocation218_spill] sm:$0xff] %v11507_v53  ;;  %13148 = vst [vmem:[#allocation220_spill] sm:$0xff] %v11518_v36  ;;  %v2130_v23 = vsub.f32 %v11486_v13, %v2129_v30  ;;  %v2149_v62 = vand.u32 4294901760, %v11507_v53  ;;  %v2121_v13 = vand.u32 4294901760, %v2120_v48 }
 0x1dc   : > { %8079 = vmatmul.mubr.f32.gmra.mrb[108].mxu1 %v2081_v1  ;;  %8682 = vmatmul.mubr.f32.gmra.mrb[110].mxu0 %v2099_v20  ;;  %v2100_v4 = vsub.f32 %v11492_v44, %v2099_v20  ;;  %13149 = vst [vmem:[#allocation221_spill] sm:$0xff] %v11520_v15  ;;  %v2139_v1 = vand.u32 4294901760, %v11496_v54  ;;  %v898_v20 = vsel %vm533_vm0, %v11401_v18, 0  ;;  %v2111_v44 = vand.u32 4294901760, %v2110_v60  ;;  %v531_v31 = vpop.trf.xlu1 }
 0x1dd   : > { %8081 = vmatprep.mubr.f32.mxu1 %v2091_v55  ;;  %8684 = vmatprep.mubr.f32.mxu0 %v2109_v2  ;;  %v11533_v2 = vsub.f32 %v892_v5, %v11520_v15  ;;  %v2159_v55 = vand.u32 4294901760, %v11515_v58  ;;  %v11538_v18 = vsub.f32 %v895_v42, %v11522_v8  ;;  %v11540_v60 = vand.u32 4294901760, %v898_v20 }
 0x1de   : > { %v2101_v56 = vand.u32 4294901760, %v2100_v4  ;;  %v2169_v4 = vand.u32 4294901760, %v11518_v36  ;;  %v2140_v50 = vsub.f32 %v11496_v54, %v2139_v1  ;;  %v2150_v5 = vsub.f32 %v11507_v53, %v2149_v62 }
 0x1df   : > { %13151 = vst [vmem:[#allocation223_spill] sm:$0xff] %v11533_v2  ;;  %13152 = vst [vmem:[#allocation224_spill] sm:$0xff] %v11538_v18  ;;  %v2160_v42 = vsub.f32 %v11515_v58, %v2159_v55  ;;  %v2179_v48 = vand.u32 4294901760, %v11533_v2  ;;  %v11553_v8 = vsub.f32 %v898_v20, %v11540_v60 }
 0x1e0   : > { %8082 = vmatmul.mubr.f32.gmra.mrb[110].mxu1 %v2101_v56  ;;  %8685 = vmatmul.mubr.f32.gmra.mrb[112].mxu0 %v2119_v22  ;;  %v11543_v56 = vand.u32 4294901760, %v901_v49  ;;  %v904_v22 = vsel %vm533_vm0, %v11451_v34, 0  ;;  %v2170_v54 = vsub.f32 %v11518_v36, %v2169_v4  ;;  %v2141_v34 = vand.u32 4294901760, %v2140_v50  ;;  %v532_v36 = vpop.trf.xlu1 }
 0x1e1   : > { %8084 = vmatprep.mubr.f32.mxu1 %v2111_v44  ;;  %8687 = vmatprep.mubr.f32.mxu0 %v2129_v30  ;;  %v2131_v44 = vand.u32 4294901760, %v2130_v23  ;;  %v907_v30 = vsel %vm533_vm0, %v529_v10, 0  ;;  %13154 = vst [vmem:[#allocation226_spill] sm:$0xff] %v11553_v8  ;;  %v11555_v15 = vand.u32 4294901760, %v904_v22  ;;  %v2189_v23 = vand.u32 4294901760, %v11538_v18 }
 0x1e2   : > { %13153 = vst [vmem:[#allocation225_spill] sm:$0xff] %v11543_v56  ;;  %v11559_v10 = vsub.f32 %v901_v49, %v11543_v56  ;;  %v2161_v20 = vand.u32 4294901760, %v2160_v42  ;;  %v2171_v58 = vand.u32 4294901760, %v2170_v54  ;;  %v2180_v50 = vsub.f32 %v11533_v2, %v2179_v48  ;;  %v13191_v2 = vld [vmem:[#allocation78_spill] sm:$0xff] }
 0x1e3   : > { %13155 = vst [vmem:[#allocation227_spill] sm:$0xff] %v11555_v15  ;;  %v11567_v53 = vsub.f32 %v904_v22, %v11555_v15  ;;  %v2199_v56 = vand.u32 4294901760, %v11553_v8 }
 0x1e4   : > { %8085 = vmatmul.mubr.f32.gmra.mrb[112].mxu1 %v2121_v13  ;;  %8688 = vmatmul.mubr.f32.gmra.mrb[114].mxu0 %v2139_v1  ;;  %13156 = vst [vmem:[#allocation228_spill] sm:$0xff] %v11559_v10  ;;  %v11561_v13 = vand.u32 4294901760, %v907_v30  ;;  %v910_v1 = vsel %vm533_vm0, %v530_v26, 0  ;;  %v2190_v26 = vsub.f32 %v11538_v18, %v2189_v23  ;;  %v2209_v54 = vand.u32 4294901760, %v11559_v10 }
 0x1e5   : > { %8087 = vmatprep.mubr.f32.mxu1 %v2131_v44  ;;  %8690 = vmatprep.mubr.f32.mxu0 %v2149_v62  ;;  %v2151_v62 = vand.u32 4294901760, %v2150_v5  ;;  %v913_v44 = vsel %vm533_vm0, %v531_v31, 0  ;;  %13158 = vst [vmem:[#allocation230_spill] sm:$0xff] %v11567_v53  ;;  %v11569_v49 = vand.u32 4294901760, %v910_v1  ;;  %v2181_v22 = vand.u32 4294901760, %v2180_v50 }
 0x1e6   : > { %13157 = vst [vmem:[#allocation229_spill] sm:$0xff] %v11561_v13  ;;  %v11576_v31 = vand.u32 4294901760, %v913_v44  ;;  %v2210_v18 = vsub.f32 %v11559_v10, %v2209_v54  ;;  %v13189_v10 = vld [vmem:[#allocation81_spill] sm:$0xff] }
 0x1e7   : > { %13159 = vst [vmem:[#allocation231_spill] sm:$0xff] %v11569_v49  ;;  %v11581_v5 = vsub.f32 %v910_v1, %v11569_v49 }
 0x1e8   : > { %8088 = vmatmul.mubr.f32.gmra.mrb[114].mxu1 %v2141_v34  ;;  %8691 = vmatmul.mubr.f32.gmra.mrb[116].mxu0 %v2159_v55  ;;  %v11574_v55 = vsub.f32 %v907_v30, %v11561_v13  ;;  %v2200_v34 = vsub.f32 %v11553_v8, %v2199_v56  ;;  %v2219_v30 = vand.u32 4294901760, %v11567_v53  ;;  %v2211_v50 = vand.u32 4294901760, %v2210_v18  ;;  %v13190_v8 = vld [vmem:[#allocation87_spill] sm:$0xff] }
 0x1e9   : > { %8090 = vmatprep.mubr.f32.mxu1 %v2151_v62  ;;  %8693 = vmatprep.mubr.f32.mxu0 %v2169_v4  ;;  %v916_v4 = vsel %vm533_vm0, %v532_v36, 0  ;;  %13161 = vst [vmem:[#allocation233_spill] sm:$0xff] %v11581_v5  ;;  %v11588_v62 = vsub.f32 %v913_v44, %v11576_v31  ;;  %v2191_v36 = vand.u32 4294901760, %v2190_v26 }
 0x1ea   : > { %13160 = vst [vmem:[#allocation232_spill] sm:$0xff] %v11574_v55  ;;  %v11583_v42 = vand.u32 4294901760, %v916_v4  ;;  %v2220_v1 = vsub.f32 %v11567_v53, %v2219_v30  ;;  %v13188_v53 = vld [vmem:[#allocation77_spill] sm:$0xff] }
 0x1eb   : > { %13162 = vst [vmem:[#allocation234_spill] sm:$0xff] %v11588_v62  ;;  %v2249_v26 = vand.u32 4294901760, %v11588_v62 }
 0x1ec   : > { %8091 = vmatmul.mubr.f32.gmra.mrb[116].mxu1 %v2161_v20  ;;  %8694 = vmatmul.mubr.f32.gmra.mrb[118].mxu0 %v2179_v48  ;;  %v2229_v48 = vand.u32 4294901760, %v11574_v55  ;;  %v2239_v20 = vand.u32 4294901760, %v11581_v5 }
 0x1ed   : > { %8093 = vmatprep.mubr.f32.mxu1 %v2171_v58  ;;  %8696 = vmatprep.mubr.f32.mxu0 %v2189_v23  ;;  %v11593_v58 = vsub.f32 %v916_v4, %v11583_v42  ;;  %v2201_v23 = vand.u32 4294901760, %v2200_v34  ;;  %v2250_v34 = vsub.f32 %v11588_v62, %v2249_v26  ;;  %v13186_v62 = vld [vmem:[#allocation72_spill] sm:$0xff] }
 0x1ee   : > { %v2230_v44 = vsub.f32 %v11574_v55, %v2229_v48 }
 0x1ef   : > { %13163 = vst [vmem:[#allocation235_spill] sm:$0xff] %v11593_v58  ;;  %v2259_v4 = vand.u32 4294901760, %v11593_v58  ;;  %v2251_v55 = vand.u32 4294901760, %v2250_v34  ;;  %v13180_v34 = vld [vmem:[#allocation59_spill] sm:$0xff] }
 0x1f0   : > { %8094 = vmatmul.mubr.f32.gmra.mrb[118].mxu1 %v2181_v22  ;;  %8697 = vmatmul.mubr.f32.gmra.mrb[120].mxu0 %v2199_v56  ;;  %v2221_v56 = vand.u32 4294901760, %v2220_v1  ;;  %v2231_v22 = vand.u32 4294901760, %v2230_v44  ;;  %v13171_v1 = vld [vmem:[#allocation42_spill] sm:$0xff]  ;;  %v13174_v44 = vld [vmem:[#allocation48_spill] sm:$0xff] }
 0x1f1   : > { %8096 = vmatprep.mubr.f32.mxu1 %v2191_v36  ;;  %8699 = vmatprep.mubr.f32.mxu0 %v2209_v54  ;;  %v2240_v54 = vsub.f32 %v11581_v5, %v2239_v20  ;;  %v2260_v36 = vsub.f32 %v11593_v58, %v2259_v4  ;;  %v13185_v58 = vld [vmem:[#allocation70_spill] sm:$0xff]  ;;  %v13187_v5 = vld [vmem:[#allocation75_spill] sm:$0xff] }
 0x1f3   : > { %v2241_v18 = vand.u32 4294901760, %v2240_v54  ;;  %v13177_v54 = vld [vmem:[#allocation54_spill] sm:$0xff] }
 0x1f4   : > { %8097 = vmatmul.mubr.f32.gmra.mrb[120].mxu1 %v2201_v23  ;;  %8700 = vmatmul.mubr.f32.gmra.mrb[122].mxu0 %v2219_v30  ;;  %v2261_v30 = vand.u32 4294901760, %v2260_v36  ;;  %v13170_v23 = vld [vmem:[#allocation39_spill] sm:$0xff]  ;;  %v13182_v36 = vld [vmem:[#allocation64_spill] sm:$0xff] }
 0x1f5   : > { %8099 = vmatprep.mubr.f32.mxu1 %v2211_v50  ;;  %8702 = vmatprep.mubr.f32.mxu0 %v2229_v48  ;;  %v9128_v48 = vpack.c.bf16 %v10454_v41, %v10446_v37  ;;  %v13166_v37 = vld [vmem:[#allocation32_spill] sm:$0xff]  ;;  %v13167_v41 = vld [vmem:[#allocation34_spill] sm:$0xff] }
 0x1f6   : > { %v13173_v50 = vld [vmem:[#allocation46_spill] sm:$0xff] }
 0x1f8   : > { %8100 = vmatmul.mubr.f32.gmra.mrb[122].mxu1 %v2221_v56  ;;  %8703 = vmatmul.mubr.f32.gmra.mrb[124].mxu0 %v2239_v20  ;;  %v13172_v20 = vld [vmem:[#allocation44_spill] sm:$0xff]  ;;  %v13176_v56 = vld [vmem:[#allocation51_spill] sm:$0xff] }
 0x1f9   : > { %8102 = vmatprep.mubr.f32.mxu1 %v2231_v22  ;;  %8705 = vmatprep.mubr.f32.mxu0 %v2249_v26  ;;  %v13175_v26 = vld [vmem:[#allocation49_spill] sm:$0xff]  ;;  %v13179_v22 = vld [vmem:[#allocation58_spill] sm:$0xff] }
 0x1fc   : > { %8103 = vmatmul.mubr.f32.gmra.mrb[124].mxu1 %v2241_v18  ;;  %8706 = vmatmul.mubr.f32.gmra.mrb[126].mxu0 %v2259_v4  ;;  %v13178_v4 = vld [vmem:[#allocation57_spill] sm:$0xff]  ;;  %v13181_v18 = vld [vmem:[#allocation62_spill] sm:$0xff] }
 0x1fd   : > { %8105 = vmatprep.mubr.f32.mxu1 %v2251_v55  ;;  %8716 = vmatprep.mubr.f32.mxu0 %v10334_v45  ;;  %v13169_v55 = vld [vmem:[#allocation38_spill] sm:$0xff] }
 0x200   : > { %8106 = vmatmul.mubr.f32.gmra.mrb[126].mxu1 %v2261_v30  ;;  %8717 = vmatmul.mubr.f32.vlgmr.msra.gmra.mrb[0].mxu0 %v10344_v52  ;;  %v13183_v30 = vld [vmem:[#allocation66_spill] sm:$0xff] }
 0x201   : > { %8116 = vmatprep.mubr.f32.mxu1 %v10334_v45  ;;  %8719 = vmatprep.mubr.f32.mxu0 %v10354_v59 }
 0x202   : > { %9151 = vmatpush3.bf16.msra.mxu0 %v10285_v14  ;;  %v13164_v14 = vld [vmem:[#allocation28_spill] sm:$0xff] }
 0x203   : > { %9153 = vmatprep.subr.bf16.mxu0 %v10292_v16 }
 0x204   : > { %8117 = vmatmul.mubr.f32.vlgmr.msra.gmra.mrb[0].mxu1 %v10344_v52  ;;  %8720 = vmatmul.mubr.f32.gmra.mrb[2].mxu0 %v10365_v3 }
 0x205   : > { %9127 = vmatpush3.bf16.msra.mxu1 %v11073_v25  ;;  %8119 = vmatprep.mubr.f32.mxu1 %v10354_v59  ;;  %v13168_v25 = vld [vmem:[#allocation37_spill] sm:$0xff] }
 0x206   : > { %8722 = vmatprep.mubr.f32.mxu0 %v10376_v17  ;;  %9129 = vmatprep.subr.bf16.mxu1 %v9128_v48 }
 0x207   : > { %9155 = vmatpush3.bf16.msra.mxu0 %v10292_v16  ;;  %v13165_v16 = vld [vmem:[#allocation29_spill] sm:$0xff] }
 0x208   : > { %8120 = vmatmul.mubr.f32.gmra.mrb[2].mxu1 %v10365_v3  ;;  %8723 = vmatmul.mubr.f32.gmra.mrb[4].mxu0 %v10386_v28 }
 0x209   : > { %8122 = vmatprep.mubr.f32.mxu1 %v10376_v17  ;;  %8725 = vmatprep.mubr.f32.mxu0 %v10396_v35 }
 0x20a   : > { %9131 = vmatpush3.bf16.msra.mxu1 %v9128_v48  ;;  %v13184_v48 = vld [vmem:[#allocation68_spill] sm:$0xff] }
 0x20c   : > { %8123 = vmatmul.mubr.f32.gmra.mrb[4].mxu1 %v10386_v28  ;;  %8726 = vmatmul.mubr.f32.gmra.mrb[6].mxu0 %v10406_v43 }
 0x20d   : > { %8125 = vmatprep.mubr.f32.mxu1 %v10396_v35  ;;  %8728 = vmatprep.mubr.f32.mxu0 %v10416_v57 }
 0x210   : > { %8126 = vmatmul.mubr.f32.gmra.mrb[6].mxu1 %v10406_v43  ;;  %8729 = vmatmul.mubr.f32.gmra.mrb[8].mxu0 %v10426_v7 }
 0x211   : > { %8128 = vmatprep.mubr.f32.mxu1 %v10416_v57  ;;  %8731 = vmatprep.mubr.f32.mxu0 %v10436_v27 }
 0x214   : > { %8129 = vmatmul.mubr.f32.gmra.mrb[8].mxu1 %v10426_v7  ;;  %8732 = vmatmul.mubr.f32.gmra.mrb[10].mxu0 %v10456_v46 }
 0x215   : > { %8131 = vmatprep.mubr.f32.mxu1 %v10436_v27  ;;  %8734 = vmatprep.mubr.f32.mxu0 %v10469_v0 }
 0x218   : > { %8132 = vmatmul.mubr.f32.gmra.mrb[10].mxu1 %v10456_v46  ;;  %8735 = vmatmul.mubr.f32.gmra.mrb[12].mxu0 %v10484_v39 }
 0x219   : > { %8134 = vmatprep.mubr.f32.mxu1 %v10469_v0  ;;  %8737 = vmatprep.mubr.f32.mxu0 %v10504_v29 }
 0x21c   : > { %8135 = vmatmul.mubr.f32.gmra.mrb[12].mxu1 %v10484_v39  ;;  %8738 = vmatmul.mubr.f32.gmra.mrb[14].mxu0 %v10531_v21 }
 0x21d   : > { %8137 = vmatprep.mubr.f32.mxu1 %v10504_v29  ;;  %8740 = vmatprep.mubr.f32.mxu0 %v10489_v11 }
 0x220   : > { %8138 = vmatmul.mubr.f32.gmra.mrb[14].mxu1 %v10531_v21  ;;  %8741 = vmatmul.mubr.f32.gmra.mrb[16].mxu0 %v10497_v61 }
 0x221   : > { %8140 = vmatprep.mubr.f32.mxu1 %v10489_v11  ;;  %8743 = vmatprep.mubr.f32.mxu0 %v10512_v51 }
 0x224   : > { %8141 = vmatmul.mubr.f32.gmra.mrb[16].mxu1 %v10497_v61  ;;  %8744 = vmatmul.mubr.f32.gmra.mrb[18].mxu0 %v10524_v12 }
 0x225   : > { %8143 = vmatprep.mubr.f32.mxu1 %v10512_v51  ;;  %8746 = vmatprep.mubr.f32.mxu0 %v10539_v63 }
 0x228   : > { %8144 = vmatmul.mubr.f32.gmra.mrb[18].mxu1 %v10524_v12  ;;  %8747 = vmatmul.mubr.f32.gmra.mrb[20].mxu0 %v13164_v14 }
 0x229   : > { %8146 = vmatprep.mubr.f32.mxu1 %v10539_v63  ;;  %8749 = vmatprep.mubr.f32.mxu0 %v13165_v16 }
 0x22c   : > { %8147 = vmatmul.mubr.f32.gmra.mrb[20].mxu1 %v13164_v14  ;;  %8750 = vmatmul.mubr.f32.gmra.mrb[22].mxu0 %v13166_v37 }
 0x22d   : > { %8149 = vmatprep.mubr.f32.mxu1 %v13165_v16  ;;  %8752 = vmatprep.mubr.f32.mxu0 %v13167_v41 }
 0x230   : > { %8150 = vmatmul.mubr.f32.gmra.mrb[22].mxu1 %v13166_v37  ;;  %8753 = vmatmul.mubr.f32.gmra.mrb[24].mxu0 %v13168_v25 }
 0x231   : > { %8152 = vmatprep.mubr.f32.mxu1 %v13167_v41  ;;  %8755 = vmatprep.mubr.f32.mxu0 %v13169_v55 }
 0x234   : > { %8153 = vmatmul.mubr.f32.gmra.mrb[24].mxu1 %v13168_v25  ;;  %8756 = vmatmul.mubr.f32.gmra.mrb[26].mxu0 %v13170_v23 }
 0x235   : > { %8155 = vmatprep.mubr.f32.mxu1 %v13169_v55  ;;  %8758 = vmatprep.mubr.f32.mxu0 %v13171_v1 }
 0x238   : > { %8156 = vmatmul.mubr.f32.gmra.mrb[26].mxu1 %v13170_v23  ;;  %8759 = vmatmul.mubr.f32.gmra.mrb[28].mxu0 %v13172_v20 }
 0x239   : > { %8158 = vmatprep.mubr.f32.mxu1 %v13171_v1  ;;  %8761 = vmatprep.mubr.f32.mxu0 %v13173_v50 }
 0x23c   : > { %8159 = vmatmul.mubr.f32.gmra.mrb[28].mxu1 %v13172_v20  ;;  %8762 = vmatmul.mubr.f32.gmra.mrb[30].mxu0 %v13174_v44 }
 0x23d   : > { %8161 = vmatprep.mubr.f32.mxu1 %v13173_v50  ;;  %8764 = vmatprep.mubr.f32.mxu0 %v13175_v26 }
 0x240   : > { %8162 = vmatmul.mubr.f32.gmra.mrb[30].mxu1 %v13174_v44  ;;  %8765 = vmatmul.mubr.f32.gmra.mrb[32].mxu0 %v13176_v56 }
 0x241   : > { %8164 = vmatprep.mubr.f32.mxu1 %v13175_v26  ;;  %8767 = vmatprep.mubr.f32.mxu0 %v13177_v54 }
 0x244   : > { %8165 = vmatmul.mubr.f32.gmra.mrb[32].mxu1 %v13176_v56  ;;  %8768 = vmatmul.mubr.f32.gmra.mrb[34].mxu0 %v13178_v4 }
 0x245   : > { %8167 = vmatprep.mubr.f32.mxu1 %v13177_v54  ;;  %8770 = vmatprep.mubr.f32.mxu0 %v13179_v22 }
 0x248   : > { %8168 = vmatmul.mubr.f32.gmra.mrb[34].mxu1 %v13178_v4  ;;  %8771 = vmatmul.mubr.f32.gmra.mrb[36].mxu0 %v13180_v34 }
 0x249   : > { %8170 = vmatprep.mubr.f32.mxu1 %v13179_v22  ;;  %8773 = vmatprep.mubr.f32.mxu0 %v13181_v18 }
 0x24c   : > { %8171 = vmatmul.mubr.f32.gmra.mrb[36].mxu1 %v13180_v34  ;;  %8774 = vmatmul.mubr.f32.gmra.mrb[38].mxu0 %v13182_v36 }
 0x24d   : > { %8173 = vmatprep.mubr.f32.mxu1 %v13181_v18  ;;  %8776 = vmatprep.mubr.f32.mxu0 %v13183_v30 }
 0x250   : > { %8174 = vmatmul.mubr.f32.gmra.mrb[38].mxu1 %v13182_v36  ;;  %8777 = vmatmul.mubr.f32.gmra.mrb[40].mxu0 %v13184_v48 }
 0x251   : > { %8176 = vmatprep.mubr.f32.mxu1 %v13183_v30  ;;  %8779 = vmatprep.mubr.f32.mxu0 %v13185_v58 }
 0x254   : > { %8177 = vmatmul.mubr.f32.gmra.mrb[40].mxu1 %v13184_v48  ;;  %8780 = vmatmul.mubr.f32.gmra.mrb[42].mxu0 %v13186_v62 }
 0x255   : > { %8179 = vmatprep.mubr.f32.mxu1 %v13185_v58  ;;  %8782 = vmatprep.mubr.f32.mxu0 %v13187_v5  ;;  %v13192_v58 = vld [vmem:[#allocation79_spill] sm:$0xff] }
 0x258   : > { %8180 = vmatmul.mubr.f32.gmra.mrb[42].mxu1 %v13186_v62  ;;  %8783 = vmatmul.mubr.f32.gmra.mrb[44].mxu0 %v13188_v53  ;;  %v13193_v62 = vld [vmem:[#allocation83_spill] sm:$0xff] }
 0x259   : > { %8182 = vmatprep.mubr.f32.mxu1 %v13187_v5  ;;  %8785 = vmatprep.mubr.f32.mxu0 %v13189_v10  ;;  %v13194_v5 = vld [vmem:[#allocation86_spill] sm:$0xff] }
 0x25c   : > { %8183 = vmatmul.mubr.f32.gmra.mrb[44].mxu1 %v13188_v53  ;;  %8786 = vmatmul.mubr.f32.gmra.mrb[46].mxu0 %v13190_v8  ;;  %v13195_v53 = vld [vmem:[#allocation89_spill] sm:$0xff] }
 0x25d   : > { %8185 = vmatprep.mubr.f32.mxu1 %v13189_v10  ;;  %8788 = vmatprep.mubr.f32.mxu0 %v13191_v2  ;;  %v13196_v10 = vld [vmem:[#allocation92_spill] sm:$0xff] }
 0x260   : > { %8186 = vmatmul.mubr.f32.gmra.mrb[46].mxu1 %v13190_v8  ;;  %8789 = vmatmul.mubr.f32.gmra.mrb[48].mxu0 %v13192_v58  ;;  %v13197_v8 = vld [vmem:[#allocation93_spill] sm:$0xff] }
 0x261   : > { %8188 = vmatprep.mubr.f32.mxu1 %v13191_v2  ;;  %8791 = vmatprep.mubr.f32.mxu0 %v13193_v62  ;;  %v13198_v2 = vld [vmem:[#allocation96_spill] sm:$0xff] }
 0x264   : > { %8189 = vmatmul.mubr.f32.gmra.mrb[48].mxu1 %v13192_v58  ;;  %8792 = vmatmul.mubr.f32.gmra.mrb[50].mxu0 %v13194_v5  ;;  %v13199_v58 = vld [vmem:[#allocation98_spill] sm:$0xff] }
 0x265   : > { %8191 = vmatprep.mubr.f32.mxu1 %v13193_v62  ;;  %8794 = vmatprep.mubr.f32.mxu0 %v13195_v53  ;;  %v13200_v62 = vld [vmem:[#allocation101_spill] sm:$0xff] }
 0x268   : > { %8192 = vmatmul.mubr.f32.gmra.mrb[50].mxu1 %v13194_v5  ;;  %8795 = vmatmul.mubr.f32.gmra.mrb[52].mxu0 %v13196_v10  ;;  %v13201_v5 = vld [vmem:[#allocation102_spill] sm:$0xff] }
 0x269   : > { %8194 = vmatprep.mubr.f32.mxu1 %v13195_v53  ;;  %8797 = vmatprep.mubr.f32.mxu0 %v13197_v8  ;;  %v13202_v53 = vld [vmem:[#allocation103_spill] sm:$0xff] }
 0x26c   : > { %8195 = vmatmul.mubr.f32.gmra.mrb[52].mxu1 %v13196_v10  ;;  %8798 = vmatmul.mubr.f32.gmra.mrb[54].mxu0 %v13198_v2  ;;  %v13203_v10 = vld [vmem:[#allocation106_spill] sm:$0xff] }
 0x26d   : > { %8197 = vmatprep.mubr.f32.mxu1 %v13197_v8  ;;  %8800 = vmatprep.mubr.f32.mxu0 %v13199_v58  ;;  %v13204_v8 = vld [vmem:[#allocation108_spill] sm:$0xff] }
 0x270   : > { %8198 = vmatmul.mubr.f32.gmra.mrb[54].mxu1 %v13198_v2  ;;  %8801 = vmatmul.mubr.f32.gmra.mrb[56].mxu0 %v13200_v62  ;;  %v13205_v2 = vld [vmem:[#allocation110_spill] sm:$0xff] }
 0x271   : > { %8200 = vmatprep.mubr.f32.mxu1 %v13199_v58  ;;  %8803 = vmatprep.mubr.f32.mxu0 %v13201_v5  ;;  %v13206_v58 = vld [vmem:[#allocation112_spill] sm:$0xff] }
 0x274   : > { %8201 = vmatmul.mubr.f32.gmra.mrb[56].mxu1 %v13200_v62  ;;  %8804 = vmatmul.mubr.f32.gmra.mrb[58].mxu0 %v13202_v53  ;;  %v13207_v62 = vld [vmem:[#allocation113_spill] sm:$0xff] }
 0x275   : > { %8203 = vmatprep.mubr.f32.mxu1 %v13201_v5  ;;  %8806 = vmatprep.mubr.f32.mxu0 %v13203_v10  ;;  %v13208_v5 = vld [vmem:[#allocation115_spill] sm:$0xff] }
 0x278   : > { %8204 = vmatmul.mubr.f32.gmra.mrb[58].mxu1 %v13202_v53  ;;  %8807 = vmatmul.mubr.f32.gmra.mrb[60].mxu0 %v13204_v8  ;;  %v13209_v53 = vld [vmem:[#allocation118_spill] sm:$0xff] }
 0x279   : > { %8206 = vmatprep.mubr.f32.mxu1 %v13203_v10  ;;  %8809 = vmatprep.mubr.f32.mxu0 %v13205_v2  ;;  %v13210_v10 = vld [vmem:[#allocation121_spill] sm:$0xff] }
 0x27c   : > { %8207 = vmatmul.mubr.f32.gmra.mrb[60].mxu1 %v13204_v8  ;;  %8810 = vmatmul.mubr.f32.gmra.mrb[62].mxu0 %v13206_v58  ;;  %v13211_v8 = vld [vmem:[#allocation122_spill] sm:$0xff] }
 0x27d   : > { %8209 = vmatprep.mubr.f32.mxu1 %v13205_v2  ;;  %8812 = vmatprep.mubr.f32.mxu0 %v13207_v62 }
 0x280   : > { %8210 = vmatmul.mubr.f32.gmra.mrb[62].mxu1 %v13206_v58  ;;  %8813 = vmatmul.mubr.f32.gmra.mrb[64].mxu0 %v13208_v5 }
 0x281   : > { %8212 = vmatprep.mubr.f32.mxu1 %v13207_v62  ;;  %8815 = vmatprep.mubr.f32.mxu0 %v13209_v53  ;;  %v13212_v62 = vld [vmem:[#allocation128_spill] sm:$0xff] }
 0x284   : > { %8213 = vmatmul.mubr.f32.gmra.mrb[64].mxu1 %v13208_v5  ;;  %8816 = vmatmul.mubr.f32.gmra.mrb[66].mxu0 %v13210_v10  ;;  %v13213_v5 = vld [vmem:[#allocation130_spill] sm:$0xff] }
 0x285   : > { %8215 = vmatprep.mubr.f32.mxu1 %v13209_v53  ;;  %8818 = vmatprep.mubr.f32.mxu0 %v13211_v8  ;;  %v13214_v53 = vld [vmem:[#allocation132_spill] sm:$0xff] }
 0x288   : > { %8216 = vmatmul.mubr.f32.gmra.mrb[66].mxu1 %v13210_v10  ;;  %8819 = vmatmul.mubr.f32.gmra.mrb[68].mxu0 %v11032_v38  ;;  %v13215_v10 = vld [vmem:[#allocation134_spill] sm:$0xff] }
 0x289   : > { %8218 = vmatprep.mubr.f32.mxu1 %v13211_v8  ;;  %8821 = vmatprep.mubr.f32.mxu0 %v11046_v6  ;;  %v13216_v8 = vld [vmem:[#allocation136_spill] sm:$0xff] }
 0x28c   : > { %8219 = vmatmul.mubr.f32.gmra.mrb[68].mxu1 %v11032_v38  ;;  %8822 = vmatmul.mubr.f32.gmra.mrb[70].mxu0 %v13212_v62  ;;  %v13217_v38 = vld [vmem:[#allocation139_spill] sm:$0xff] }
 0x28d   : > { %8221 = vmatprep.mubr.f32.mxu1 %v11046_v6  ;;  %8824 = vmatprep.mubr.f32.mxu0 %v13213_v5  ;;  %v13218_v6 = vld [vmem:[#allocation141_spill] sm:$0xff] }
 0x290   : > { %8222 = vmatmul.mubr.f32.gmra.mrb[70].mxu1 %v13212_v62  ;;  %8825 = vmatmul.mubr.f32.gmra.mrb[72].mxu0 %v13214_v53  ;;  %v13219_v62 = vld [vmem:[#allocation145_spill] sm:$0xff] }
 0x291   : > { %8224 = vmatprep.mubr.f32.mxu1 %v13213_v5  ;;  %8827 = vmatprep.mubr.f32.mxu0 %v13215_v10  ;;  %v13220_v5 = vld [vmem:[#allocation151_spill] sm:$0xff] }
 0x294   : > { %8225 = vmatmul.mubr.f32.gmra.mrb[72].mxu1 %v13214_v53  ;;  %8828 = vmatmul.mubr.f32.gmra.mrb[74].mxu0 %v13216_v8  ;;  %v13221_v53 = vld [vmem:[#allocation142_spill] sm:$0xff] }
 0x295   : > { %8227 = vmatprep.mubr.f32.mxu1 %v13215_v10  ;;  %8830 = vmatprep.mubr.f32.mxu0 %v13217_v38  ;;  %v13222_v10 = vld [vmem:[#allocation143_spill] sm:$0xff] }
 0x298   : > { %8228 = vmatmul.mubr.f32.gmra.mrb[74].mxu1 %v13216_v8  ;;  %8831 = vmatmul.mubr.f32.gmra.mrb[76].mxu0 %v13218_v6  ;;  %v13223_v8 = vld [vmem:[#allocation147_spill] sm:$0xff] }
 0x299   : > { %8230 = vmatprep.mubr.f32.mxu1 %v13217_v38  ;;  %8833 = vmatprep.mubr.f32.mxu0 %v13219_v62  ;;  %v13224_v38 = vld [vmem:[#allocation150_spill] sm:$0xff] }
 0x29c   : > { %8231 = vmatmul.mubr.f32.gmra.mrb[76].mxu1 %v13218_v6  ;;  %8834 = vmatmul.mubr.f32.gmra.mrb[78].mxu0 %v13220_v5  ;;  %v13225_v6 = vld [vmem:[#allocation153_spill] sm:$0xff] }
 0x29d   : > { %8233 = vmatprep.mubr.f32.mxu1 %v13219_v62  ;;  %8836 = vmatprep.mubr.f32.mxu0 %v13221_v53  ;;  %v13226_v62 = vld [vmem:[#allocation156_spill] sm:$0xff] }
 0x2a0   : > { %8234 = vmatmul.mubr.f32.gmra.mrb[78].mxu1 %v13220_v5  ;;  %8837 = vmatmul.mubr.f32.gmra.mrb[80].mxu0 %v13222_v10  ;;  %v13227_v5 = vld [vmem:[#allocation157_spill] sm:$0xff] }
 0x2a1   : > { %8236 = vmatprep.mubr.f32.mxu1 %v13221_v53  ;;  %8839 = vmatprep.mubr.f32.mxu0 %v13223_v8  ;;  %v13228_v53 = vld [vmem:[#allocation160_spill] sm:$0xff] }
 0x2a4   : > { %8237 = vmatmul.mubr.f32.gmra.mrb[80].mxu1 %v13222_v10  ;;  %8840 = vmatmul.mubr.f32.gmra.mrb[82].mxu0 %v13224_v38  ;;  %v13229_v10 = vld [vmem:[#allocation162_spill] sm:$0xff] }
 0x2a5   : > { %8239 = vmatprep.mubr.f32.mxu1 %v13223_v8  ;;  %8842 = vmatprep.mubr.f32.mxu0 %v13225_v6  ;;  %v13230_v8 = vld [vmem:[#allocation165_spill] sm:$0xff] }
 0x2a8   : > { %8240 = vmatmul.mubr.f32.gmra.mrb[82].mxu1 %v13224_v38  ;;  %8843 = vmatmul.mubr.f32.gmra.mrb[84].mxu0 %v13226_v62  ;;  %v13231_v38 = vld [vmem:[#allocation166_spill] sm:$0xff] }
 0x2a9   : > { %8242 = vmatprep.mubr.f32.mxu1 %v13225_v6  ;;  %8845 = vmatprep.mubr.f32.mxu0 %v13227_v5  ;;  %v13232_v6 = vld [vmem:[#allocation167_spill] sm:$0xff] }
 0x2ac   : > { %8243 = vmatmul.mubr.f32.gmra.mrb[84].mxu1 %v13226_v62  ;;  %8846 = vmatmul.mubr.f32.gmra.mrb[86].mxu0 %v13228_v53  ;;  %v13233_v62 = vld [vmem:[#allocation170_spill] sm:$0xff] }
 0x2ad   : > { %8245 = vmatprep.mubr.f32.mxu1 %v13227_v5  ;;  %8848 = vmatprep.mubr.f32.mxu0 %v13229_v10  ;;  %v13234_v5 = vld [vmem:[#allocation172_spill] sm:$0xff] }
 0x2b0   : > { %8246 = vmatmul.mubr.f32.gmra.mrb[86].mxu1 %v13228_v53  ;;  %8849 = vmatmul.mubr.f32.gmra.mrb[88].mxu0 %v13230_v8  ;;  %v13235_v53 = vld [vmem:[#allocation174_spill] sm:$0xff] }
 0x2b1   : > { %8248 = vmatprep.mubr.f32.mxu1 %v13229_v10  ;;  %8851 = vmatprep.mubr.f32.mxu0 %v13231_v38  ;;  %v13236_v10 = vld [vmem:[#allocation176_spill] sm:$0xff] }
 0x2b4   : > { %8249 = vmatmul.mubr.f32.gmra.mrb[88].mxu1 %v13230_v8  ;;  %8852 = vmatmul.mubr.f32.gmra.mrb[90].mxu0 %v13232_v6  ;;  %v13237_v8 = vld [vmem:[#allocation177_spill] sm:$0xff] }
 0x2b5   : > { %8251 = vmatprep.mubr.f32.mxu1 %v13231_v38  ;;  %8854 = vmatprep.mubr.f32.mxu0 %v13233_v62  ;;  %v13238_v38 = vld [vmem:[#allocation179_spill] sm:$0xff] }
 0x2b8   : > { %8252 = vmatmul.mubr.f32.gmra.mrb[90].mxu1 %v13232_v6  ;;  %8855 = vmatmul.mubr.f32.gmra.mrb[92].mxu0 %v13234_v5  ;;  %v13239_v6 = vld [vmem:[#allocation182_spill] sm:$0xff] }
 0x2b9   : > { %8254 = vmatprep.mubr.f32.mxu1 %v13233_v62  ;;  %8857 = vmatprep.mubr.f32.mxu0 %v13235_v53  ;;  %v13240_v62 = vld [vmem:[#allocation185_spill] sm:$0xff] }
 0x2bc   : > { %8255 = vmatmul.mubr.f32.gmra.mrb[92].mxu1 %v13234_v5  ;;  %8858 = vmatmul.mubr.f32.gmra.mrb[94].mxu0 %v13236_v10  ;;  %v13241_v5 = vld [vmem:[#allocation186_spill] sm:$0xff] }
 0x2bd   : > { %8257 = vmatprep.mubr.f32.mxu1 %v13235_v53  ;;  %8860 = vmatprep.mubr.f32.mxu0 %v13237_v8 }
 0x2c0   : > { %8258 = vmatmul.mubr.f32.gmra.mrb[94].mxu1 %v13236_v10  ;;  %8861 = vmatmul.mubr.f32.gmra.mrb[96].mxu0 %v13238_v38  ;;  %v13242_v10 = vld [vmem:[#allocation190_spill] sm:$0xff] }
 0x2c1   : > { %8260 = vmatprep.mubr.f32.mxu1 %v13237_v8  ;;  %8863 = vmatprep.mubr.f32.mxu0 %v13239_v6 }
 0x2c4   : > { %8261 = vmatmul.mubr.f32.gmra.mrb[96].mxu1 %v13238_v38  ;;  %8864 = vmatmul.mubr.f32.gmra.mrb[98].mxu0 %v13240_v62  ;;  %v13243_v38 = vld [vmem:[#allocation193_spill] sm:$0xff] }
 0x2c5   : > { %8263 = vmatprep.mubr.f32.mxu1 %v13239_v6  ;;  %8866 = vmatprep.mubr.f32.mxu0 %v13241_v5  ;;  %v13244_v6 = vld [vmem:[#allocation195_spill] sm:$0xff] }
 0x2c8   : > { %8264 = vmatmul.mubr.f32.gmra.mrb[98].mxu1 %v13240_v62  ;;  %8867 = vmatmul.mubr.f32.gmra.mrb[100].mxu0 %v11353_v9  ;;  %v13245_v62 = vld [vmem:[#allocation197_spill] sm:$0xff] }
 0x2c9   : > { %8266 = vmatprep.mubr.f32.mxu1 %v13241_v5  ;;  %8869 = vmatprep.mubr.f32.mxu0 %v13242_v10  ;;  %v13246_v5 = vld [vmem:[#allocation199_spill] sm:$0xff] }
 0x2cc   : > { %8267 = vmatmul.mubr.f32.gmra.mrb[100].mxu1 %v11353_v9  ;;  %8870 = vmatmul.mubr.f32.gmra.mrb[102].mxu0 %v11373_v40  ;;  %v13247_v9 = vld [vmem:[#allocation202_spill] sm:$0xff] }
 0x2cd   : > { %8269 = vmatprep.mubr.f32.mxu1 %v13242_v10  ;;  %8872 = vmatprep.mubr.f32.mxu0 %v13243_v38  ;;  %v13248_v10 = vld [vmem:[#allocation204_spill] sm:$0xff] }
 0x2d0   : > { %8270 = vmatmul.mubr.f32.gmra.mrb[102].mxu1 %v11373_v40  ;;  %8873 = vmatmul.mubr.f32.gmra.mrb[104].mxu0 %v13244_v6 }
 0x2d1   : > { %8272 = vmatprep.mubr.f32.mxu1 %v13243_v38  ;;  %8875 = vmatprep.mubr.f32.mxu0 %v13245_v62 }
 0x2d4   : > { %8273 = vmatmul.mubr.f32.gmra.mrb[104].mxu1 %v13244_v6  ;;  %8876 = vmatmul.mubr.f32.gmra.mrb[106].mxu0 %v13246_v5 }
 0x2d5   : > { %8275 = vmatprep.mubr.f32.mxu1 %v13245_v62  ;;  %8878 = vmatprep.mubr.f32.mxu0 %v13247_v9  ;;  %v13249_v62 = vld [vmem:[#allocation206_spill] sm:$0xff] }
 0x2d8   : > { %8276 = vmatmul.mubr.f32.gmra.mrb[106].mxu1 %v13246_v5  ;;  %8879 = vmatmul.mubr.f32.gmra.mrb[108].mxu0 %v13248_v10  ;;  %v13250_v5 = vld [vmem:[#allocation209_spill] sm:$0xff] }
 0x2d9   : > { %8278 = vmatprep.mubr.f32.mxu1 %v13247_v9  ;;  %8881 = vmatprep.mubr.f32.mxu0 %v11456_v24  ;;  %v13251_v9 = vld [vmem:[#allocation212_spill] sm:$0xff] }
 0x2dc   : > { %8279 = vmatmul.mubr.f32.gmra.mrb[108].mxu1 %v13248_v10  ;;  %8882 = vmatmul.mubr.f32.gmra.mrb[110].mxu0 %v11481_v19 }
 0x2dd   : > { %8281 = vmatprep.mubr.f32.mxu1 %v11456_v24  ;;  %8884 = vmatprep.mubr.f32.mxu0 %v11440_v33 }
 0x2e0   : > { %8282 = vmatmul.mubr.f32.gmra.mrb[110].mxu1 %v11481_v19  ;;  %8885 = vmatmul.mubr.f32.gmra.mrb[112].mxu0 %v13249_v62  ;;  %v13252_v19 = vld [vmem:[#allocation217_spill] sm:$0xff] }
 0x2e1   : > { %8284 = vmatprep.mubr.f32.mxu1 %v11440_v33  ;;  %8887 = vmatprep.mubr.f32.mxu0 %v13250_v5  ;;  %v13253_v33 = vld [vmem:[#allocation221_spill] sm:$0xff] }
 0x2e4   : > { %8285 = vmatmul.mubr.f32.gmra.mrb[112].mxu1 %v13249_v62  ;;  %8888 = vmatmul.mubr.f32.gmra.mrb[114].mxu0 %v13251_v9  ;;  %v13254_v62 = vld [vmem:[#allocation222_spill] sm:$0xff] }
 0x2e5   : > { %8287 = vmatprep.mubr.f32.mxu1 %v13250_v5  ;;  %8890 = vmatprep.mubr.f32.mxu0 %v11488_v32 }
 0x2e8   : > { %8288 = vmatmul.mubr.f32.gmra.mrb[114].mxu1 %v13251_v9  ;;  %8891 = vmatmul.mubr.f32.gmra.mrb[116].mxu0 %v11498_v47  ;;  %v13255_v9 = vld [vmem:[#allocation225_spill] sm:$0xff] }
 0x2e9   : > { %8290 = vmatprep.mubr.f32.mxu1 %v11488_v32  ;;  %8893 = vmatprep.mubr.f32.mxu0 %v13252_v19 }
 0x2ec   : > { %8291 = vmatmul.mubr.f32.gmra.mrb[116].mxu1 %v11498_v47  ;;  %8894 = vmatmul.mubr.f32.gmra.mrb[118].mxu0 %v13253_v33 }
 0x2ed   : > { %8293 = vmatprep.mubr.f32.mxu1 %v13252_v19  ;;  %8896 = vmatprep.mubr.f32.mxu0 %v13254_v62 }
 0x2f0   : > { %8294 = vmatmul.mubr.f32.gmra.mrb[118].mxu1 %v13253_v33  ;;  %8897 = vmatmul.mubr.f32.gmra.mrb[120].mxu0 %v11540_v60 }
 0x2f1   : > { %8296 = vmatprep.mubr.f32.mxu1 %v13254_v62  ;;  %8899 = vmatprep.mubr.f32.mxu0 %v13255_v9 }
 0x2f4   : > { %8297 = vmatmul.mubr.f32.gmra.mrb[120].mxu1 %v11540_v60  ;;  %8900 = vmatmul.mubr.f32.gmra.mrb[122].mxu0 %v11555_v15 }
 0x2f5   : > { %8299 = vmatprep.mubr.f32.mxu1 %v13255_v9  ;;  %8902 = vmatprep.mubr.f32.mxu0 %v11561_v13  ;;  %v13256_v9 = vld [vmem:[#allocation8_spill] sm:$0xff] }
 0x2f8   : > { %8300 = vmatmul.mubr.f32.gmra.mrb[122].mxu1 %v11555_v15  ;;  %8903 = vmatmul.mubr.f32.gmra.mrb[124].mxu0 %v11569_v49  ;;  %v13257_v15 = vld [vmem:[#allocation9_spill] sm:$0xff] }
 0x2f9   : > { %8302 = vmatprep.mubr.f32.mxu1 %v11561_v13  ;;  %8905 = vmatprep.mubr.f32.mxu0 %v11576_v31  ;;  %v13258_v13 = vld [vmem:[#allocation10_spill] sm:$0xff] }
 0x2fc   : > { %8303 = vmatmul.mubr.f32.gmra.mrb[124].mxu1 %v11569_v49  ;;  %8906 = vmatmul.mubr.f32.gmra.mrb[126].mxu0 %v11583_v42  ;;  %v13259_v49 = vld [vmem:[#allocation11_spill] sm:$0xff] }
 0x2fd   : > { %8305 = vmatprep.mubr.f32.mxu1 %v11576_v31  ;;  %8916 = vmatprep.mubr.f32.mxu0 %v10334_v45  ;;  %v13260_v45 = vld [vmem:[#allocation12_spill] sm:$0xff] }
 0x300   : > { %8306 = vmatmul.mubr.f32.gmra.mrb[126].mxu1 %v11583_v42  ;;  %8917 = vmatmul.mubr.f32.vlgmr.msra.gmra.mrb[0].mxu0 %v10344_v52  ;;  %v13261_v52 = vld [vmem:[#allocation13_spill] sm:$0xff] }
 0x301   : > { %8316 = vmatprep.mubr.f32.mxu1 %v13256_v9  ;;  %8919 = vmatprep.mubr.f32.mxu0 %v10354_v59  ;;  %v13262_v59 = vld [vmem:[#allocation14_spill] sm:$0xff]  ;;  %v13281_v9 = vld [vmem:[#allocation40_spill] sm:$0xff] }
 0x304   : > { %8317 = vmatmul.mubr.f32.vlgmr.msra.gmra.mrb[0].mxu1 %v13257_v15  ;;  %8920 = vmatmul.mubr.f32.gmra.mrb[2].mxu0 %v10365_v3  ;;  %v13263_v3 = vld [vmem:[#allocation15_spill] sm:$0xff]  ;;  %v13282_v15 = vld [vmem:[#allocation41_spill] sm:$0xff] }
 0x305   : > { %8319 = vmatprep.mubr.f32.mxu1 %v13258_v13  ;;  %8922 = vmatprep.mubr.f32.mxu0 %v10376_v17  ;;  %v13264_v17 = vld [vmem:[#allocation16_spill] sm:$0xff]  ;;  %v13283_v13 = vld [vmem:[#allocation43_spill] sm:$0xff] }
 0x308   : > { %8320 = vmatmul.mubr.f32.gmra.mrb[2].mxu1 %v13259_v49  ;;  %8923 = vmatmul.mubr.f32.gmra.mrb[4].mxu0 %v10386_v28  ;;  %v13265_v28 = vld [vmem:[#allocation17_spill] sm:$0xff] }
 0x309   : > { %8322 = vmatprep.mubr.f32.mxu1 %v13260_v45  ;;  %8925 = vmatprep.mubr.f32.mxu0 %v10396_v35  ;;  %v13266_v35 = vld [vmem:[#allocation18_spill] sm:$0xff]  ;;  %v13284_v49 = vld [vmem:[#allocation45_spill] sm:$0xff] }
 0x30a   : > { %v13305_v45 = vld [vmem:[#allocation81_spill] sm:$0xff] }
 0x30c   : > { %8323 = vmatmul.mubr.f32.gmra.mrb[4].mxu1 %v13261_v52  ;;  %8926 = vmatmul.mubr.f32.gmra.mrb[6].mxu0 %v10406_v43  ;;  %v13267_v43 = vld [vmem:[#allocation19_spill] sm:$0xff] }
 0x30d   : > { %8325 = vmatprep.mubr.f32.mxu1 %v13262_v59  ;;  %8928 = vmatprep.mubr.f32.mxu0 %v10416_v57  ;;  %v13268_v57 = vld [vmem:[#allocation20_spill] sm:$0xff]  ;;  %v13307_v52 = vld [vmem:[#allocation87_spill] sm:$0xff]  ;;  %v13308_v59 = vld [vmem:[#allocation85_spill] sm:$0xff] }
 0x310   : > { %8326 = vmatmul.mubr.f32.gmra.mrb[6].mxu1 %v13263_v3  ;;  %8929 = vmatmul.mubr.f32.gmra.mrb[8].mxu0 %v10426_v7  ;;  %v13269_v7 = vld [vmem:[#allocation21_spill] sm:$0xff]  ;;  %v13309_v3 = vld [vmem:[#allocation78_spill] sm:$0xff] }
 0x311   : > { %8328 = vmatprep.mubr.f32.mxu1 %v13264_v17  ;;  %8931 = vmatprep.mubr.f32.mxu0 %v10436_v27  ;;  %v13270_v27 = vld [vmem:[#allocation23_spill] sm:$0xff]  ;;  %v13310_v17 = vld [vmem:[#allocation90_spill] sm:$0xff] }
 0x314   : > { %8329 = vmatmul.mubr.f32.gmra.mrb[8].mxu1 %v13265_v28  ;;  %8932 = vmatmul.mubr.f32.gmra.mrb[10].mxu0 %v10456_v46  ;;  %v13271_v46 = vld [vmem:[#allocation26_spill] sm:$0xff]  ;;  %v13311_v28 = vld [vmem:[#allocation79_spill] sm:$0xff] }
 0x315   : > { %8331 = vmatprep.mubr.f32.mxu1 %v13266_v35  ;;  %8934 = vmatprep.mubr.f32.mxu0 %v10469_v0  ;;  %v13272_v0 = vld [vmem:[#allocation22_spill] sm:$0xff] }
 0x316   : > { %v13312_v35 = vld [vmem:[#allocation82_spill] sm:$0xff] }
 0x318   : > { %8332 = vmatmul.mubr.f32.gmra.mrb[10].mxu1 %v13267_v43  ;;  %8935 = vmatmul.mubr.f32.gmra.mrb[12].mxu0 %v10484_v39  ;;  %v13273_v39 = vld [vmem:[#allocation24_spill] sm:$0xff]  ;;  %v13313_v43 = vld [vmem:[#allocation83_spill] sm:$0xff] }
 0x319   : > { %8334 = vmatprep.mubr.f32.mxu1 %v13268_v57  ;;  %8937 = vmatprep.mubr.f32.mxu0 %v10504_v29  ;;  %v13274_v29 = vld [vmem:[#allocation25_spill] sm:$0xff]  ;;  %v13314_v57 = vld [vmem:[#allocation84_spill] sm:$0xff] }
 0x31c   : > { %8335 = vmatmul.mubr.f32.gmra.mrb[12].mxu1 %v13269_v7  ;;  %8938 = vmatmul.mubr.f32.gmra.mrb[14].mxu0 %v10531_v21  ;;  %v13275_v21 = vld [vmem:[#allocation27_spill] sm:$0xff]  ;;  %v13315_v7 = vld [vmem:[#allocation86_spill] sm:$0xff] }
 0x31d   : > { %8337 = vmatprep.mubr.f32.mxu1 %v13270_v27  ;;  %8940 = vmatprep.mubr.f32.mxu0 %v10489_v11  ;;  %v13276_v11 = vld [vmem:[#allocation30_spill] sm:$0xff]  ;;  %v13316_v27 = vld [vmem:[#allocation88_spill] sm:$0xff] }
 0x320   : > { %8338 = vmatmul.mubr.f32.gmra.mrb[14].mxu1 %v13271_v46  ;;  %8941 = vmatmul.mubr.f32.gmra.mrb[16].mxu0 %v10497_v61  ;;  %v13277_v61 = vld [vmem:[#allocation31_spill] sm:$0xff]  ;;  %v13317_v46 = vld [vmem:[#allocation89_spill] sm:$0xff] }
 0x321   : > { %8340 = vmatprep.mubr.f32.mxu1 %v13272_v0  ;;  %8943 = vmatprep.mubr.f32.mxu0 %v10512_v51  ;;  %v13278_v51 = vld [vmem:[#allocation33_spill] sm:$0xff]  ;;  %v13318_v0 = vld [vmem:[#allocation91_spill] sm:$0xff] }
 0x324   : > { %8341 = vmatmul.mubr.f32.gmra.mrb[16].mxu1 %v13273_v39  ;;  %8944 = vmatmul.mubr.f32.gmra.mrb[18].mxu0 %v10524_v12  ;;  %v13279_v12 = vld [vmem:[#allocation35_spill] sm:$0xff]  ;;  %v13319_v39 = vld [vmem:[#allocation92_spill] sm:$0xff] }
 0x325   : > { %8343 = vmatprep.mubr.f32.mxu1 %v13274_v29  ;;  %8946 = vmatprep.mubr.f32.mxu0 %v10539_v63  ;;  %v13280_v63 = vld [vmem:[#allocation36_spill] sm:$0xff]  ;;  %v13320_v29 = vld [vmem:[#allocation94_spill] sm:$0xff] }
 0x328   : > { %8344 = vmatmul.mubr.f32.gmra.mrb[18].mxu1 %v13275_v21  ;;  %8947 = vmatmul.mubr.f32.gmra.mrb[20].mxu0 %v13164_v14  ;;  %v13285_v14 = vld [vmem:[#allocation47_spill] sm:$0xff]  ;;  %v13321_v21 = vld [vmem:[#allocation93_spill] sm:$0xff] }
 0x329   : > { %8346 = vmatprep.mubr.f32.mxu1 %v13276_v11  ;;  %8949 = vmatprep.mubr.f32.mxu0 %v13165_v16  ;;  %v13286_v16 = vld [vmem:[#allocation50_spill] sm:$0xff]  ;;  %v13322_v11 = vld [vmem:[#allocation95_spill] sm:$0xff] }
 0x32c   : > { %8347 = vmatmul.mubr.f32.gmra.mrb[20].mxu1 %v13277_v61  ;;  %8950 = vmatmul.mubr.f32.gmra.mrb[22].mxu0 %v13166_v37  ;;  %v13287_v37 = vld [vmem:[#allocation52_spill] sm:$0xff] }
 0x32d   : > { %8349 = vmatprep.mubr.f32.mxu1 %v13278_v51  ;;  %8952 = vmatprep.mubr.f32.mxu0 %v13167_v41  ;;  %v13288_v41 = vld [vmem:[#allocation53_spill] sm:$0xff]  ;;  %v13323_v61 = vld [vmem:[#allocation96_spill] sm:$0xff] }
 0x32e   : > { %v13324_v51 = vld [vmem:[#allocation97_spill] sm:$0xff] }
 0x330   : > { %8350 = vmatmul.mubr.f32.gmra.mrb[22].mxu1 %v13279_v12  ;;  %8953 = vmatmul.mubr.f32.gmra.mrb[24].mxu0 %v13168_v25  ;;  %v13289_v25 = vld [vmem:[#allocation55_spill] sm:$0xff]  ;;  %v13325_v12 = vld [vmem:[#allocation98_spill] sm:$0xff] }
 0x331   : > { %8352 = vmatprep.mubr.f32.mxu1 %v13280_v63  ;;  %8955 = vmatprep.mubr.f32.mxu0 %v13169_v55  ;;  %v13290_v55 = vld [vmem:[#allocation56_spill] sm:$0xff]  ;;  %v13326_v63 = vld [vmem:[#allocation99_spill] sm:$0xff] }
 0x334   : > { %8353 = vmatmul.mubr.f32.gmra.mrb[24].mxu1 %v13281_v9  ;;  %8956 = vmatmul.mubr.f32.gmra.mrb[26].mxu0 %v13170_v23  ;;  %v13291_v23 = vld [vmem:[#allocation60_spill] sm:$0xff]  ;;  %v13327_v9 = vld [vmem:[#allocation101_spill] sm:$0xff] }
 0x335   : > { %8355 = vmatprep.mubr.f32.mxu1 %v13282_v15  ;;  %8958 = vmatprep.mubr.f32.mxu0 %v13171_v1  ;;  %v13292_v1 = vld [vmem:[#allocation61_spill] sm:$0xff]  ;;  %v13328_v15 = vld [vmem:[#allocation100_spill] sm:$0xff] }
 0x338   : > { %8356 = vmatmul.mubr.f32.gmra.mrb[26].mxu1 %v13283_v13  ;;  %8959 = vmatmul.mubr.f32.gmra.mrb[28].mxu0 %v13172_v20  ;;  %v13293_v20 = vld [vmem:[#allocation63_spill] sm:$0xff]  ;;  %v13329_v13 = vld [vmem:[#allocation102_spill] sm:$0xff] }
 0x339   : > { %8358 = vmatprep.mubr.f32.mxu1 %v13284_v49  ;;  %8961 = vmatprep.mubr.f32.mxu0 %v13173_v50  ;;  %v13294_v50 = vld [vmem:[#allocation65_spill] sm:$0xff]  ;;  %v13330_v49 = vld [vmem:[#allocation104_spill] sm:$0xff] }
 0x33c   : > { %8359 = vmatmul.mubr.f32.gmra.mrb[28].mxu1 %v13285_v14  ;;  %8962 = vmatmul.mubr.f32.gmra.mrb[30].mxu0 %v13174_v44  ;;  %v13295_v44 = vld [vmem:[#allocation67_spill] sm:$0xff] }
 0x33d   : > { %8361 = vmatprep.mubr.f32.mxu1 %v13286_v16  ;;  %8964 = vmatprep.mubr.f32.mxu0 %v13175_v26  ;;  %v13296_v26 = vld [vmem:[#allocation69_spill] sm:$0xff]  ;;  %v13331_v14 = vld [vmem:[#allocation103_spill] sm:$0xff] }
 0x33e   : > { %v13332_v16 = vld [vmem:[#allocation105_spill] sm:$0xff] }
 0x340   : > { %8362 = vmatmul.mubr.f32.gmra.mrb[30].mxu1 %v13287_v37  ;;  %8965 = vmatmul.mubr.f32.gmra.mrb[32].mxu0 %v13176_v56  ;;  %v13297_v56 = vld [vmem:[#allocation70_spill] sm:$0xff] }
 0x341   : > { %8364 = vmatprep.mubr.f32.mxu1 %v13288_v41  ;;  %8967 = vmatprep.mubr.f32.mxu0 %v13177_v54  ;;  %v13298_v54 = vld [vmem:[#allocation71_spill] sm:$0xff]  ;;  %v13333_v37 = vld [vmem:[#allocation106_spill] sm:$0xff] }
 0x342   : > { %v13334_v41 = vld [vmem:[#allocation107_spill] sm:$0xff] }
 0x344   : > { %8365 = vmatmul.mubr.f32.gmra.mrb[32].mxu1 %v13289_v25  ;;  %8968 = vmatmul.mubr.f32.gmra.mrb[34].mxu0 %v13178_v4  ;;  %v13299_v4 = vld [vmem:[#allocation72_spill] sm:$0xff] }
 0x345   : > { %8367 = vmatprep.mubr.f32.mxu1 %v13290_v55  ;;  %8970 = vmatprep.mubr.f32.mxu0 %v13179_v22  ;;  %v13300_v22 = vld [vmem:[#allocation73_spill] sm:$0xff]  ;;  %v13335_v25 = vld [vmem:[#allocation108_spill] sm:$0xff] }
 0x346   : > { %v13336_v55 = vld [vmem:[#allocation109_spill] sm:$0xff] }
 0x348   : > { %8368 = vmatmul.mubr.f32.gmra.mrb[34].mxu1 %v13291_v23  ;;  %8971 = vmatmul.mubr.f32.gmra.mrb[36].mxu0 %v13180_v34  ;;  %v13301_v34 = vld [vmem:[#allocation75_spill] sm:$0xff] }
 0x349   : > { %8370 = vmatprep.mubr.f32.mxu1 %v13292_v1  ;;  %8973 = vmatprep.mubr.f32.mxu0 %v13181_v18  ;;  %v13302_v18 = vld [vmem:[#allocation74_spill] sm:$0xff]  ;;  %v13337_v23 = vld [vmem:[#allocation111_spill] sm:$0xff] }
 0x34a   : > { %v13338_v1 = vld [vmem:[#allocation114_spill] sm:$0xff] }
 0x34c   : > { %8371 = vmatmul.mubr.f32.gmra.mrb[36].mxu1 %v13293_v20  ;;  %8974 = vmatmul.mubr.f32.gmra.mrb[38].mxu0 %v13182_v36  ;;  %v13303_v36 = vld [vmem:[#allocation77_spill] sm:$0xff] }
 0x34d   : > { %8373 = vmatprep.mubr.f32.mxu1 %v13294_v50  ;;  %8976 = vmatprep.mubr.f32.mxu0 %v13183_v30  ;;  %v13304_v30 = vld [vmem:[#allocation76_spill] sm:$0xff]  ;;  %v13339_v20 = vld [vmem:[#allocation113_spill] sm:$0xff] }
 0x34e   : > { %v13340_v50 = vld [vmem:[#allocation116_spill] sm:$0xff] }
 0x350   : > { %8374 = vmatmul.mubr.f32.gmra.mrb[38].mxu1 %v13295_v44  ;;  %8977 = vmatmul.mubr.f32.gmra.mrb[40].mxu0 %v13184_v48  ;;  %v13306_v48 = vld [vmem:[#allocation80_spill] sm:$0xff]  ;;  %v13341_v44 = vld [vmem:[#allocation115_spill] sm:$0xff] }
 0x351   : > { %8376 = vmatprep.mubr.f32.mxu1 %v13296_v26  ;;  %8979 = vmatprep.mubr.f32.mxu0 %v13297_v56  ;;  %v13342_v26 = vld [vmem:[#allocation117_spill] sm:$0xff]  ;;  %v13343_v56 = vld [vmem:[#allocation118_spill] sm:$0xff] }
 0x354   : > { %8377 = vmatmul.mubr.f32.gmra.mrb[40].mxu1 %v13298_v54  ;;  %8980 = vmatmul.mubr.f32.gmra.mrb[42].mxu0 %v13299_v4  ;;  %v13344_v54 = vld [vmem:[#allocation119_spill] sm:$0xff]  ;;  %v13345_v4 = vld [vmem:[#allocation121_spill] sm:$0xff] }
 0x355   : > { %8379 = vmatprep.mubr.f32.mxu1 %v13300_v22  ;;  %8982 = vmatprep.mubr.f32.mxu0 %v13301_v34  ;;  %v13347_v22 = vld [vmem:[#allocation122_spill] sm:$0xff]  ;;  %v13349_v34 = vld [vmem:[#allocation123_spill] sm:$0xff] }
 0x358   : > { %8380 = vmatmul.mubr.f32.gmra.mrb[42].mxu1 %v13302_v18  ;;  %8983 = vmatmul.mubr.f32.gmra.mrb[44].mxu0 %v13303_v36  ;;  %v13350_v18 = vld [vmem:[#allocation125_spill] sm:$0xff]  ;;  %v13351_v36 = vld [vmem:[#allocation126_spill] sm:$0xff] }
 0x359   : > { %8382 = vmatprep.mubr.f32.mxu1 %v13304_v30  ;;  %8985 = vmatprep.mubr.f32.mxu0 %v13305_v45  ;;  %v13352_v30 = vld [vmem:[#allocation127_spill] sm:$0xff]  ;;  %v13353_v45 = vld [vmem:[#allocation128_spill] sm:$0xff] }
 0x35c   : > { %8383 = vmatmul.mubr.f32.gmra.mrb[44].mxu1 %v13306_v48  ;;  %8986 = vmatmul.mubr.f32.gmra.mrb[46].mxu0 %v13307_v52  ;;  %v13354_v48 = vld [vmem:[#allocation129_spill] sm:$0xff]  ;;  %v13355_v52 = vld [vmem:[#allocation130_spill] sm:$0xff] }
 0x35d   : > { %8385 = vmatprep.mubr.f32.mxu1 %v13308_v59  ;;  %8988 = vmatprep.mubr.f32.mxu0 %v13309_v3  ;;  %v13356_v59 = vld [vmem:[#allocation131_spill] sm:$0xff]  ;;  %v13357_v3 = vld [vmem:[#allocation132_spill] sm:$0xff] }
 0x360   : > { %8386 = vmatmul.mubr.f32.gmra.mrb[46].mxu1 %v13310_v17  ;;  %8989 = vmatmul.mubr.f32.gmra.mrb[48].mxu0 %v13311_v28  ;;  %v13358_v17 = vld [vmem:[#allocation133_spill] sm:$0xff]  ;;  %v13359_v28 = vld [vmem:[#allocation134_spill] sm:$0xff] }
 0x361   : > { %8388 = vmatprep.mubr.f32.mxu1 %v13312_v35  ;;  %8991 = vmatprep.mubr.f32.mxu0 %v13313_v43  ;;  %v13360_v35 = vld [vmem:[#allocation135_spill] sm:$0xff]  ;;  %v13361_v43 = vld [vmem:[#allocation136_spill] sm:$0xff] }
 0x364   : > { %8389 = vmatmul.mubr.f32.gmra.mrb[48].mxu1 %v13314_v57  ;;  %8992 = vmatmul.mubr.f32.gmra.mrb[50].mxu0 %v13315_v7  ;;  %v13362_v57 = vld [vmem:[#allocation137_spill] sm:$0xff]  ;;  %v13363_v7 = vld [vmem:[#allocation139_spill] sm:$0xff] }
 0x365   : > { %8391 = vmatprep.mubr.f32.mxu1 %v13316_v27  ;;  %8994 = vmatprep.mubr.f32.mxu0 %v13317_v46  ;;  %v13364_v27 = vld [vmem:[#allocation138_spill] sm:$0xff]  ;;  %v13365_v46 = vld [vmem:[#allocation141_spill] sm:$0xff] }
 0x368   : > { %8392 = vmatmul.mubr.f32.gmra.mrb[50].mxu1 %v13318_v0  ;;  %8995 = vmatmul.mubr.f32.gmra.mrb[52].mxu0 %v13319_v39  ;;  %v13366_v0 = vld [vmem:[#allocation140_spill] sm:$0xff]  ;;  %v13367_v39 = vld [vmem:[#allocation145_spill] sm:$0xff] }
 0x369   : > { %8394 = vmatprep.mubr.f32.mxu1 %v13320_v29  ;;  %8997 = vmatprep.mubr.f32.mxu0 %v13321_v21  ;;  %v13368_v29 = vld [vmem:[#allocation144_spill] sm:$0xff]  ;;  %v13369_v21 = vld [vmem:[#allocation151_spill] sm:$0xff] }
 0x36c   : > { %8395 = vmatmul.mubr.f32.gmra.mrb[52].mxu1 %v13322_v11  ;;  %8998 = vmatmul.mubr.f32.gmra.mrb[54].mxu0 %v13323_v61  ;;  %v13370_v11 = vld [vmem:[#allocation149_spill] sm:$0xff]  ;;  %v13371_v61 = vld [vmem:[#allocation142_spill] sm:$0xff] }
 0x36d   : > { %8397 = vmatprep.mubr.f32.mxu1 %v13324_v51  ;;  %9000 = vmatprep.mubr.f32.mxu0 %v13325_v12  ;;  %v13372_v51 = vld [vmem:[#allocation154_spill] sm:$0xff]  ;;  %v13373_v12 = vld [vmem:[#allocation143_spill] sm:$0xff] }
 0x370   : > { %8398 = vmatmul.mubr.f32.gmra.mrb[54].mxu1 %v13326_v63  ;;  %9001 = vmatmul.mubr.f32.gmra.mrb[56].mxu0 %v13327_v9  ;;  %v13374_v63 = vld [vmem:[#allocation146_spill] sm:$0xff]  ;;  %v13375_v9 = vld [vmem:[#allocation147_spill] sm:$0xff] }
 0x371   : > { %8400 = vmatprep.mubr.f32.mxu1 %v13328_v15  ;;  %9003 = vmatprep.mubr.f32.mxu0 %v13329_v13  ;;  %v13376_v15 = vld [vmem:[#allocation148_spill] sm:$0xff]  ;;  %v13377_v13 = vld [vmem:[#allocation150_spill] sm:$0xff] }
 0x374   : > { %8401 = vmatmul.mubr.f32.gmra.mrb[56].mxu1 %v13330_v49  ;;  %9004 = vmatmul.mubr.f32.gmra.mrb[58].mxu0 %v13331_v14  ;;  %v13378_v49 = vld [vmem:[#allocation152_spill] sm:$0xff]  ;;  %v13379_v14 = vld [vmem:[#allocation153_spill] sm:$0xff] }
 0x375   : > { %8403 = vmatprep.mubr.f32.mxu1 %v13332_v16  ;;  %9006 = vmatprep.mubr.f32.mxu0 %v13333_v37  ;;  %v13380_v16 = vld [vmem:[#allocation155_spill] sm:$0xff]  ;;  %v13381_v37 = vld [vmem:[#allocation156_spill] sm:$0xff] }
 0x378   : > { %8404 = vmatmul.mubr.f32.gmra.mrb[58].mxu1 %v13334_v41  ;;  %9007 = vmatmul.mubr.f32.gmra.mrb[60].mxu0 %v13335_v25  ;;  %v13382_v41 = vld [vmem:[#allocation158_spill] sm:$0xff]  ;;  %v13383_v25 = vld [vmem:[#allocation157_spill] sm:$0xff] }
 0x379   : > { %8406 = vmatprep.mubr.f32.mxu1 %v13336_v55  ;;  %9009 = vmatprep.mubr.f32.mxu0 %v13205_v2  ;;  %v13346_v2 = vld [vmem:[#allocation120_spill] sm:$0xff]  ;;  %v13384_v55 = vld [vmem:[#allocation159_spill] sm:$0xff] }
 0x37c   : > { %8407 = vmatmul.mubr.f32.gmra.mrb[60].mxu1 %v13337_v23  ;;  %9010 = vmatmul.mubr.f32.gmra.mrb[62].mxu0 %v13206_v58  ;;  %v13348_v58 = vld [vmem:[#allocation124_spill] sm:$0xff] }
 0x37d   : > { %8409 = vmatprep.mubr.f32.mxu1 %v13338_v1  ;;  %9012 = vmatprep.mubr.f32.mxu0 %v13339_v20  ;;  %v13385_v23 = vld [vmem:[#allocation160_spill] sm:$0xff]  ;;  %v13386_v1 = vld [vmem:[#allocation161_spill] sm:$0xff]  ;;  %v13387_v20 = vld [vmem:[#allocation162_spill] sm:$0xff] }
 0x380   : > { %8410 = vmatmul.mubr.f32.gmra.mrb[62].mxu1 %v13340_v50  ;;  %9013 = vmatmul.mubr.f32.gmra.mrb[64].mxu0 %v13341_v44  ;;  %v13388_v50 = vld [vmem:[#allocation163_spill] sm:$0xff]  ;;  %v13389_v44 = vld [vmem:[#allocation165_spill] sm:$0xff] }
 0x381   : > { %8412 = vmatprep.mubr.f32.mxu1 %v13342_v26  ;;  %9015 = vmatprep.mubr.f32.mxu0 %v13343_v56  ;;  %v13390_v26 = vld [vmem:[#allocation164_spill] sm:$0xff]  ;;  %v13391_v56 = vld [vmem:[#allocation166_spill] sm:$0xff] }
 0x384   : > { %8413 = vmatmul.mubr.f32.gmra.mrb[64].mxu1 %v13344_v54  ;;  %9016 = vmatmul.mubr.f32.gmra.mrb[66].mxu0 %v13345_v4  ;;  %v13392_v54 = vld [vmem:[#allocation168_spill] sm:$0xff]  ;;  %v13393_v4 = vld [vmem:[#allocation167_spill] sm:$0xff] }
 0x385   : > { %8415 = vmatprep.mubr.f32.mxu1 %v13346_v2  ;;  %9018 = vmatprep.mubr.f32.mxu0 %v13347_v22  ;;  %v13394_v2 = vld [vmem:[#allocation169_spill] sm:$0xff]  ;;  %v13395_v22 = vld [vmem:[#allocation170_spill] sm:$0xff] }
 0x388   : > { %8416 = vmatmul.mubr.f32.gmra.mrb[66].mxu1 %v13348_v58  ;;  %9019 = vmatmul.mubr.f32.gmra.mrb[68].mxu0 %v13349_v34  ;;  %v13396_v58 = vld [vmem:[#allocation171_spill] sm:$0xff]  ;;  %v13397_v34 = vld [vmem:[#allocation172_spill] sm:$0xff] }
 0x389   : > { %8418 = vmatprep.mubr.f32.mxu1 %v13350_v18  ;;  %9021 = vmatprep.mubr.f32.mxu0 %v13351_v36  ;;  %v13398_v18 = vld [vmem:[#allocation173_spill] sm:$0xff]  ;;  %v13399_v36 = vld [vmem:[#allocation175_spill] sm:$0xff] }
 0x38c   : > { %8419 = vmatmul.mubr.f32.gmra.mrb[68].mxu1 %v13352_v30  ;;  %9022 = vmatmul.mubr.f32.gmra.mrb[70].mxu0 %v13353_v45  ;;  %v13400_v30 = vld [vmem:[#allocation176_spill] sm:$0xff]  ;;  %v13401_v45 = vld [vmem:[#allocation178_spill] sm:$0xff] }
 0x38d   : > { %8421 = vmatprep.mubr.f32.mxu1 %v13354_v48  ;;  %9024 = vmatprep.mubr.f32.mxu0 %v13355_v52  ;;  %v13402_v48 = vld [vmem:[#allocation180_spill] sm:$0xff]  ;;  %v13403_v52 = vld [vmem:[#allocation179_spill] sm:$0xff] }
 0x390   : > { %8422 = vmatmul.mubr.f32.gmra.mrb[70].mxu1 %v13356_v59  ;;  %9025 = vmatmul.mubr.f32.gmra.mrb[72].mxu0 %v13357_v3  ;;  %v13404_v59 = vld [vmem:[#allocation181_spill] sm:$0xff]  ;;  %v13405_v3 = vld [vmem:[#allocation182_spill] sm:$0xff] }
 0x391   : > { %8424 = vmatprep.mubr.f32.mxu1 %v13358_v17  ;;  %9027 = vmatprep.mubr.f32.mxu0 %v13359_v28  ;;  %v13406_v17 = vld [vmem:[#allocation183_spill] sm:$0xff]  ;;  %v13408_v28 = vld [vmem:[#allocation184_spill] sm:$0xff] }
 0x394   : > { %8425 = vmatmul.mubr.f32.gmra.mrb[72].mxu1 %v13360_v35  ;;  %9028 = vmatmul.mubr.f32.gmra.mrb[74].mxu0 %v13361_v43  ;;  %v13409_v35 = vld [vmem:[#allocation186_spill] sm:$0xff]  ;;  %v13410_v43 = vld [vmem:[#allocation188_spill] sm:$0xff] }
 0x395   : > { %8427 = vmatprep.mubr.f32.mxu1 %v13362_v57  ;;  %9030 = vmatprep.mubr.f32.mxu0 %v13363_v7  ;;  %v13412_v57 = vld [vmem:[#allocation189_spill] sm:$0xff]  ;;  %v13413_v7 = vld [vmem:[#allocation190_spill] sm:$0xff] }
 0x398   : > { %8428 = vmatmul.mubr.f32.gmra.mrb[74].mxu1 %v13364_v27  ;;  %9031 = vmatmul.mubr.f32.gmra.mrb[76].mxu0 %v13365_v46  ;;  %v13414_v27 = vld [vmem:[#allocation191_spill] sm:$0xff]  ;;  %v13415_v46 = vld [vmem:[#allocation192_spill] sm:$0xff] }
 0x399   : > { %8430 = vmatprep.mubr.f32.mxu1 %v13366_v0  ;;  %9033 = vmatprep.mubr.f32.mxu0 %v13367_v39  ;;  %v13416_v0 = vld [vmem:[#allocation194_spill] sm:$0xff]  ;;  %v13417_v39 = vld [vmem:[#allocation196_spill] sm:$0xff] }
 0x39c   : > { %8431 = vmatmul.mubr.f32.gmra.mrb[76].mxu1 %v13368_v29  ;;  %9034 = vmatmul.mubr.f32.gmra.mrb[78].mxu0 %v13369_v21  ;;  %v13418_v29 = vld [vmem:[#allocation197_spill] sm:$0xff] }
 0x39d   : > { %8433 = vmatprep.mubr.f32.mxu1 %v13370_v11  ;;  %9036 = vmatprep.mubr.f32.mxu0 %v13371_v61  ;;  %v13419_v11 = vld [vmem:[#allocation198_spill] sm:$0xff] }
 0x3a0   : > { %8434 = vmatmul.mubr.f32.gmra.mrb[78].mxu1 %v13372_v51  ;;  %9037 = vmatmul.mubr.f32.gmra.mrb[80].mxu0 %v13373_v12  ;;  %v13420_v51 = vld [vmem:[#allocation199_spill] sm:$0xff]  ;;  %v13422_v12 = vld [vmem:[#allocation202_spill] sm:$0xff] }
 0x3a1   : > { %8436 = vmatprep.mubr.f32.mxu1 %v13374_v63  ;;  %9039 = vmatprep.mubr.f32.mxu0 %v13375_v9 }
 0x3a4   : > { %8437 = vmatmul.mubr.f32.gmra.mrb[80].mxu1 %v13376_v15  ;;  %9040 = vmatmul.mubr.f32.gmra.mrb[82].mxu0 %v13377_v13  ;;  %v13423_v13 = vld [vmem:[#allocation201_spill] sm:$0xff] }
 0x3a5   : > { %8439 = vmatprep.mubr.f32.mxu1 %v13378_v49  ;;  %9042 = vmatprep.mubr.f32.mxu0 %v13379_v14 }
 0x3a8   : > { %8440 = vmatmul.mubr.f32.gmra.mrb[82].mxu1 %v13380_v16  ;;  %9043 = vmatmul.mubr.f32.gmra.mrb[84].mxu0 %v13381_v37  ;;  %v13424_v16 = vld [vmem:[#allocation203_spill] sm:$0xff] }
 0x3a9   : > { %8442 = vmatprep.mubr.f32.mxu1 %v13382_v41  ;;  %9045 = vmatprep.mubr.f32.mxu0 %v13383_v25 }
 0x3ac   : > { %8443 = vmatmul.mubr.f32.gmra.mrb[84].mxu1 %v13384_v55  ;;  %9046 = vmatmul.mubr.f32.gmra.mrb[86].mxu0 %v13385_v23 }
 0x3ad   : > { %8445 = vmatprep.mubr.f32.mxu1 %v13386_v1  ;;  %9048 = vmatprep.mubr.f32.mxu0 %v13387_v20  ;;  %v13425_v1 = vld [vmem:[#allocation207_spill] sm:$0xff] }
 0x3b0   : > { %8446 = vmatmul.mubr.f32.gmra.mrb[86].mxu1 %v13388_v50  ;;  %9049 = vmatmul.mubr.f32.gmra.mrb[88].mxu0 %v13389_v44  ;;  %v13426_v50 = vld [vmem:[#allocation213_spill] sm:$0xff]  ;;  %v13427_v44 = vld [vmem:[#allocation211_spill] sm:$0xff] }
 0x3b1   : > { %8448 = vmatprep.mubr.f32.mxu1 %v13390_v26  ;;  %9051 = vmatprep.mubr.f32.mxu0 %v13391_v56  ;;  %v13428_v26 = vld [vmem:[#allocation205_spill] sm:$0xff] }
 0x3b4   : > { %8449 = vmatmul.mubr.f32.gmra.mrb[88].mxu1 %v13392_v54  ;;  %9052 = vmatmul.mubr.f32.gmra.mrb[90].mxu0 %v13393_v4 }
 0x3b5   : > { %8451 = vmatprep.mubr.f32.mxu1 %v13394_v2  ;;  %9054 = vmatprep.mubr.f32.mxu0 %v13395_v22 }
 0x3b8   : > { %8452 = vmatmul.mubr.f32.gmra.mrb[90].mxu1 %v13396_v58  ;;  %9055 = vmatmul.mubr.f32.gmra.mrb[92].mxu0 %v13397_v34  ;;  %v13429_v34 = vld [vmem:[#allocation215_spill] sm:$0xff] }
 0x3b9   : > { %8454 = vmatprep.mubr.f32.mxu1 %v13398_v18  ;;  %9057 = vmatprep.mubr.f32.mxu0 %v13235_v53  ;;  %v13407_v53 = vld [vmem:[#allocation185_spill] sm:$0xff] }
 0x3bc   : > { %8455 = vmatmul.mubr.f32.gmra.mrb[92].mxu1 %v13399_v36  ;;  %9058 = vmatmul.mubr.f32.gmra.mrb[94].mxu0 %v13400_v30  ;;  %v13430_v36 = vld [vmem:[#allocation206_spill] sm:$0xff] }
 0x3bd   : > { %8457 = vmatprep.mubr.f32.mxu1 %v13401_v45  ;;  %9060 = vmatprep.mubr.f32.mxu0 %v13237_v8  ;;  %v13411_v8 = vld [vmem:[#allocation187_spill] sm:$0xff]  ;;  %v13431_v45 = vld [vmem:[#allocation208_spill] sm:$0xff] }
 0x3c0   : > { %8458 = vmatmul.mubr.f32.gmra.mrb[94].mxu1 %v13402_v48  ;;  %9061 = vmatmul.mubr.f32.gmra.mrb[96].mxu0 %v13403_v52 }
 0x3c1   : > { %8460 = vmatprep.mubr.f32.mxu1 %v13404_v59  ;;  %9063 = vmatprep.mubr.f32.mxu0 %v13405_v3 }
 0x3c4   : > { %8461 = vmatmul.mubr.f32.gmra.mrb[96].mxu1 %v13406_v17  ;;  %9064 = vmatmul.mubr.f32.gmra.mrb[98].mxu0 %v13407_v53 }
 0x3c5   : > { %8463 = vmatprep.mubr.f32.mxu1 %v13408_v28  ;;  %9066 = vmatprep.mubr.f32.mxu0 %v13409_v35  ;;  %v13432_v28 = vld [vmem:[#allocation210_spill] sm:$0xff] }
 0x3c8   : > { %8464 = vmatmul.mubr.f32.gmra.mrb[98].mxu1 %v13410_v43  ;;  %9067 = vmatmul.mubr.f32.gmra.mrb[100].mxu0 %v13411_v8  ;;  %v13433_v43 = vld [vmem:[#allocation212_spill] sm:$0xff]  ;;  %v13434_v8 = vld [vmem:[#allocation214_spill] sm:$0xff] }
 0x3c9   : > { %8466 = vmatprep.mubr.f32.mxu1 %v13412_v57  ;;  %9069 = vmatprep.mubr.f32.mxu0 %v13413_v7 }
 0x3cc   : > { %8467 = vmatmul.mubr.f32.gmra.mrb[100].mxu1 %v13414_v27  ;;  %9070 = vmatmul.mubr.f32.gmra.mrb[102].mxu0 %v11373_v40  ;;  %v13421_v40 = vld [vmem:[#allocation200_spill] sm:$0xff] }
 0x3cd   : > { %8469 = vmatprep.mubr.f32.mxu1 %v13415_v46  ;;  %9072 = vmatprep.mubr.f32.mxu0 %v13243_v38  ;;  %v12086_v38 = vld [vmem:[%s12542_s2] ss:$0 sm:$0xff] }
 0x3d0   : > { %8470 = vmatmul.mubr.f32.gmra.mrb[102].mxu1 %v13416_v0  ;;  %9073 = vmatmul.mubr.f32.gmra.mrb[104].mxu0 %v13244_v6 }
 0x3d1   : > { %8472 = vmatprep.mubr.f32.mxu1 %v13417_v39  ;;  %9075 = vmatprep.mubr.f32.mxu0 %v13418_v29  ;;  %v13435_v29 = vld [vmem:[#allocation216_spill] sm:$0xff] }
 0x3d3   : > { %v8918_v21 = vpop.f32.mrb[0].mxu0 }
 0x3d4   : > { %8473 = vmatmul.mubr.f32.gmra.mrb[104].mxu1 %v13419_v11  ;;  %v6098_v61 = vpop.f32.mrb[1].mxu0  ;;  %9076 = vmatmul.mubr.f32.gmra.mrb[106].mxu0 %v13420_v51  ;;  %v13436_v11 = vld [vmem:[#allocation218_spill] sm:$0xff] }
 0x3d5   : > { %8475 = vmatprep.mubr.f32.mxu1 %v13421_v40  ;;  %9078 = vmatprep.mubr.f32.mxu0 %v13422_v12 }
 0x3d7   : > { %v8318_v6 = vpop.f32.mrb[0].mxu1  ;;  %v8921_v63 = vpop.f32.mrb[2].mxu0 }
 0x3d8   : > { %v9156_v9 = vadd.f32 %v8318_v6, %v12086_v38  ;;  %v3196_v15 = vpop.f32.mrb[1].mxu1  ;;  %8476 = vmatmul.mubr.f32.gmra.mrb[106].mxu1 %v13423_v13  ;;  %v6110_v49 = vpop.f32.mrb[3].mxu0  ;;  %9079 = vmatmul.mubr.f32.gmra.mrb[108].mxu0 %v13248_v10 }
 0x3d9   : > { %v9158_v14 = vadd.f32 %v12086_v38, %v3196_v15  ;;  %8478 = vmatprep.mubr.f32.mxu1 %v13424_v16  ;;  %9081 = vmatprep.mubr.f32.mxu0 %v11456_v24  ;;  %v13438_v15 = vld [vmem:[#allocation220_spill] sm:$0xff] }
 0x3da   : > { %v9157_v37 = vadd.f32 %v9156_v9, %v8918_v21  ;;  %v13437_v9 = vld [vmem:[#allocation219_spill] sm:$0xff] }
 0x3db   : > { %v9159_v41 = vadd.f32 %v9158_v14, %v6098_v61  ;;  %v8321_v25 = vpop.f32.mrb[2].mxu1  ;;  %v8924_v55 = vpop.f32.mrb[4].mxu0 }
 0x3dc   : > { %6866 = vst.msk [vmem:[%s12094_s4 + $0x8] sm:$0xff] %vm6864_vm1, %v9157_v37  ;;  %v9160_v10 = vadd.f32 %v8321_v25, %v12086_v38  ;;  %v3210_v23 = vpop.f32.mrb[3].mxu1  ;;  %8479 = vmatmul.mubr.f32.gmra.mrb[108].mxu1 %v13425_v1  ;;  %v6122_v20 = vpop.f32.mrb[5].mxu0  ;;  %9082 = vmatmul.mubr.f32.gmra.mrb[110].mxu0 %v13426_v50  ;;  %v13439_v25 = vld [vmem:[#allocation223_spill] sm:$0xff] }
 0x3dd   : > { %6865 = vst.msk [vmem:[%s12094_s4] sm:$0xff] %vm6864_vm1, %v9159_v41  ;;  %v9162_v24 = vadd.f32 %v12086_v38, %v3210_v23  ;;  %8481 = vmatprep.mubr.f32.mxu1 %v13427_v44  ;;  %9084 = vmatprep.mubr.f32.mxu0 %v13428_v26  ;;  %v13442_v26 = vld [vmem:[#allocation226_spill] sm:$0xff] }
 0x3de   : > { %v9161_v56 = vadd.f32 %v9160_v10, %v8921_v63  ;;  %v13441_v10 = vld [vmem:[#allocation225_spill] sm:$0xff] }
 0x3df   : > { %v9163_v54 = vadd.f32 %v9162_v24, %v6110_v49  ;;  %v8324_v4 = vpop.f32.mrb[4].mxu1  ;;  %v8927_v2 = vpop.f32.mrb[6].mxu0 }
 0x3e0   : > { %6868 = vst.msk [vmem:[%s12094_s4 + $0x18] sm:$0xff] %vm6864_vm1, %v9161_v56  ;;  %v9164_v22 = vadd.f32 %v8324_v4, %v12086_v38  ;;  %v3224_v58 = vpop.f32.mrb[5].mxu1  ;;  %8482 = vmatmul.mubr.f32.gmra.mrb[110].mxu1 %v13429_v34  ;;  %v6134_v18 = vpop.f32.mrb[7].mxu0  ;;  %9085 = vmatmul.mubr.f32.gmra.mrb[112].mxu0 %v13430_v36  ;;  %v13443_v56 = vld [vmem:[#allocation227_spill] sm:$0xff]  ;;  %v13444_v4 = vld [vmem:[#allocation228_spill] sm:$0xff] }
 0x3e1   : > { %6867 = vst.msk [vmem:[%s12094_s4 + $0x10] sm:$0xff] %vm6864_vm1, %v9163_v54  ;;  %v9166_v30 = vadd.f32 %v12086_v38, %v3224_v58  ;;  %8484 = vmatprep.mubr.f32.mxu1 %v13431_v45  ;;  %9087 = vmatprep.mubr.f32.mxu0 %v13250_v5  ;;  %v13446_v45 = vld [vmem:[#allocation230_spill] sm:$0xff] }
 0x3e2   : > { %v9165_v48 = vadd.f32 %v9164_v22, %v8924_v55  ;;  %v13440_v55 = vld [vmem:[#allocation224_spill] sm:$0xff] }
 0x3e3   : > { %v9167_v52 = vadd.f32 %v9166_v30, %v6122_v20  ;;  %v8327_v59 = vpop.f32.mrb[6].mxu1  ;;  %v8930_v3 = vpop.f32.mrb[8].mxu0 }
 0x3e4   : > { %6870 = vst.msk [vmem:[%s12094_s4 + $0x28] sm:$0xff] %vm6864_vm1, %v9165_v48  ;;  %v9168_v17 = vadd.f32 %v8327_v59, %v12086_v38  ;;  %v3238_v53 = vpop.f32.mrb[7].mxu1  ;;  %8485 = vmatmul.mubr.f32.gmra.mrb[112].mxu1 %v13432_v28  ;;  %v6146_v35 = vpop.f32.mrb[9].mxu0  ;;  %9088 = vmatmul.mubr.f32.gmra.mrb[114].mxu0 %v13433_v43 }
 0x3e5   : > { %6869 = vst.msk [vmem:[%s12094_s4 + $0x20] sm:$0xff] %vm6864_vm1, %v9167_v52  ;;  %v9170_v5 = vadd.f32 %v12086_v38, %v3238_v53  ;;  %8487 = vmatprep.mubr.f32.mxu1 %v13434_v8  ;;  %9090 = vmatprep.mubr.f32.mxu0 %v11488_v32  ;;  %v13447_v52 = vld [vmem:[#allocation231_spill] sm:$0xff]  ;;  %v13449_v8 = vld [vmem:[#allocation233_spill] sm:$0xff] }
 0x3e6   : > { %v9169_v57 = vadd.f32 %v9168_v17, %v8927_v2  ;;  %v13445_v2 = vld [vmem:[#allocation229_spill] sm:$0xff] }
 0x3e7   : > { %v9171_v7 = vadd.f32 %v9170_v5, %v6134_v18  ;;  %v8330_v27 = vpop.f32.mrb[8].mxu1  ;;  %v8933_v46 = vpop.f32.mrb[10].mxu0 }
 0x3e8   : > { %6872 = vst.msk [vmem:[%s12094_s4 + $0x38] sm:$0xff] %vm6864_vm1, %v9169_v57  ;;  %v9172_v0 = vadd.f32 %v8330_v27, %v12086_v38  ;;  %v3252_v39 = vpop.f32.mrb[9].mxu1  ;;  %8488 = vmatmul.mubr.f32.gmra.mrb[114].mxu1 %v13435_v29  ;;  %v6158_v21 = vpop.f32.mrb[11].mxu0  ;;  %9091 = vmatmul.mubr.f32.gmra.mrb[116].mxu0 %v11498_v47 }
 0x3e9   : > { %6871 = vst.msk [vmem:[%s12094_s4 + $0x30] sm:$0xff] %vm6864_vm1, %v9171_v7  ;;  %v9174_v32 = vadd.f32 %v12086_v38, %v3252_v39  ;;  %8490 = vmatprep.mubr.f32.mxu1 %v13436_v11  ;;  %9093 = vmatprep.mubr.f32.mxu0 %v13252_v19  ;;  %v13450_v7 = vld [vmem:[#allocation234_spill] sm:$0xff] }
 0x3ea   : > { %v9173_v61 = vadd.f32 %v9172_v0, %v8930_v3  ;;  %v13448_v3 = vld [vmem:[#allocation232_spill] sm:$0xff] }
 0x3eb   : > { %v9175_v51 = vadd.f32 %v9174_v32, %v6146_v35  ;;  %v8333_v40 = vpop.f32.mrb[10].mxu1  ;;  %v8936_v12 = vpop.f32.mrb[12].mxu0  ;;  %v13451_v32 = vld [vmem:[#allocation235_spill] sm:$0xff] }
 0x3ec   : > { %6874 = vst.msk [vmem:[%s12094_s4 + $0x48] sm:$0xff] %vm6864_vm1, %v9173_v61  ;;  %v9176_v6 = vadd.f32 %v8333_v40, %v12086_v38  ;;  %v3266_v63 = vpop.f32.mrb[11].mxu1  ;;  %8491 = vmatmul.mubr.f32.gmra.mrb[116].mxu1 %v13437_v9  ;;  %v6170_v47 = vpop.f32.mrb[13].mxu0  ;;  %9094 = vmatmul.mubr.f32.gmra.mrb[118].mxu0 %v13253_v33 }
 0x3ed   : > { %6873 = vst.msk [vmem:[%s12094_s4 + $0x40] sm:$0xff] %vm6864_vm1, %v9175_v51  ;;  %v9178_v19 = vadd.f32 %v12086_v38, %v3266_v63  ;;  %8493 = vmatprep.mubr.f32.mxu1 %v13438_v15  ;;  %9096 = vmatprep.mubr.f32.mxu0 %v13254_v62 }
 0x3ee   : > { %v9177_v13 = vadd.f32 %v9176_v6, %v8933_v46 }
 0x3ef   : > { %v9179_v49 = vadd.f32 %v9178_v19, %v6158_v21  ;;  %v8336_v14 = vpop.f32.mrb[12].mxu1  ;;  %v8939_v16 = vpop.f32.mrb[14].mxu0 }
 0x3f0   : > { %6876 = vst.msk [vmem:[%s12094_s4 + $0x58] sm:$0xff] %vm6864_vm1, %v9177_v13  ;;  %v9180_v37 = vadd.f32 %v8336_v14, %v12086_v38  ;;  %v3280_v41 = vpop.f32.mrb[13].mxu1  ;;  %8494 = vmatmul.mubr.f32.gmra.mrb[118].mxu1 %v13439_v25  ;;  %v6182_v33 = vpop.f32.mrb[15].mxu0  ;;  %9097 = vmatmul.mubr.f32.gmra.mrb[120].mxu0 %v11540_v60 }
 0x3f1   : > { %6875 = vst.msk [vmem:[%s12094_s4 + $0x50] sm:$0xff] %vm6864_vm1, %v9179_v49  ;;  %v9182_v62 = vadd.f32 %v12086_v38, %v3280_v41  ;;  %8496 = vmatprep.mubr.f32.mxu1 %v13440_v55  ;;  %9099 = vmatprep.mubr.f32.mxu0 %v13441_v10 }
 0x3f2   : > { %v9181_v23 = vadd.f32 %v9180_v37, %v8936_v12 }
 0x3f3   : > { %v9183_v1 = vadd.f32 %v9182_v62, %v6170_v47  ;;  %v8339_v20 = vpop.f32.mrb[14].mxu1  ;;  %v8942_v50 = vpop.f32.mrb[16].mxu0 }
 0x3f4   : > { %6878 = vst.msk [vmem:[%s12094_s4 + $0x68] sm:$0xff] %vm6864_vm1, %v9181_v23  ;;  %v9184_v24 = vadd.f32 %v8339_v20, %v12086_v38  ;;  %v3294_v44 = vpop.f32.mrb[15].mxu1  ;;  %8497 = vmatmul.mubr.f32.gmra.mrb[120].mxu1 %v13442_v26  ;;  %v6194_v60 = vpop.f32.mrb[17].mxu0  ;;  %9100 = vmatmul.mubr.f32.gmra.mrb[122].mxu0 %v13443_v56 }
 0x3f5   : > { %6877 = vst.msk [vmem:[%s12094_s4 + $0x60] sm:$0xff] %vm6864_vm1, %v9183_v1  ;;  %v9186_v54 = vadd.f32 %v12086_v38, %v3294_v44  ;;  %8499 = vmatprep.mubr.f32.mxu1 %v13444_v4  ;;  %9102 = vmatprep.mubr.f32.mxu0 %v13445_v2 }
 0x3f6   : > { %v9185_v22 = vadd.f32 %v9184_v24, %v8939_v16 }
 0x3f7   : > { %v9187_v58 = vadd.f32 %v9186_v54, %v6182_v33  ;;  %v8342_v34 = vpop.f32.mrb[16].mxu1  ;;  %v8945_v18 = vpop.f32.mrb[18].mxu0 }
 0x3f8   : > { %6880 = vst.msk [vmem:[%s12094_s4 + $0x78] sm:$0xff] %vm6864_vm1, %v9185_v22  ;;  %v9188_v36 = vadd.f32 %v8342_v34, %v12086_v38  ;;  %v3308_v30 = vpop.f32.mrb[17].mxu1  ;;  %8500 = vmatmul.mubr.f32.gmra.mrb[122].mxu1 %v13446_v45  ;;  %v6206_v48 = vpop.f32.mrb[19].mxu0  ;;  %9103 = vmatmul.mubr.f32.gmra.mrb[124].mxu0 %v13447_v52 }
 0x3f9   : > { %6879 = vst.msk [vmem:[%s12094_s4 + $0x70] sm:$0xff] %vm6864_vm1, %v9187_v58  ;;  %v9190_v59 = vadd.f32 %v12086_v38, %v3308_v30  ;;  %8502 = vmatprep.mubr.f32.mxu1 %v13448_v3  ;;  %9105 = vmatprep.mubr.f32.mxu0 %v11576_v31 }
 0x3fa   : > { %v9189_v17 = vadd.f32 %v9188_v36, %v8942_v50 }
 0x3fb   : > { %v9191_v53 = vadd.f32 %v9190_v59, %v6194_v60  ;;  %v8345_v28 = vpop.f32.mrb[18].mxu1  ;;  %v8948_v35 = vpop.f32.mrb[20].mxu0 }
 0x3fc   : > { %6882 = vst.msk [vmem:[%s12094_s4 + $0x88] sm:$0xff] %vm6864_vm1, %v9189_v17  ;;  %v9192_v43 = vadd.f32 %v8345_v28, %v12086_v38  ;;  %v3322_v5 = vpop.f32.mrb[19].mxu1  ;;  %8503 = vmatmul.mubr.f32.gmra.mrb[124].mxu1 %v13449_v8  ;;  %v6218_v57 = vpop.f32.mrb[21].mxu0  ;;  %9106 = vmatmul.mubr.f32.gmra.mrb[126].mxu0 %v11583_v42 }
 0x3fd   : > { %6881 = vst.msk [vmem:[%s12094_s4 + $0x80] sm:$0xff] %vm6864_vm1, %v9191_v53  ;;  %v9194_v31 = vadd.f32 %v12086_v38, %v3322_v5  ;;  %8505 = vmatprep.mubr.f32.mxu1 %v13450_v7 }
 0x3fe   : > { %v9193_v27 = vadd.f32 %v9192_v43, %v8945_v18 }
 0x3ff   : > { %v9195_v46 = vadd.f32 %v9194_v31, %v6206_v48  ;;  %v8348_v0 = vpop.f32.mrb[20].mxu1  ;;  %v8951_v39 = vpop.f32.mrb[22].mxu0 }
 0x400   : > { %6884 = vst.msk [vmem:[%s12094_s4 + $0x98] sm:$0xff] %vm6864_vm1, %v9193_v27  ;;  %v9196_v29 = vadd.f32 %v8348_v0, %v12086_v38  ;;  %v3336_v21 = vpop.f32.mrb[21].mxu1  ;;  %8506 = vmatmul.mubr.f32.gmra.mrb[126].mxu1 %v13451_v32  ;;  %v6230_v42 = vpop.f32.mrb[23].mxu0 }
 0x401   : > { %6883 = vst.msk [vmem:[%s12094_s4 + $0x90] sm:$0xff] %vm6864_vm1, %v9195_v46  ;;  %v9198_v11 = vadd.f32 %v12086_v38, %v3336_v21 }
 0x402   : > { %v9197_v61 = vadd.f32 %v9196_v29, %v8948_v35 }
 0x403   : > { %v9199_v51 = vadd.f32 %v9198_v11, %v6218_v57  ;;  %v8351_v40 = vpop.f32.mrb[22].mxu1  ;;  %v8954_v12 = vpop.f32.mrb[24].mxu0 }
 0x404   : > { %6886 = vst.msk [vmem:[%s12094_s4 + $0xa8] sm:$0xff] %vm6864_vm1, %v9197_v61  ;;  %v9200_v6 = vadd.f32 %v8351_v40, %v12086_v38  ;;  %v3350_v63 = vpop.f32.mrb[23].mxu1  ;;  %v6242_v9 = vpop.f32.mrb[25].mxu0 }
 0x405   : > { %6885 = vst.msk [vmem:[%s12094_s4 + $0xa0] sm:$0xff] %vm6864_vm1, %v9199_v51  ;;  %v9202_v47 = vadd.f32 %v12086_v38, %v3350_v63 }
 0x406   : > { %v9201_v19 = vadd.f32 %v9200_v6, %v8951_v39 }
 0x407   : > { %v9203_v15 = vadd.f32 %v9202_v47, %v6230_v42  ;;  %v8354_v13 = vpop.f32.mrb[24].mxu1  ;;  %v8957_v49 = vpop.f32.mrb[26].mxu0 }
 0x408   : > { %6888 = vst.msk [vmem:[%s12094_s4 + $0xb8] sm:$0xff] %vm6864_vm1, %v9201_v19  ;;  %v9204_v14 = vadd.f32 %v8354_v13, %v12086_v38  ;;  %v3364_v16 = vpop.f32.mrb[25].mxu1  ;;  %v6254_v37 = vpop.f32.mrb[27].mxu0 }
 0x409   : > { %6887 = vst.msk [vmem:[%s12094_s4 + $0xb0] sm:$0xff] %vm6864_vm1, %v9203_v15  ;;  %v9206_v41 = vadd.f32 %v12086_v38, %v3364_v16 }
 0x40a   : > { %v9205_v25 = vadd.f32 %v9204_v14, %v8954_v12 }
 0x40b   : > { %v9207_v33 = vadd.f32 %v9206_v41, %v6242_v9  ;;  %v8357_v62 = vpop.f32.mrb[26].mxu1  ;;  %v8960_v55 = vpop.f32.mrb[28].mxu0 }
 0x40c   : > { %6890 = vst.msk [vmem:[%s12094_s4 + $0xc8] sm:$0xff] %vm6864_vm1, %v9205_v25  ;;  %v9208_v10 = vadd.f32 %v8357_v62, %v12086_v38  ;;  %v3378_v23 = vpop.f32.mrb[27].mxu1  ;;  %v6266_v1 = vpop.f32.mrb[29].mxu0 }
 0x40d   : > { %6889 = vst.msk [vmem:[%s12094_s4 + $0xc0] sm:$0xff] %vm6864_vm1, %v9207_v33  ;;  %v9210_v20 = vadd.f32 %v12086_v38, %v3378_v23 }
 0x40e   : > { %v9209_v50 = vadd.f32 %v9208_v10, %v8957_v49 }
 0x40f   : > { %v9211_v24 = vadd.f32 %v9210_v20, %v6254_v37  ;;  %v8360_v44 = vpop.f32.mrb[28].mxu1  ;;  %v8963_v26 = vpop.f32.mrb[30].mxu0 }
 0x410   : > { %6892 = vst.msk [vmem:[%s12094_s4 + $0xd8] sm:$0xff] %vm6864_vm1, %v9209_v50  ;;  %v9212_v60 = vadd.f32 %v8360_v44, %v12086_v38  ;;  %v3392_v56 = vpop.f32.mrb[29].mxu1  ;;  %v6278_v54 = vpop.f32.mrb[31].mxu0 }
 0x411   : > { %6891 = vst.msk [vmem:[%s12094_s4 + $0xd0] sm:$0xff] %vm6864_vm1, %v9211_v24  ;;  %v9214_v4 = vadd.f32 %v12086_v38, %v3392_v56 }
 0x412   : > { %v9213_v2 = vadd.f32 %v9212_v60, %v8960_v55 }
 0x413   : > { %v9215_v22 = vadd.f32 %v9214_v4, %v6266_v1  ;;  %v8363_v58 = vpop.f32.mrb[30].mxu1  ;;  %v8966_v34 = vpop.f32.mrb[32].mxu0 }
 0x414   : > { %6894 = vst.msk [vmem:[%s12094_s4 + $0xe8] sm:$0xff] %vm6864_vm1, %v9213_v2  ;;  %v9216_v18 = vadd.f32 %v8363_v58, %v12086_v38  ;;  %v3406_v36 = vpop.f32.mrb[31].mxu1  ;;  %v6290_v30 = vpop.f32.mrb[33].mxu0 }
 0x415   : > { %6893 = vst.msk [vmem:[%s12094_s4 + $0xe0] sm:$0xff] %vm6864_vm1, %v9215_v22  ;;  %v9218_v45 = vadd.f32 %v12086_v38, %v3406_v36 }
 0x416   : > { %v9217_v48 = vadd.f32 %v9216_v18, %v8963_v26 }
 0x417   : > { %v9219_v52 = vadd.f32 %v9218_v45, %v6278_v54  ;;  %v8366_v59 = vpop.f32.mrb[32].mxu1  ;;  %v8969_v3 = vpop.f32.mrb[34].mxu0 }
 0x418   : > { %6896 = vst.msk [vmem:[%s12094_s4 + $0xf8] sm:$0xff] %vm6864_vm1, %v9217_v48  ;;  %v9220_v17 = vadd.f32 %v8366_v59, %v12086_v38  ;;  %v3420_v53 = vpop.f32.mrb[33].mxu1  ;;  %v6302_v28 = vpop.f32.mrb[35].mxu0 }
 0x419   : > { %6895 = vst.msk [vmem:[%s12094_s4 + $0xf0] sm:$0xff] %vm6864_vm1, %v9219_v52  ;;  %v9222_v35 = vadd.f32 %v12086_v38, %v3420_v53 }
 0x41a   : > { %v9221_v43 = vadd.f32 %v9220_v17, %v8966_v34 }
 0x41b   : > { %v9223_v5 = vadd.f32 %v9222_v35, %v6290_v30  ;;  %v8369_v8 = vpop.f32.mrb[34].mxu1  ;;  %v8972_v57 = vpop.f32.mrb[36].mxu0 }
 0x41c   : > { %6898 = vst.msk [vmem:[%s12094_s4 + $0x108] sm:$0xff] %vm6864_vm1, %v9221_v43  ;;  %v9224_v31 = vadd.f32 %v8369_v8, %v12086_v38  ;;  %v3434_v7 = vpop.f32.mrb[35].mxu1  ;;  %v6314_v27 = vpop.f32.mrb[37].mxu0 }
 0x41d   : > { %6897 = vst.msk [vmem:[%s12094_s4 + $0x100] sm:$0xff] %vm6864_vm1, %v9223_v5  ;;  %v9226_v46 = vadd.f32 %v12086_v38, %v3434_v7 }
 0x41e   : > { %v9225_v0 = vadd.f32 %v9224_v31, %v8969_v3 }
 0x41f   : > { %v9227_v39 = vadd.f32 %v9226_v46, %v6302_v28  ;;  %v8372_v29 = vpop.f32.mrb[36].mxu1  ;;  %v8975_v21 = vpop.f32.mrb[38].mxu0 }
 0x420   : > { %6900 = vst.msk [vmem:[%s12094_s4 + $0x118] sm:$0xff] %vm6864_vm1, %v9225_v0  ;;  %v9228_v32 = vadd.f32 %v8372_v29, %v12086_v38  ;;  %v3448_v42 = vpop.f32.mrb[37].mxu1  ;;  %v6326_v11 = vpop.f32.mrb[39].mxu0 }
 0x421   : > { %6899 = vst.msk [vmem:[%s12094_s4 + $0x110] sm:$0xff] %vm6864_vm1, %v9227_v39  ;;  %v9230_v61 = vadd.f32 %v12086_v38, %v3448_v42 }
 0x422   : > { %v9229_v51 = vadd.f32 %v9228_v32, %v8972_v57 }
 0x423   : > { %v9231_v40 = vadd.f32 %v9230_v61, %v6314_v27  ;;  %v8375_v12 = vpop.f32.mrb[38].mxu1  ;;  %v8978_v6 = vpop.f32.mrb[40].mxu0 }
 0x424   : > { %6902 = vst.msk [vmem:[%s12094_s4 + $0x128] sm:$0xff] %vm6864_vm1, %v9229_v51  ;;  %v9232_v63 = vadd.f32 %v8375_v12, %v12086_v38  ;;  %v3462_v9 = vpop.f32.mrb[39].mxu1  ;;  %v6338_v47 = vpop.f32.mrb[41].mxu0 }
 0x425   : > { %6901 = vst.msk [vmem:[%s12094_s4 + $0x120] sm:$0xff] %vm6864_vm1, %v9231_v40  ;;  %v9234_v19 = vadd.f32 %v12086_v38, %v3462_v9 }
 0x426   : > { %v9233_v15 = vadd.f32 %v9232_v63, %v8975_v21 }
 0x427   : > { %v9235_v13 = vadd.f32 %v9234_v19, %v6326_v11  ;;  %v8378_v49 = vpop.f32.mrb[40].mxu1  ;;  %v8981_v14 = vpop.f32.mrb[42].mxu0 }
 0x428   : > { %6904 = vst.msk [vmem:[%s12094_s4 + $0x138] sm:$0xff] %vm6864_vm1, %v9233_v15  ;;  %v9236_v16 = vadd.f32 %v8378_v49, %v12086_v38  ;;  %v3476_v37 = vpop.f32.mrb[41].mxu1  ;;  %v6350_v41 = vpop.f32.mrb[43].mxu0 }
 0x429   : > { %6903 = vst.msk [vmem:[%s12094_s4 + $0x130] sm:$0xff] %vm6864_vm1, %v9235_v13  ;;  %v9238_v25 = vadd.f32 %v12086_v38, %v3476_v37 }
 0x42a   : > { %v9237_v33 = vadd.f32 %v9236_v16, %v8978_v6 }
 0x42b   : > { %v9239_v62 = vadd.f32 %v9238_v25, %v6338_v47  ;;  %v8381_v55 = vpop.f32.mrb[42].mxu1  ;;  %v8984_v10 = vpop.f32.mrb[44].mxu0 }
 0x42c   : > { %6906 = vst.msk [vmem:[%s12094_s4 + $0x148] sm:$0xff] %vm6864_vm1, %v9237_v33  ;;  %v9240_v23 = vadd.f32 %v8381_v55, %v12086_v38  ;;  %v3490_v1 = vpop.f32.mrb[43].mxu1  ;;  %v6362_v20 = vpop.f32.mrb[45].mxu0 }
 0x42d   : > { %6905 = vst.msk [vmem:[%s12094_s4 + $0x140] sm:$0xff] %vm6864_vm1, %v9239_v62  ;;  %v9242_v50 = vadd.f32 %v12086_v38, %v3490_v1 }
 0x42e   : > { %v9241_v24 = vadd.f32 %v9240_v23, %v8981_v14 }
 0x42f   : > { %v9243_v44 = vadd.f32 %v9242_v50, %v6350_v41  ;;  %v8384_v26 = vpop.f32.mrb[44].mxu1  ;;  %v8987_v60 = vpop.f32.mrb[46].mxu0 }
 0x430   : > { %6908 = vst.msk [vmem:[%s12094_s4 + $0x158] sm:$0xff] %vm6864_vm1, %v9241_v24  ;;  %v9244_v56 = vadd.f32 %v8384_v26, %v12086_v38  ;;  %v3504_v54 = vpop.f32.mrb[45].mxu1  ;;  %v6374_v4 = vpop.f32.mrb[47].mxu0 }
 0x431   : > { %6907 = vst.msk [vmem:[%s12094_s4 + $0x150] sm:$0xff] %vm6864_vm1, %v9243_v44  ;;  %v9246_v2 = vadd.f32 %v12086_v38, %v3504_v54 }
 0x432   : > { %v9245_v22 = vadd.f32 %v9244_v56, %v8984_v10 }
 0x433   : > { %v9247_v58 = vadd.f32 %v9246_v2, %v6362_v20  ;;  %v8387_v34 = vpop.f32.mrb[46].mxu1  ;;  %v8990_v18 = vpop.f32.mrb[48].mxu0 }
 0x434   : > { %6910 = vst.msk [vmem:[%s12094_s4 + $0x168] sm:$0xff] %vm6864_vm1, %v9245_v22  ;;  %v9248_v36 = vadd.f32 %v8387_v34, %v12086_v38  ;;  %v3518_v30 = vpop.f32.mrb[47].mxu1  ;;  %v6386_v45 = vpop.f32.mrb[49].mxu0 }
 0x435   : > { %6909 = vst.msk [vmem:[%s12094_s4 + $0x160] sm:$0xff] %vm6864_vm1, %v9247_v58  ;;  %v9250_v48 = vadd.f32 %v12086_v38, %v3518_v30 }
 0x436   : > { %v9249_v52 = vadd.f32 %v9248_v36, %v8987_v60 }
 0x437   : > { %v9251_v59 = vadd.f32 %v9250_v48, %v6374_v4  ;;  %v8390_v3 = vpop.f32.mrb[48].mxu1  ;;  %v8993_v17 = vpop.f32.mrb[50].mxu0 }
 0x438   : > { %6912 = vst.msk [vmem:[%s12094_s4 + $0x178] sm:$0xff] %vm6864_vm1, %v9249_v52  ;;  %v9252_v53 = vadd.f32 %v8390_v3, %v12086_v38  ;;  %v3532_v28 = vpop.f32.mrb[49].mxu1  ;;  %v6398_v35 = vpop.f32.mrb[51].mxu0 }
 0x439   : > { %6911 = vst.msk [vmem:[%s12094_s4 + $0x170] sm:$0xff] %vm6864_vm1, %v9251_v59  ;;  %v9254_v43 = vadd.f32 %v12086_v38, %v3532_v28 }
 0x43a   : > { %v9253_v5 = vadd.f32 %v9252_v53, %v8990_v18 }
 0x43b   : > { %v9255_v8 = vadd.f32 %v9254_v43, %v6386_v45  ;;  %v8393_v57 = vpop.f32.mrb[50].mxu1  ;;  %v8996_v31 = vpop.f32.mrb[52].mxu0 }
 0x43c   : > { %6914 = vst.msk [vmem:[%s12094_s4 + $0x188] sm:$0xff] %vm6864_vm1, %v9253_v5  ;;  %v9256_v7 = vadd.f32 %v8393_v57, %v12086_v38  ;;  %v3546_v27 = vpop.f32.mrb[51].mxu1  ;;  %v6410_v46 = vpop.f32.mrb[53].mxu0 }
 0x43d   : > { %6913 = vst.msk [vmem:[%s12094_s4 + $0x180] sm:$0xff] %vm6864_vm1, %v9255_v8  ;;  %v9258_v0 = vadd.f32 %v12086_v38, %v3546_v27 }
 0x43e   : > { %v9257_v39 = vadd.f32 %v9256_v7, %v8993_v17 }
 0x43f   : > { %v9259_v29 = vadd.f32 %v9258_v0, %v6398_v35  ;;  %v8396_v21 = vpop.f32.mrb[52].mxu1  ;;  %v8999_v32 = vpop.f32.mrb[54].mxu0 }
 0x440   : > { %6916 = vst.msk [vmem:[%s12094_s4 + $0x198] sm:$0xff] %vm6864_vm1, %v9257_v39  ;;  %v9260_v42 = vadd.f32 %v8396_v21, %v12086_v38  ;;  %v3560_v11 = vpop.f32.mrb[53].mxu1  ;;  %v6422_v61 = vpop.f32.mrb[55].mxu0 }
 0x441   : > { %6915 = vst.msk [vmem:[%s12094_s4 + $0x190] sm:$0xff] %vm6864_vm1, %v9259_v29  ;;  %v9262_v51 = vadd.f32 %v12086_v38, %v3560_v11 }
 0x442   : > { %v9261_v40 = vadd.f32 %v9260_v42, %v8996_v31 }
 0x443   : > { %v9263_v12 = vadd.f32 %v9262_v51, %v6410_v46  ;;  %v8399_v6 = vpop.f32.mrb[54].mxu1  ;;  %v9002_v63 = vpop.f32.mrb[56].mxu0 }
 0x444   : > { %6918 = vst.msk [vmem:[%s12094_s4 + $0x1a8] sm:$0xff] %vm6864_vm1, %v9261_v40  ;;  %v9264_v9 = vadd.f32 %v8399_v6, %v12086_v38  ;;  %v3574_v47 = vpop.f32.mrb[55].mxu1  ;;  %v6434_v19 = vpop.f32.mrb[57].mxu0 }
 0x445   : > { %6917 = vst.msk [vmem:[%s12094_s4 + $0x1a0] sm:$0xff] %vm6864_vm1, %v9263_v12  ;;  %v9266_v15 = vadd.f32 %v12086_v38, %v3574_v47 }
 0x446   : > { %v9265_v13 = vadd.f32 %v9264_v9, %v8999_v32 }
 0x447   : > { %v9267_v49 = vadd.f32 %v9266_v15, %v6422_v61  ;;  %v8402_v14 = vpop.f32.mrb[56].mxu1  ;;  %v9005_v16 = vpop.f32.mrb[58].mxu0 }
 0x448   : > { %6920 = vst.msk [vmem:[%s12094_s4 + $0x1b8] sm:$0xff] %vm6864_vm1, %v9265_v13  ;;  %v9268_v37 = vadd.f32 %v8402_v14, %v12086_v38  ;;  %v3588_v41 = vpop.f32.mrb[57].mxu1  ;;  %v6446_v25 = vpop.f32.mrb[59].mxu0 }
 0x449   : > { %6919 = vst.msk [vmem:[%s12094_s4 + $0x1b0] sm:$0xff] %vm6864_vm1, %v9267_v49  ;;  %v9270_v33 = vadd.f32 %v12086_v38, %v3588_v41 }
 0x44a   : > { %v9269_v62 = vadd.f32 %v9268_v37, %v9002_v63 }
 0x44b   : > { %v9271_v55 = vadd.f32 %v9270_v33, %v6434_v19  ;;  %v8405_v10 = vpop.f32.mrb[58].mxu1  ;;  %v9008_v23 = vpop.f32.mrb[60].mxu0 }
 0x44c   : > { %6922 = vst.msk [vmem:[%s12094_s4 + $0x1c8] sm:$0xff] %vm6864_vm1, %v9269_v62  ;;  %v9272_v1 = vadd.f32 %v8405_v10, %v12086_v38  ;;  %v3602_v20 = vpop.f32.mrb[59].mxu1  ;;  %v6458_v50 = vpop.f32.mrb[61].mxu0 }
 0x44d   : > { %6921 = vst.msk [vmem:[%s12094_s4 + $0x1c0] sm:$0xff] %vm6864_vm1, %v9271_v55  ;;  %v9274_v24 = vadd.f32 %v12086_v38, %v3602_v20 }
 0x44e   : > { %v9273_v44 = vadd.f32 %v9272_v1, %v9005_v16 }
 0x44f   : > { %v9275_v26 = vadd.f32 %v9274_v24, %v6446_v25  ;;  %v8408_v60 = vpop.f32.mrb[60].mxu1  ;;  %v9011_v56 = vpop.f32.mrb[62].mxu0 }
 0x450   : > { %6924 = vst.msk [vmem:[%s12094_s4 + $0x1d8] sm:$0xff] %vm6864_vm1, %v9273_v44  ;;  %v9276_v54 = vadd.f32 %v8408_v60, %v12086_v38  ;;  %v3616_v4 = vpop.f32.mrb[61].mxu1  ;;  %v6470_v2 = vpop.f32.mrb[63].mxu0 }
 0x451   : > { %6923 = vst.msk [vmem:[%s12094_s4 + $0x1d0] sm:$0xff] %vm6864_vm1, %v9275_v26  ;;  %v9278_v22 = vadd.f32 %v12086_v38, %v3616_v4 }
 0x452   : > { %v9277_v58 = vadd.f32 %v9276_v54, %v9008_v23 }
 0x453   : > { %v9279_v34 = vadd.f32 %v9278_v22, %v6458_v50  ;;  %v8411_v18 = vpop.f32.mrb[62].mxu1  ;;  %v9014_v36 = vpop.f32.mrb[64].mxu0 }
 0x454   : > { %6926 = vst.msk [vmem:[%s12094_s4 + $0x1e8] sm:$0xff] %vm6864_vm1, %v9277_v58  ;;  %v9280_v30 = vadd.f32 %v8411_v18, %v12086_v38  ;;  %v3630_v45 = vpop.f32.mrb[63].mxu1  ;;  %v6482_v48 = vpop.f32.mrb[65].mxu0 }
 0x455   : > { %6925 = vst.msk [vmem:[%s12094_s4 + $0x1e0] sm:$0xff] %vm6864_vm1, %v9279_v34  ;;  %v9282_v52 = vadd.f32 %v12086_v38, %v3630_v45 }
 0x456   : > { %v9281_v59 = vadd.f32 %v9280_v30, %v9011_v56 }
 0x457   : > { %v9283_v3 = vadd.f32 %v9282_v52, %v6470_v2  ;;  %v8414_v17 = vpop.f32.mrb[64].mxu1  ;;  %v9017_v53 = vpop.f32.mrb[66].mxu0 }
 0x458   : > { %6928 = vst.msk [vmem:[%s12094_s4 + $0x1f8] sm:$0xff] %vm6864_vm1, %v9281_v59  ;;  %v9284_v28 = vadd.f32 %v8414_v17, %v12086_v38  ;;  %v3644_v35 = vpop.f32.mrb[65].mxu1  ;;  %v6494_v43 = vpop.f32.mrb[67].mxu0 }
 0x459   : > { %6927 = vst.msk [vmem:[%s12094_s4 + $0x1f0] sm:$0xff] %vm6864_vm1, %v9283_v3  ;;  %v9286_v5 = vadd.f32 %v12086_v38, %v3644_v35 }
 0x45a   : > { %v9285_v8 = vadd.f32 %v9284_v28, %v9014_v36 }
 0x45b   : > { %v9287_v57 = vadd.f32 %v9286_v5, %v6482_v48  ;;  %v8417_v31 = vpop.f32.mrb[66].mxu1  ;;  %v9020_v7 = vpop.f32.mrb[68].mxu0 }
 0x45c   : > { %6930 = vst.msk [vmem:[%s12094_s4 + $0x208] sm:$0xff] %vm6864_vm1, %v9285_v8  ;;  %v9288_v27 = vadd.f32 %v8417_v31, %v12086_v38  ;;  %v3658_v46 = vpop.f32.mrb[67].mxu1  ;;  %v6506_v0 = vpop.f32.mrb[69].mxu0 }
 0x45d   : > { %6929 = vst.msk [vmem:[%s12094_s4 + $0x200] sm:$0xff] %vm6864_vm1, %v9287_v57  ;;  %v9290_v39 = vadd.f32 %v12086_v38, %v3658_v46 }
 0x45e   : > { %v9289_v29 = vadd.f32 %v9288_v27, %v9017_v53 }
 0x45f   : > { %v9291_v21 = vadd.f32 %v9290_v39, %v6494_v43  ;;  %v8420_v32 = vpop.f32.mrb[68].mxu1  ;;  %v9023_v42 = vpop.f32.mrb[70].mxu0 }
 0x460   : > { %6932 = vst.msk [vmem:[%s12094_s4 + $0x218] sm:$0xff] %vm6864_vm1, %v9289_v29  ;;  %v9292_v11 = vadd.f32 %v8420_v32, %v12086_v38  ;;  %v3672_v61 = vpop.f32.mrb[69].mxu1  ;;  %v6518_v51 = vpop.f32.mrb[71].mxu0 }
 0x461   : > { %6931 = vst.msk [vmem:[%s12094_s4 + $0x210] sm:$0xff] %vm6864_vm1, %v9291_v21  ;;  %v9294_v40 = vadd.f32 %v12086_v38, %v3672_v61 }
 0x462   : > { %v9293_v12 = vadd.f32 %v9292_v11, %v9020_v7 }
 0x463   : > { %v9295_v6 = vadd.f32 %v9294_v40, %v6506_v0  ;;  %v8423_v63 = vpop.f32.mrb[70].mxu1  ;;  %v9026_v9 = vpop.f32.mrb[72].mxu0 }
 0x464   : > { %6934 = vst.msk [vmem:[%s12094_s4 + $0x228] sm:$0xff] %vm6864_vm1, %v9293_v12  ;;  %v9296_v47 = vadd.f32 %v8423_v63, %v12086_v38  ;;  %v3686_v19 = vpop.f32.mrb[71].mxu1  ;;  %v6530_v15 = vpop.f32.mrb[73].mxu0 }
 0x465   : > { %6933 = vst.msk [vmem:[%s12094_s4 + $0x220] sm:$0xff] %vm6864_vm1, %v9295_v6  ;;  %v9298_v13 = vadd.f32 %v12086_v38, %v3686_v19 }
 0x466   : > { %v9297_v49 = vadd.f32 %v9296_v47, %v9023_v42 }
 0x467   : > { %v9299_v14 = vadd.f32 %v9298_v13, %v6518_v51  ;;  %v8426_v16 = vpop.f32.mrb[72].mxu1  ;;  %v9029_v37 = vpop.f32.mrb[74].mxu0 }
 0x468   : > { %6936 = vst.msk [vmem:[%s12094_s4 + $0x238] sm:$0xff] %vm6864_vm1, %v9297_v49  ;;  %v9300_v41 = vadd.f32 %v8426_v16, %v12086_v38  ;;  %v3700_v25 = vpop.f32.mrb[73].mxu1  ;;  %v6542_v33 = vpop.f32.mrb[75].mxu0 }
 0x469   : > { %6935 = vst.msk [vmem:[%s12094_s4 + $0x230] sm:$0xff] %vm6864_vm1, %v9299_v14  ;;  %v9302_v62 = vadd.f32 %v12086_v38, %v3700_v25 }
 0x46a   : > { %v9301_v55 = vadd.f32 %v9300_v41, %v9026_v9 }
 0x46b   : > { %v9303_v10 = vadd.f32 %v9302_v62, %v6530_v15  ;;  %v8429_v23 = vpop.f32.mrb[74].mxu1  ;;  %v9032_v1 = vpop.f32.mrb[76].mxu0 }
 0x46c   : > { %6938 = vst.msk [vmem:[%s12094_s4 + $0x248] sm:$0xff] %vm6864_vm1, %v9301_v55  ;;  %v9304_v20 = vadd.f32 %v8429_v23, %v12086_v38  ;;  %v3714_v50 = vpop.f32.mrb[75].mxu1  ;;  %v6554_v24 = vpop.f32.mrb[77].mxu0 }
 0x46d   : > { %6937 = vst.msk [vmem:[%s12094_s4 + $0x240] sm:$0xff] %vm6864_vm1, %v9303_v10  ;;  %v9306_v44 = vadd.f32 %v12086_v38, %v3714_v50 }
 0x46e   : > { %v9305_v26 = vadd.f32 %v9304_v20, %v9029_v37 }
 0x46f   : > { %v9307_v60 = vadd.f32 %v9306_v44, %v6542_v33  ;;  %v8432_v56 = vpop.f32.mrb[76].mxu1  ;;  %v9035_v54 = vpop.f32.mrb[78].mxu0 }
 0x470   : > { %6940 = vst.msk [vmem:[%s12094_s4 + $0x258] sm:$0xff] %vm6864_vm1, %v9305_v26  ;;  %v9308_v4 = vadd.f32 %v8432_v56, %v12086_v38  ;;  %v3728_v2 = vpop.f32.mrb[77].mxu1  ;;  %v6566_v22 = vpop.f32.mrb[79].mxu0 }
 0x471   : > { %6939 = vst.msk [vmem:[%s12094_s4 + $0x250] sm:$0xff] %vm6864_vm1, %v9307_v60  ;;  %v9310_v58 = vadd.f32 %v12086_v38, %v3728_v2 }
 0x472   : > { %v9309_v34 = vadd.f32 %v9308_v4, %v9032_v1 }
 0x473   : > { %v9311_v18 = vadd.f32 %v9310_v58, %v6554_v24  ;;  %v8435_v36 = vpop.f32.mrb[78].mxu1  ;;  %v9038_v30 = vpop.f32.mrb[80].mxu0 }
 0x474   : > { %6942 = vst.msk [vmem:[%s12094_s4 + $0x268] sm:$0xff] %vm6864_vm1, %v9309_v34  ;;  %v9312_v45 = vadd.f32 %v8435_v36, %v12086_v38  ;;  %v3742_v48 = vpop.f32.mrb[79].mxu1  ;;  %v6578_v52 = vpop.f32.mrb[81].mxu0 }
 0x475   : > { %6941 = vst.msk [vmem:[%s12094_s4 + $0x260] sm:$0xff] %vm6864_vm1, %v9311_v18  ;;  %v9314_v59 = vadd.f32 %v12086_v38, %v3742_v48  ;;  %v12416_v48 = vld [vmem:[%s12542_s2] ss:$0 sm:$0xff] }
 0x476   : > { %v9313_v3 = vadd.f32 %v9312_v45, %v9035_v54 }
 0x477   : > { %v9315_v17 = vadd.f32 %v9314_v59, %v6566_v22  ;;  %v8438_v53 = vpop.f32.mrb[80].mxu1  ;;  %v9041_v28 = vpop.f32.mrb[82].mxu0 }
 0x478   : > { %6944 = vst.msk [vmem:[%s12094_s4 + $0x278] sm:$0xff] %vm6864_vm1, %v9313_v3  ;;  %v9316_v35 = vadd.f32 %v8438_v53, %v12086_v38  ;;  %v3756_v43 = vpop.f32.mrb[81].mxu1  ;;  %v6590_v5 = vpop.f32.mrb[83].mxu0 }
 0x479   : > { %6943 = vst.msk [vmem:[%s12094_s4 + $0x270] sm:$0xff] %vm6864_vm1, %v9315_v17  ;;  %v9318_v8 = vadd.f32 %v12086_v38, %v3756_v43 }
 0x47a   : > { %v9317_v57 = vadd.f32 %v9316_v35, %v9038_v30 }
 0x47b   : > { %v9319_v31 = vadd.f32 %v9318_v8, %v6578_v52  ;;  %v8441_v7 = vpop.f32.mrb[82].mxu1  ;;  %v9044_v27 = vpop.f32.mrb[84].mxu0 }
 0x47c   : > { %6946 = vst.msk [vmem:[%s12094_s4 + $0x288] sm:$0xff] %vm6864_vm1, %v9317_v57  ;;  %v9320_v46 = vadd.f32 %v8441_v7, %v12086_v38  ;;  %v3770_v0 = vpop.f32.mrb[83].mxu1  ;;  %v6602_v39 = vpop.f32.mrb[85].mxu0 }
 0x47d   : > { %6945 = vst.msk [vmem:[%s12094_s4 + $0x280] sm:$0xff] %vm6864_vm1, %v9319_v31  ;;  %v9322_v29 = vadd.f32 %v12086_v38, %v3770_v0 }
 0x47e   : > { %v9321_v21 = vadd.f32 %v9320_v46, %v9041_v28 }
 0x47f   : > { %v9323_v32 = vadd.f32 %v9322_v29, %v6590_v5  ;;  %v8444_v42 = vpop.f32.mrb[84].mxu1  ;;  %v9047_v11 = vpop.f32.mrb[86].mxu0 }
 0x480   : > { %6948 = vst.msk [vmem:[%s12094_s4 + $0x298] sm:$0xff] %vm6864_vm1, %v9321_v21  ;;  %v9324_v61 = vadd.f32 %v8444_v42, %v12086_v38  ;;  %v3784_v51 = vpop.f32.mrb[85].mxu1  ;;  %v6614_v40 = vpop.f32.mrb[87].mxu0 }
 0x481   : > { %6947 = vst.msk [vmem:[%s12094_s4 + $0x290] sm:$0xff] %vm6864_vm1, %v9323_v32  ;;  %v9326_v12 = vadd.f32 %v12086_v38, %v3784_v51 }
 0x482   : > { %v9325_v6 = vadd.f32 %v9324_v61, %v9044_v27 }
 0x483   : > { %v9327_v63 = vadd.f32 %v9326_v12, %v6602_v39  ;;  %v8447_v9 = vpop.f32.mrb[86].mxu1  ;;  %v9050_v47 = vpop.f32.mrb[88].mxu0 }
 0x484   : > { %6950 = vst.msk [vmem:[%s12094_s4 + $0x2a8] sm:$0xff] %vm6864_vm1, %v9325_v6  ;;  %v9328_v19 = vadd.f32 %v8447_v9, %v12086_v38  ;;  %v3798_v15 = vpop.f32.mrb[87].mxu1  ;;  %v6626_v13 = vpop.f32.mrb[89].mxu0 }
 0x485   : > { %6949 = vst.msk [vmem:[%s12094_s4 + $0x2a0] sm:$0xff] %vm6864_vm1, %v9327_v63  ;;  %v9330_v49 = vadd.f32 %v12086_v38, %v3798_v15 }
 0x486   : > { %v9329_v14 = vadd.f32 %v9328_v19, %v9047_v11 }
 0x487   : > { %v9331_v16 = vadd.f32 %v9330_v49, %v6614_v40  ;;  %v8450_v37 = vpop.f32.mrb[88].mxu1  ;;  %v9053_v41 = vpop.f32.mrb[90].mxu0 }
 0x488   : > { %6952 = vst.msk [vmem:[%s12094_s4 + $0x2b8] sm:$0xff] %vm6864_vm1, %v9329_v14  ;;  %v9332_v25 = vadd.f32 %v8450_v37, %v12086_v38  ;;  %v3812_v33 = vpop.f32.mrb[89].mxu1  ;;  %v6638_v62 = vpop.f32.mrb[91].mxu0 }
 0x489   : > { %6951 = vst.msk [vmem:[%s12094_s4 + $0x2b0] sm:$0xff] %vm6864_vm1, %v9331_v16  ;;  %v9334_v55 = vadd.f32 %v12086_v38, %v3812_v33 }
 0x48a   : > { %v9333_v10 = vadd.f32 %v9332_v25, %v9050_v47 }
 0x48b   : > { %v9335_v23 = vadd.f32 %v9334_v55, %v6626_v13  ;;  %v8453_v1 = vpop.f32.mrb[90].mxu1  ;;  %v9056_v20 = vpop.f32.mrb[92].mxu0 }
 0x48c   : > { %6954 = vst.msk [vmem:[%s12094_s4 + $0x2c8] sm:$0xff] %vm6864_vm1, %v9333_v10  ;;  %v9336_v50 = vadd.f32 %v8453_v1, %v12086_v38  ;;  %v3826_v24 = vpop.f32.mrb[91].mxu1  ;;  %v6650_v44 = vpop.f32.mrb[93].mxu0 }
 0x48d   : > { %6953 = vst.msk [vmem:[%s12094_s4 + $0x2c0] sm:$0xff] %vm6864_vm1, %v9335_v23  ;;  %v9338_v26 = vadd.f32 %v12086_v38, %v3826_v24 }
 0x48e   : > { %v9337_v60 = vadd.f32 %v9336_v50, %v9053_v41 }
 0x48f   : > { %v9339_v56 = vadd.f32 %v9338_v26, %v6638_v62  ;;  %v8456_v54 = vpop.f32.mrb[92].mxu1  ;;  %v9059_v4 = vpop.f32.mrb[94].mxu0 }
 0x490   : > { %6956 = vst.msk [vmem:[%s12094_s4 + $0x2d8] sm:$0xff] %vm6864_vm1, %v9337_v60  ;;  %v9340_v2 = vadd.f32 %v8456_v54, %v12086_v38  ;;  %v3840_v22 = vpop.f32.mrb[93].mxu1  ;;  %v6662_v58 = vpop.f32.mrb[95].mxu0 }
 0x491   : > { %6955 = vst.msk [vmem:[%s12094_s4 + $0x2d0] sm:$0xff] %vm6864_vm1, %v9339_v56  ;;  %v9342_v34 = vadd.f32 %v12086_v38, %v3840_v22 }
 0x492   : > { %v9341_v18 = vadd.f32 %v9340_v2, %v9056_v20 }
 0x493   : > { %v9343_v36 = vadd.f32 %v9342_v34, %v6650_v44  ;;  %v8459_v30 = vpop.f32.mrb[94].mxu1  ;;  %v9062_v45 = vpop.f32.mrb[96].mxu0 }
 0x494   : > { %6958 = vst.msk [vmem:[%s12094_s4 + $0x2e8] sm:$0xff] %vm6864_vm1, %v9341_v18  ;;  %v9344_v52 = vadd.f32 %v12416_v48, %v8459_v30  ;;  %v3854_v59 = vpop.f32.mrb[95].mxu1  ;;  %v6674_v3 = vpop.f32.mrb[97].mxu0 }
 0x495   : > { %6957 = vst.msk [vmem:[%s12094_s4 + $0x2e0] sm:$0xff] %vm6864_vm1, %v9343_v36  ;;  %v9346_v38 = vadd.f32 %v12416_v48, %v3854_v59 }
 0x496   : > { %v9345_v17 = vadd.f32 %v9344_v52, %v9059_v4 }
 0x497   : > { %v9347_v53 = vadd.f32 %v9346_v38, %v6662_v58  ;;  %v8462_v28 = vpop.f32.mrb[96].mxu1  ;;  %v9065_v35 = vpop.f32.mrb[98].mxu0 }
 0x498   : > { %6960 = vst.msk [vmem:[%s12094_s4 + $0x2f8] sm:$0xff] %vm6864_vm1, %v9345_v17  ;;  %v9348_v43 = vadd.f32 %v12416_v48, %v8462_v28  ;;  %v3868_v5 = vpop.f32.mrb[97].mxu1  ;;  %v6686_v8 = vpop.f32.mrb[99].mxu0 }
 0x499   : > { %6959 = vst.msk [vmem:[%s12094_s4 + $0x2f0] sm:$0xff] %vm6864_vm1, %v9347_v53  ;;  %v9350_v57 = vadd.f32 %v12416_v48, %v3868_v5 }
 0x49a   : > { %v9349_v31 = vadd.f32 %v9348_v43, %v9062_v45 }
 0x49b   : > { %v9351_v7 = vadd.f32 %v9350_v57, %v6674_v3  ;;  %v8465_v27 = vpop.f32.mrb[98].mxu1  ;;  %v9068_v46 = vpop.f32.mrb[100].mxu0 }
 0x49c   : > { %6962 = vst.msk [vmem:[%s12094_s4 + $0x308] sm:$0xff] %vm6864_vm1, %v9349_v31  ;;  %v9352_v0 = vadd.f32 %v12416_v48, %v8465_v27  ;;  %v3882_v39 = vpop.f32.mrb[99].mxu1  ;;  %v6698_v29 = vpop.f32.mrb[101].mxu0 }
 0x49d   : > { %6961 = vst.msk [vmem:[%s12094_s4 + $0x300] sm:$0xff] %vm6864_vm1, %v9351_v7  ;;  %v9354_v21 = vadd.f32 %v12416_v48, %v3882_v39 }
 0x49e   : > { %v9353_v32 = vadd.f32 %v9352_v0, %v9065_v35 }
 0x49f   : > { %v9355_v42 = vadd.f32 %v9354_v21, %v6686_v8  ;;  %v8468_v11 = vpop.f32.mrb[100].mxu1  ;;  %v9071_v61 = vpop.f32.mrb[102].mxu0 }
 0x4a0   : > { %6964 = vst.msk [vmem:[%s12094_s4 + $0x318] sm:$0xff] %vm6864_vm1, %v9353_v32  ;;  %v9356_v51 = vadd.f32 %v12416_v48, %v8468_v11  ;;  %v3896_v40 = vpop.f32.mrb[101].mxu1  ;;  %v6710_v12 = vpop.f32.mrb[103].mxu0 }
 0x4a1   : > { %6963 = vst.msk [vmem:[%s12094_s4 + $0x310] sm:$0xff] %vm6864_vm1, %v9355_v42  ;;  %v9358_v6 = vadd.f32 %v12416_v48, %v3896_v40 }
 0x4a2   : > { %v9357_v63 = vadd.f32 %v9356_v51, %v9068_v46 }
 0x4a3   : > { %v9359_v9 = vadd.f32 %v9358_v6, %v6698_v29  ;;  %v8471_v47 = vpop.f32.mrb[102].mxu1  ;;  %v9074_v19 = vpop.f32.mrb[104].mxu0 }
 0x4a4   : > { %6966 = vst.msk [vmem:[%s12094_s4 + $0x328] sm:$0xff] %vm6864_vm1, %v9357_v63  ;;  %v9360_v15 = vadd.f32 %v12416_v48, %v8471_v47  ;;  %v3910_v13 = vpop.f32.mrb[103].mxu1  ;;  %v6722_v49 = vpop.f32.mrb[105].mxu0 }
 0x4a5   : > { %6965 = vst.msk [vmem:[%s12094_s4 + $0x320] sm:$0xff] %vm6864_vm1, %v9359_v9  ;;  %v9362_v14 = vadd.f32 %v12416_v48, %v3910_v13 }
 0x4a6   : > { %v9361_v16 = vadd.f32 %v9360_v15, %v9071_v61 }
 0x4a7   : > { %v9363_v37 = vadd.f32 %v9362_v14, %v6710_v12  ;;  %v8474_v41 = vpop.f32.mrb[104].mxu1  ;;  %v9077_v25 = vpop.f32.mrb[106].mxu0 }
 0x4a8   : > { %6968 = vst.msk [vmem:[%s12094_s4 + $0x338] sm:$0xff] %vm6864_vm1, %v9361_v16  ;;  %v9364_v33 = vadd.f32 %v12416_v48, %v8474_v41  ;;  %v3924_v62 = vpop.f32.mrb[105].mxu1  ;;  %v6734_v55 = vpop.f32.mrb[107].mxu0 }
 0x4a9   : > { %6967 = vst.msk [vmem:[%s12094_s4 + $0x330] sm:$0xff] %vm6864_vm1, %v9363_v37  ;;  %v9366_v10 = vadd.f32 %v12416_v48, %v3924_v62 }
 0x4aa   : > { %v9365_v23 = vadd.f32 %v9364_v33, %v9074_v19 }
 0x4ab   : > { %v9367_v1 = vadd.f32 %v9366_v10, %v6722_v49  ;;  %v8477_v20 = vpop.f32.mrb[106].mxu1  ;;  %v9080_v50 = vpop.f32.mrb[108].mxu0 }
 0x4ac   : > { %6970 = vst.msk [vmem:[%s12094_s4 + $0x348] sm:$0xff] %vm6864_vm1, %v9365_v23  ;;  %v9368_v24 = vadd.f32 %v12416_v48, %v8477_v20  ;;  %v3938_v44 = vpop.f32.mrb[107].mxu1  ;;  %v6746_v26 = vpop.f32.mrb[109].mxu0 }
 0x4ad   : > { %6969 = vst.msk [vmem:[%s12094_s4 + $0x340] sm:$0xff] %vm6864_vm1, %v9367_v1  ;;  %v9370_v60 = vadd.f32 %v12416_v48, %v3938_v44 }
 0x4ae   : > { %v9369_v56 = vadd.f32 %v9368_v24, %v9077_v25 }
 0x4af   : > { %v9371_v54 = vadd.f32 %v9370_v60, %v6734_v55  ;;  %v8480_v4 = vpop.f32.mrb[108].mxu1  ;;  %v9083_v2 = vpop.f32.mrb[110].mxu0 }
 0x4b0   : > { %6972 = vst.msk [vmem:[%s12094_s4 + $0x358] sm:$0xff] %vm6864_vm1, %v9369_v56  ;;  %v9372_v22 = vadd.f32 %v12416_v48, %v8480_v4  ;;  %v3952_v58 = vpop.f32.mrb[109].mxu1  ;;  %v6758_v34 = vpop.f32.mrb[111].mxu0 }
 0x4b1   : > { %6971 = vst.msk [vmem:[%s12094_s4 + $0x350] sm:$0xff] %vm6864_vm1, %v9371_v54  ;;  %v9374_v18 = vadd.f32 %v12416_v48, %v3952_v58 }
 0x4b2   : > { %v9373_v36 = vadd.f32 %v9372_v22, %v9080_v50 }
 0x4b3   : > { %v9375_v30 = vadd.f32 %v9374_v18, %v6746_v26  ;;  %v8483_v45 = vpop.f32.mrb[110].mxu1  ;;  %v9086_v52 = vpop.f32.mrb[112].mxu0 }
 0x4b4   : > { %6974 = vst.msk [vmem:[%s12094_s4 + $0x368] sm:$0xff] %vm6864_vm1, %v9373_v36  ;;  %v9376_v59 = vadd.f32 %v12416_v48, %v8483_v45  ;;  %v3966_v3 = vpop.f32.mrb[111].mxu1  ;;  %v6770_v38 = vpop.f32.mrb[113].mxu0 }
 0x4b5   : > { %6973 = vst.msk [vmem:[%s12094_s4 + $0x360] sm:$0xff] %vm6864_vm1, %v9375_v30  ;;  %v9378_v17 = vadd.f32 %v12416_v48, %v3966_v3 }
 0x4b6   : > { %v9377_v53 = vadd.f32 %v9376_v59, %v9083_v2 }
 0x4b7   : > { %v9379_v28 = vadd.f32 %v9378_v17, %v6758_v34  ;;  %v8486_v35 = vpop.f32.mrb[112].mxu1  ;;  %v9089_v43 = vpop.f32.mrb[114].mxu0 }
 0x4b8   : > { %6976 = vst.msk [vmem:[%s12094_s4 + $0x378] sm:$0xff] %vm6864_vm1, %v9377_v53  ;;  %v9380_v5 = vadd.f32 %v12416_v48, %v8486_v35  ;;  %v3980_v8 = vpop.f32.mrb[113].mxu1  ;;  %v6782_v57 = vpop.f32.mrb[115].mxu0 }
 0x4b9   : > { %6975 = vst.msk [vmem:[%s12094_s4 + $0x370] sm:$0xff] %vm6864_vm1, %v9379_v28  ;;  %v9382_v31 = vadd.f32 %v12416_v48, %v3980_v8 }
 0x4ba   : > { %v9381_v7 = vadd.f32 %v9380_v5, %v9086_v52 }
 0x4bb   : > { %v9383_v27 = vadd.f32 %v9382_v31, %v6770_v38  ;;  %v8489_v46 = vpop.f32.mrb[114].mxu1  ;;  %v9092_v0 = vpop.f32.mrb[116].mxu0 }
 0x4bc   : > { %6978 = vst.msk [vmem:[%s12094_s4 + $0x388] sm:$0xff] %vm6864_vm1, %v9381_v7  ;;  %v9384_v39 = vadd.f32 %v12416_v48, %v8489_v46  ;;  %v3994_v29 = vpop.f32.mrb[115].mxu1  ;;  %v6794_v21 = vpop.f32.mrb[117].mxu0 }
 0x4bd   : > { %6977 = vst.msk [vmem:[%s12094_s4 + $0x380] sm:$0xff] %vm6864_vm1, %v9383_v27  ;;  %v9386_v32 = vadd.f32 %v12416_v48, %v3994_v29 }
 0x4be   : > { %v9385_v42 = vadd.f32 %v9384_v39, %v9089_v43 }
 0x4bf   : > { %v9387_v11 = vadd.f32 %v9386_v32, %v6782_v57  ;;  %v8492_v61 = vpop.f32.mrb[116].mxu1  ;;  %v9095_v51 = vpop.f32.mrb[118].mxu0 }
 0x4c0   : > { %6980 = vst.msk [vmem:[%s12094_s4 + $0x398] sm:$0xff] %vm6864_vm1, %v9385_v42  ;;  %v9388_v40 = vadd.f32 %v12416_v48, %v8492_v61  ;;  %v4008_v12 = vpop.f32.mrb[117].mxu1  ;;  %v6806_v6 = vpop.f32.mrb[119].mxu0 }
 0x4c1   : > { %6979 = vst.msk [vmem:[%s12094_s4 + $0x390] sm:$0xff] %vm6864_vm1, %v9387_v11  ;;  %v9390_v63 = vadd.f32 %v12416_v48, %v4008_v12 }
 0x4c2   : > { %v9389_v9 = vadd.f32 %v9388_v40, %v9092_v0 }
 0x4c3   : > { %v9391_v47 = vadd.f32 %v9390_v63, %v6794_v21  ;;  %v8495_v19 = vpop.f32.mrb[118].mxu1  ;;  %v9098_v15 = vpop.f32.mrb[120].mxu0 }
 0x4c4   : > { %6982 = vst.msk [vmem:[%s12094_s4 + $0x3a8] sm:$0xff] %vm6864_vm1, %v9389_v9  ;;  %v9392_v13 = vadd.f32 %v12416_v48, %v8495_v19  ;;  %v4022_v49 = vpop.f32.mrb[119].mxu1  ;;  %v6818_v14 = vpop.f32.mrb[121].mxu0 }
 0x4c5   : > { %6981 = vst.msk [vmem:[%s12094_s4 + $0x3a0] sm:$0xff] %vm6864_vm1, %v9391_v47  ;;  %v9394_v16 = vadd.f32 %v12416_v48, %v4022_v49 }
 0x4c6   : > { %v9393_v37 = vadd.f32 %v9392_v13, %v9095_v51 }
 0x4c7   : > { %v9395_v41 = vadd.f32 %v9394_v16, %v6806_v6  ;;  %v8498_v25 = vpop.f32.mrb[120].mxu1  ;;  %v9101_v33 = vpop.f32.mrb[122].mxu0 }
 0x4c8   : > { %6984 = vst.msk [vmem:[%s12094_s4 + $0x3b8] sm:$0xff] %vm6864_vm1, %v9393_v37  ;;  %v9396_v62 = vadd.f32 %v12416_v48, %v8498_v25  ;;  %v4036_v55 = vpop.f32.mrb[121].mxu1  ;;  %v6830_v10 = vpop.f32.mrb[123].mxu0 }
 0x4c9   : > { %6983 = vst.msk [vmem:[%s12094_s4 + $0x3b0] sm:$0xff] %vm6864_vm1, %v9395_v41  ;;  %v9398_v23 = vadd.f32 %v12416_v48, %v4036_v55 }
 0x4ca   : > { %v9397_v1 = vadd.f32 %v9396_v62, %v9098_v15 }
 0x4cb   : > { %v9399_v20 = vadd.f32 %v9398_v23, %v6818_v14  ;;  %v8501_v50 = vpop.f32.mrb[122].mxu1  ;;  %v9104_v24 = vpop.f32.mrb[124].mxu0 }
 0x4cc   : > { %6986 = vst.msk [vmem:[%s12094_s4 + $0x3c8] sm:$0xff] %vm6864_vm1, %v9397_v1  ;;  %v9400_v44 = vadd.f32 %v12416_v48, %v8501_v50  ;;  %v4050_v26 = vpop.f32.mrb[123].mxu1  ;;  %v6842_v60 = vpop.f32.mrb[125].mxu0 }
 0x4cd   : > { %6985 = vst.msk [vmem:[%s12094_s4 + $0x3c0] sm:$0xff] %vm6864_vm1, %v9399_v20  ;;  %v9402_v56 = vadd.f32 %v12416_v48, %v4050_v26 }
 0x4ce   : > { %v9401_v54 = vadd.f32 %v9400_v44, %v9101_v33 }
 0x4cf   : > { %v9403_v4 = vadd.f32 %v9402_v56, %v6830_v10  ;;  %v8504_v2 = vpop.f32.mrb[124].mxu1  ;;  %v9107_v22 = vpop.f32.mrb[126].mxu0 }
 0x4d0   : > { %6988 = vst.msk [vmem:[%s12094_s4 + $0x3d8] sm:$0xff] %vm6864_vm1, %v9401_v54  ;;  %v9404_v58 = vadd.f32 %v12416_v48, %v8504_v2  ;;  %v4064_v34 = vpop.f32.mrb[125].mxu1  ;;  %v6854_v18 = vpop.f32.mrb[127].mxu0 }
 0x4d1   : > { %6987 = vst.msk [vmem:[%s12094_s4 + $0x3d0] sm:$0xff] %vm6864_vm1, %v9403_v4  ;;  %v9406_v36 = vadd.f32 %v12416_v48, %v4064_v34 }
 0x4d2   : > { %v9405_v30 = vadd.f32 %v9404_v58, %v9104_v24 }
 0x4d3   : > { %v9407_v45 = vadd.f32 %v9406_v36, %v6842_v60  ;;  %v8507_v52 = vpop.f32.mrb[126].mxu1 }
 0x4d4   : > { %6990 = vst.msk [vmem:[%s12094_s4 + $0x3e8] sm:$0xff] %vm6864_vm1, %v9405_v30  ;;  %v9408_v59 = vadd.f32 %v12416_v48, %v8507_v52  ;;  %v4078_v3 = vpop.f32.mrb[127].mxu1 }
 0x4d5   : > { %6989 = vst.msk [vmem:[%s12094_s4 + $0x3e0] sm:$0xff] %vm6864_vm1, %v9407_v45  ;;  %v9410_v38 = vadd.f32 %v12416_v48, %v4078_v3 }
 0x4d6   : > { %v9409_v17 = vadd.f32 %v9408_v59, %v9107_v22 }
 0x4d7   : > { %v9411_v53 = vadd.f32 %v9410_v38, %v6854_v18 }
 0x4d8   : > { %6992 = vst.msk [vmem:[%s12094_s4 + $0x3f8] sm:$0xff] %vm6864_vm1, %v9409_v17 }
 0x4d9   : > { %6991 = vst.msk [vmem:[%s12094_s4 + $0x3f0] sm:$0xff] %vm6864_vm1, %v9411_v53 }
 0x4da PF: > { %s17_s17 = sadd.s32 1, %s10108_s17   ;;  %s13452_s12 = smov %s10092_s13 }
 0x4db   : > { %p14_p1 = scmp.ge.s32.totalorder %s17_s17, 4   ;;  %s13453_s13 = smov %s10096_s14 }
 0x4dc   : > { %s13454_s14 = smov %s10219_s27  ;;  %s13455_s15 = smov %s10104_s16 }
 0x4dd   : > { %s13456_s16 = smov %s13458_s25  ;;  %16 = sbr.rel (!%p14_p1) target bundleno = 5 (0x5), region = 76 }
 0x4e4   :  { %7023 = vsyncpa [#allocation3], 1 }
 0x4e5   :  { %7025 = vsyncpa [#allocation3 + $0x1], 1 }
 0x4e6   :  { %7026 = vsyncpa [#allocation5], 1 }

</bundles_post_ra>
